<compile_context>
chip_gen: v7x
topology: tpu7x:2x2x1
jax: 0.10.0
libtpu: 0.0.40
codegen_flags: <defaults>
</compile_context>

<pallas_src>
import numpy as np
import jax
import jax.numpy as jnp
from jax import lax
from jax.experimental import pallas as pl
from jax.experimental.pallas import tpu as pltpu  # noqa: F401  (kept for parity with TPU toolchain)

# ----------------------------- hyper-parameters (small) -----------------------------
SEQ_LEN   = 16
PRED_LEN  = 16
PATCH_LEN = 4
STRIDE    = 4
D_MODEL   = 16
E_LAYERS  = 2
ENC_IN    = 3
L_FULL    = SEQ_LEN + PRED_LEN                                   # 32
PNUM      = (PRED_LEN + SEQ_LEN - PATCH_LEN) // STRIDE + 2       # 9 patches (forecast branch)
POLD      = (SEQ_LEN + STRIDE - PATCH_LEN) // STRIDE + 1         # 5 patches (x_old branch)
FLAT      = PNUM * D_MODEL                                       # 144 (lane-dense)
FLAT_OLD  = POLD * D_MODEL                                       # 80
N_MIX     = 2 + 2 * E_LAYERS                                     # mixer steps surviving the x_all bug
NFREQ     = POLD // 2 + 1                                        # 3 rfft bins
NIFFT     = 2 * (NFREQ - 1)                                      # 4 = default irfft length
LN_EPS    = 1e-5
REVIN_EPS = 1e-5

assert PNUM == (L_FULL + STRIDE - PATCH_LEN) // STRIDE + 1, "patching config mismatch"


# ----------------------------- in-kernel math helpers -----------------------------
def _erf(x):
    # Abramowitz & Stegun 7.1.26 rational approximation (max abs err ~1.5e-7).
    # TODO(synk): switch to lax.erf if/when Mosaic provides a direct lowering.
    a1, a2, a3, a4, a5 = 0.254829592, -0.284496736, 1.421413741, -1.453152027, 1.061405429
    p = 0.3275911
    ax = jnp.abs(x)
    t = 1.0 / (1.0 + p * ax)
    poly = ((((a5 * t + a4) * t + a3) * t + a2) * t + a1) * t
    y = 1.0 - poly * jnp.exp(-ax * ax)
    return jnp.where(x >= 0, y, -y)


def _gelu(x):
    return 0.5 * x * (1.0 + _erf(x * 0.7071067811865475))


# ----------------------------- the fused Pallas kernel -----------------------------
def _umixer_kernel(
    x_ref, rev_w_ref, rev_b_ref, rev_winv_ref, w_pl_ref, b_pl_ref,
    w_pe_new_ref, pe_new_ref, w_pe_old_ref, pe_old_ref,
    mw1_ref, mb1_ref, mw2_ref, mb2_ref, mg_ref, mbeta_ref,
    gmean_ref, gmean_old_ref,
    ln_g_ref, ln_b_ref, dft_ri_ref, idft2_ref, sum_t_ref,
    w_head_ref, b_head_ref, o_ref,
):
    f32 = jnp.float32

    def mm(a, b):
        return jnp.dot(a, b, preferred_element_type=f32)

    def group_layernorm(r, gmean, gamma, beta):
        # LayerNorm over every contiguous group of D_MODEL lanes.  r and r*r are
        # stacked along sublanes so a SINGLE matmul with the constant block-diagonal
        # group-mean matrix yields both E[x] and E[x^2] (var = E[x^2] - mu^2).
        rows = r.shape[0]
        stats = mm(jnp.concatenate([r, r * r], axis=0), gmean)
        mu = stats[:rows]
        var = stats[rows:] - mu * mu
        return (r - mu) * lax.rsqrt(var + LN_EPS) * gamma + beta

    # ---- RevIN 'norm' (stats over time axis, biased variance, per-channel affine) ----
    x = x_ref[...]                                               # [BNP, S]
    mean = jnp.mean(x, axis=-1, keepdims=True)                   # [BNP, 1]
    var = jnp.mean((x - mean) * (x - mean), axis=-1, keepdims=True)
    stdev = jnp.sqrt(var + REVIN_EPS)                            # kept only for denorm
    inv_std = lax.rsqrt(var + REVIN_EPS)                         # no divide on the chain
    xn = (x - mean) * inv_std * rev_w_ref[...] + rev_b_ref[...]

    # ---- predict_linear: [BNP, S] -> [BNP, S + PRED] ----
    xl = mm(xn, w_pl_ref[...]) + b_pl_ref[...]                   # [BNP, 32]

    # ---- PatchEmbedding (ReplicationPad1d + unfold + Linear(patch_len, d_model) + PE)
    #      folded into one lane-dense matmul per branch (pd layout p*D + d). ----
    x_emb = mm(xl, w_pe_new_ref[...]) + pe_new_ref[...]          # [BNP, 144]
    x_old = mm(x, w_pe_old_ref[...]) + pe_old_ref[...]           # [BNP, 80]

    # ---- U-shaped mixer stack.  Per-index tempolMix/channelMix Linears are packed
    #      host-side into dense [144,144] matrices on the pd layout; only the path
    #      surviving the reference's x_all column-0 overwrite is computed
    #      (output-identical).  comb's scale/bias is folded into the last LN affine. ----
    gmean = gmean_ref[...]
    x_ud = x_emb
    for s in range(N_MIX):                                       # unrolled, N_MIX = 6
        h = mm(x_ud, mw1_ref[s]) + mb1_ref[s]
        h = _gelu(h)
        h = mm(h, mw2_ref[s]) + mb2_ref[s]
        x_ud = group_layernorm(h + x_ud, gmean, mg_ref[s], mbeta_ref[s])
    x_comb = x_ud                                                # comb folded host-side

    # ---- S_Correction: both streams share all weights, so they are stacked along
    #      sublanes and run through ONE LayerNorm + ONE DFT/power/iDFT chain.
    #      |rfft|^2 / irfft are constant real-DFT matmuls; the xr^2+xi^2 add is
    #      folded into the irfft weight (idft stacked twice along K). ----
    rows = x.shape[0]
    z = jnp.concatenate([x_old, x_comb[:, :FLAT_OLD]], axis=0)   # [2*BNP, 80]
    z_ln = group_layernorm(z, gmean_old_ref[...], ln_g_ref[...], ln_b_ref[...])
    q = mm(z_ln, dft_ri_ref[...])                                # [2*BNP, 96] = [xr | xi]
    a = jnp.maximum(mm(q * q, idft2_ref[...]), 0.0)              # [2*BNP, 64] = clamp(irfft(|.|^2))
    a_o = a[:rows]
    a_c = a[rows:]
    nd = mm(jnp.concatenate([a_o * a_c, a_c * a_c], axis=0), sum_t_ref[...])  # [2*BNP, 144]
    num = nd[:rows]
    den = nd[rows:] + 0.001
    x_scaled = jnp.sqrt(num) * lax.rsqrt(den) * x_comb           # ratio already patch-tiled

    # ---- Flatten_Head (weight columns pre-permuted into the pd layout) ----
    y = mm(x_scaled, w_head_ref[...]) + b_head_ref[...]          # [BNP, PRED]

    # ---- RevIN 'denorm' (reciprocal precomputed host-side) ----
    y = (y - rev_b_ref[...]) * rev_winv_ref[...]
    o_ref[...] = y * stdev + mean


_PACK_ORDER = (
    'rev_w_bn', 'rev_b_bn', 'rev_winv_bn', 'w_pl_t', 'b_pl',
    'w_pe_new', 'pe_new', 'w_pe_old', 'pe_old',
    'mix_w1', 'mix_b1', 'mix_w2', 'mix_b2', 'mix_g', 'mix_beta',
    'gmean', 'gmean_old', 'ln_g', 'ln_b',
    'dft_ri', 'idft2', 'sum_t_tiled', 'w_head', 'b_head',
)


def umixer_pallas(x_pad, pk):
    """x_pad: [BN_pad, SEQ_LEN] per-variable series (rows padded to 8k) -> [BN_pad, PRED_LEN]."""
    bnp = x_pad.shape[0]
    args = (x_pad,) + tuple(pk[name] for name in _PACK_ORDER)
    # Single invocation, no grid: every operand (~1.2 MB total) is whole-array VMEM
    # resident; fits with huge headroom on v5e/v6e (128 MiB) and v7x (64 MiB).
    return pl.pallas_call(
        _umixer_kernel,
        out_shape=jax.ShapeDtypeStruct((bnp, PRED_LEN), jnp.float32),
    )(*args)


def umixer_forward(history, packed):
    """history: [B, L1, N, C] -> [B, pred_len, N, 1]   (eval mode: dropout = identity)."""
    x = history[:, :, :, 0]                                       # [B, S, N]
    B, S, N = x.shape
    bn = B * N
    bn_pad = packed['rev_w_bn'].shape[0]                          # rows padded to multiple of 8
    x_t = jnp.transpose(x, (0, 2, 1)).reshape(bn, S)              # per-variable, time last
    x_t = jnp.pad(x_t, ((0, bn_pad - bn), (0, 0)))                # sublane-tile aligned rows
    y = umixer_pallas(x_t, packed)[:bn]                           # [B*N, PRED]
    y = jnp.transpose(y.reshape(B, N, PRED_LEN), (0, 2, 1))       # [B, PRED, N]
    return y[:, -PRED_LEN:, :, None]


# ----------------------------- host-side parameter packing -----------------------------
def sinusoidal_pe(max_len, d_model):
    pe = np.zeros((max_len, d_model), dtype=np.float32)
    position = np.arange(max_len, dtype=np.float32)[:, None]
    div_term = np.exp(np.arange(0, d_model, 2, dtype=np.float32) * -(np.log(10000.0) / d_model))
    pe[:, 0::2] = np.sin(position * div_term)
    pe[:, 1::2] = np.cos(position * div_term)
    return pe


def pack_params(params, batch):
    """One-time host-side repacking of the natural (torch-like) parameters into the
    dense, lane-dense operands consumed by the fused kernel."""
    f32 = np.float32
    P, D, PO = PNUM, D_MODEL, POLD
    S, L = SEQ_LEN, L_FULL
    bn = batch * ENC_IN
    bn_pad = ((bn + 7) // 8) * 8

    def npy(a):
        return np.asarray(a, dtype=f32)

    # --- per-index mixer Linears -> dense matrices acting on the pd layout ---
    def tempol_mat(w):                    # w: [P, D, D]  (out, in); block-diagonal in pd
        w = npy(w)
        m = np.zeros((P * D, P * D), f32)
        for p in range(P):
            m[p * D:(p + 1) * D, p * D:(p + 1) * D] = w[p].T
        return m

    def channel_mat(w):                   # w: [D, P, P]  (out, in); permuted block-diagonal
        w = npy(w)
        m = np.zeros((P, D, P, D), f32)
        for d in range(D):
            m[:, d, :, d] = w[d].T
        return m.reshape(P * D, P * D)

    # mixer execution order: only the path that survives the x_all column-0 overwrite
    seq = [('t', params['temp_md'][E_LAYERS - 1]), ('c', params['chan_md'][E_LAYERS - 1])]
    for j in range(E_LAYERS - 1, -1, -1):
        seq += [('t', params['temp_mu'][j]), ('c', params['chan_mu'][j])]
    assert len(seq) == N_MIX

    mw1, mb1, mw2, mb2, mg, mbeta = [], [], [], [], [], []
    for kind, blk in seq:
        if kind == 't':
            mw1.append(tempol_mat(blk['w1'])); mb1.append(npy(blk['b1']).reshape(1, P * D))
            mw2.append(tempol_mat(blk['w2'])); mb2.append(npy(blk['b2']).reshape(1, P * D))
        else:
            mw1.append(channel_mat(blk['w1'])); mb1.append(npy(blk['b1']).T.reshape(1, P * D))
            mw2.append(channel_mat(blk['w2'])); mb2.append(npy(blk['b2']).T.reshape(1, P * D))
        mg.append(np.tile(npy(blk['g']), P).reshape(1, P * D))
        mbeta.append(np.tile(npy(blk['b']), P).reshape(1, P * D))

    # fold the surviving comb Linear (scale + bias, see header) into the last LN affine
    comb_w = np.float32(npy(params['w_comb'])[0, 0])
    comb_b = np.float32(npy(params['b_comb']).reshape(-1)[0])
    mg[-1] = (mg[-1] * comb_w).astype(f32)
    mbeta[-1] = (mbeta[-1] * comb_w + comb_b).astype(f32)

    # --- PatchEmbedding: ReplicationPad1d((0,stride)) + unfold + Linear(patch_len, D)
    #     folded into one [L_in, n_patch*D] matrix per branch ---
    w_ve = npy(params['w_ve'])            # [D, patch_len]

    def patch_matrix(l_in, n_patch):
        m = np.zeros((l_in, n_patch * D), f32)
        for p in range(n_patch):
            for t in range(PATCH_LEN):
                src = min(p * STRIDE + t, l_in - 1)        # replication pad at the end
                m[src, p * D:(p + 1) * D] += w_ve[:, t]
        return m

    pe = sinusoidal_pe(P, D)

    # --- block-diagonal group-mean matrices for the flat-layout LayerNorms ---
    gmean = np.kron(np.eye(P, dtype=f32), np.full((D, D), 1.0 / D, f32))
    gmean_old = np.kron(np.eye(PO, dtype=f32), np.full((D, D), 1.0 / D, f32))

    # --- S_Correction DFT matrices (rfft norm='ortho', irfft default length/norm).
    #     real|imag parts concatenated along N; the xr^2+xi^2 add is folded into the
    #     irfft weight by stacking it twice along K. ---
    kf = np.arange(NFREQ)[:, None]; tp = np.arange(PO)[None, :]
    ang = 2.0 * np.pi * kf * tp / PO
    cr = (np.cos(ang) / np.sqrt(PO)).astype(f32)           # [NFREQ, PO]
    ci = (np.sin(ang) / np.sqrt(PO)).astype(f32)
    ti = np.arange(NIFFT)[:, None]; kk = np.arange(NFREQ)[None, :]
    coef = np.where((kk == 0) | (kk == NIFFT // 2), 1.0, 2.0)
    mir = (coef * np.cos(2.0 * np.pi * kk * ti / NIFFT) / NIFFT).astype(f32)  # [NIFFT, NFREQ]
    eye_d = np.eye(D, dtype=f32)
    dft_ri = np.concatenate([np.kron(cr.T, eye_d), np.kron(ci.T, eye_d)], axis=1)   # [80, 96]
    idft = np.kron(mir.T, eye_d)                                                    # [48, 64]
    idft2 = np.concatenate([idft, idft], axis=0)                                    # [96, 64]
    # tile_p folded into sum_t: per-d time-sum replicated across all patch columns
    sum_t_tiled = np.kron(np.ones((NIFFT, P), f32), eye_d)                          # [64, 144]

    # --- Flatten_Head weight: columns permuted from the (d, p) flatten order to pd ---
    w_head = npy(params['w_head']).reshape(PRED_LEN, D, P)
    w_head_eff = np.transpose(w_head, (2, 1, 0)).reshape(P * D, PRED_LEN)

    # --- RevIN per-row affine, padded to the 8-aligned row count (pad: w=1, b=0) ---
    rev_w_bn = np.concatenate([np.tile(npy(params['rev_w']), batch),
                               np.ones(bn_pad - bn, f32)]).reshape(bn_pad, 1)
    rev_b_bn = np.concatenate([np.tile(npy(params['rev_b']), batch),
                               np.zeros(bn_pad - bn, f32)]).reshape(bn_pad, 1)
    rev_winv_bn = (1.0 / (rev_w_bn + REVIN_EPS * REVIN_EPS)).astype(f32)

    pk = dict(
        rev_w_bn=rev_w_bn,
        rev_b_bn=rev_b_bn,
        rev_winv_bn=rev_winv_bn,
        w_pl_t=npy(params['w_pl']).T,                              # [S, L]
        b_pl=npy(params['b_pl']).reshape(1, L),
        w_pe_new=patch_matrix(L, P),                               # [32, 144]
        pe_new=pe[:P].reshape(1, P * D),
        w_pe_old=patch_matrix(S, PO),                              # [16, 80]
        pe_old=pe[:PO].reshape(1, PO * D),
        mix_w1=np.stack(mw1), mix_b1=np.stack(mb1),
        mix_w2=np.stack(mw2), mix_b2=np.stack(mb2),
        mix_g=np.stack(mg), mix_beta=np.stack(mbeta),
        gmean=gmean, gmean_old=gmean_old,
        ln_g=np.tile(npy(params['ln_g']), PO).reshape(1, PO * D),
        ln_b=np.tile(npy(params['ln_b']), PO).reshape(1, PO * D),
        dft_ri=dft_ri,                                             # [80, 96]
        idft2=idft2,                                               # [96, 64]
        sum_t_tiled=sum_t_tiled,                                   # [64, 144]
        w_head=w_head_eff,                                         # [144, 16]
        b_head=npy(params['b_head']).reshape(1, PRED_LEN),
    )
    return {name: jnp.asarray(v, dtype=jnp.float32) for name, v in pk.items()}


# ----------------------------- deterministic parameter init -----------------------------
def init_params(key):
    keys = iter(jax.random.split(key, 64))

    def nrm(shape, scale=0.05):
        return scale * jax.random.normal(next(keys), shape, dtype=jnp.float32)

    def temp_block():
        return dict(w1=nrm((PNUM, D_MODEL, D_MODEL)), b1=nrm((PNUM, D_MODEL), 0.01),
                    w2=nrm((PNUM, D_MODEL, D_MODEL)), b2=nrm((PNUM, D_MODEL), 0.01),
                    g=jnp.ones((D_MODEL,), jnp.float32), b=jnp.zeros((D_MODEL,), jnp.float32))

    def chan_block():
        return dict(w1=nrm((D_MODEL, PNUM, PNUM)), b1=nrm((D_MODEL, PNUM), 0.01),
                    w2=nrm((D_MODEL, PNUM, PNUM)), b2=nrm((D_MODEL, PNUM), 0.01),
                    g=jnp.ones((D_MODEL,), jnp.float32), b=jnp.zeros((D_MODEL,), jnp.float32))

    return dict(
        rev_w=jnp.ones((ENC_IN,), jnp.float32),
        rev_b=jnp.zeros((ENC_IN,), jnp.float32),
        w_pl=nrm((L_FULL, SEQ_LEN)),
        b_pl=nrm((L_FULL,), 0.01),
        w_ve=nrm((D_MODEL, PATCH_LEN)),
        ln_g=jnp.ones((D_MODEL,), jnp.float32),
        ln_b=jnp.zeros((D_MODEL,), jnp.float32),
        w_comb=nrm((1, E_LAYERS)),
        b_comb=nrm((1,), 0.01),
        w_head=nrm((PRED_LEN, D_MODEL * PNUM)),
        b_head=nrm((PRED_LEN,), 0.01),
        temp_md=[temp_block() for _ in range(E_LAYERS)],
        chan_md=[chan_block() for _ in range(E_LAYERS)],
        temp_mu=[temp_block() for _ in range(E_LAYERS)],
        chan_mu=[chan_block() for _ in range(E_LAYERS)],
    )


if __name__ == "__main__":
    key = jax.random.PRNGKey(0)
    k_par, k_in = jax.random.split(key)
    params = init_params(k_par)

    B = 2
    packed = pack_params(params, B)                              # one-time host-side repack
    history = jax.random.normal(k_in, (B, SEQ_LEN, ENC_IN, 1), dtype=jnp.float32)

    fwd = jax.jit(umixer_forward)
    out = jax.block_until_ready(fwd(history, packed))
    assert out.shape == (B, PRED_LEN, ENC_IN, 1), out.shape
    assert bool(jnp.all(jnp.isfinite(out)))
    print("KERNEL_OK")
</pallas_src>

<mosaic_0001>
module attributes {stable_mosaic.version = 11 : i64} {
  func.func @_umixer_kernel(%arg0: memref<8x16xf32, #tpu.memory_space<vmem>>, %arg1: memref<8x1xf32, #tpu.memory_space<vmem>>, %arg2: memref<8x1xf32, #tpu.memory_space<vmem>>, %arg3: memref<8x1xf32, #tpu.memory_space<vmem>>, %arg4: memref<16x32xf32, #tpu.memory_space<vmem>>, %arg5: memref<1x32xf32, #tpu.memory_space<vmem>>, %arg6: memref<32x144xf32, #tpu.memory_space<vmem>>, %arg7: memref<1x144xf32, #tpu.memory_space<vmem>>, %arg8: memref<16x80xf32, #tpu.memory_space<vmem>>, %arg9: memref<1x80xf32, #tpu.memory_space<vmem>>, %arg10: memref<6x144x144xf32, #tpu.memory_space<vmem>>, %arg11: memref<6x1x144xf32, #tpu.memory_space<vmem>>, %arg12: memref<6x144x144xf32, #tpu.memory_space<vmem>>, %arg13: memref<6x1x144xf32, #tpu.memory_space<vmem>>, %arg14: memref<6x1x144xf32, #tpu.memory_space<vmem>>, %arg15: memref<6x1x144xf32, #tpu.memory_space<vmem>>, %arg16: memref<144x144xf32, #tpu.memory_space<vmem>>, %arg17: memref<80x80xf32, #tpu.memory_space<vmem>>, %arg18: memref<1x80xf32, #tpu.memory_space<vmem>>, %arg19: memref<1x80xf32, #tpu.memory_space<vmem>>, %arg20: memref<80x96xf32, #tpu.memory_space<vmem>>, %arg21: memref<96x64xf32, #tpu.memory_space<vmem>>, %arg22: memref<64x144xf32, #tpu.memory_space<vmem>>, %arg23: memref<144x16xf32, #tpu.memory_space<vmem>>, %arg24: memref<1x16xf32, #tpu.memory_space<vmem>>, %arg25: memref<8x16xf32, #tpu.memory_space<vmem>>) attributes {dimension_semantics = [], scalar_prefetch = 0 : i64, scratch_operands = 0 : i64, tpu.core_type = #tpu.core_type<tc>} {
    %c0 = arith.constant 0 : index
    %c0_0 = arith.constant 0 : index
    %0 = vector.load %arg0[%c0, %c0_0] : memref<8x16xf32, #tpu.memory_space<vmem>>, vector<8x16xf32>
    %cst = arith.constant dense<0.000000e+00> : vector<8xf32>
    %1 = vector.multi_reduction <add>, %0, %cst [1] : vector<8x16xf32> to vector<8xf32>
    %2 = vector.shape_cast %1 : vector<8xf32> to vector<8x1xf32>
    %cst_1 = arith.constant 1.600000e+01 : f32
    %3 = vector.broadcast %cst_1 : f32 to vector<8x1xf32>
    %4 = arith.divf %2, %3 : vector<8x1xf32>
    %5 = vector.broadcast %4 : vector<8x1xf32> to vector<8x16xf32>
    %6 = arith.subf %0, %5 : vector<8x16xf32>
    %7 = vector.broadcast %4 : vector<8x1xf32> to vector<8x16xf32>
    %8 = arith.subf %0, %7 : vector<8x16xf32>
    %9 = arith.mulf %6, %8 : vector<8x16xf32>
    %cst_2 = arith.constant dense<0.000000e+00> : vector<8xf32>
    %10 = vector.multi_reduction <add>, %9, %cst_2 [1] : vector<8x16xf32> to vector<8xf32>
    %11 = vector.shape_cast %10 : vector<8xf32> to vector<8x1xf32>
    %cst_3 = arith.constant 1.600000e+01 : f32
    %12 = vector.broadcast %cst_3 : f32 to vector<8x1xf32>
    %13 = arith.divf %11, %12 : vector<8x1xf32>
    %cst_4 = arith.constant 9.99999974E-6 : f32
    %14 = vector.broadcast %cst_4 : f32 to vector<8x1xf32>
    %15 = arith.addf %13, %14 : vector<8x1xf32>
    %16 = math.sqrt %15 : vector<8x1xf32>
    %cst_5 = arith.constant 9.99999974E-6 : f32
    %17 = vector.broadcast %cst_5 : f32 to vector<8x1xf32>
    %18 = arith.addf %13, %17 : vector<8x1xf32>
    %19 = math.rsqrt %18 : vector<8x1xf32>
    %20 = vector.broadcast %4 : vector<8x1xf32> to vector<8x16xf32>
    %21 = arith.subf %0, %20 : vector<8x16xf32>
    %22 = vector.broadcast %19 : vector<8x1xf32> to vector<8x16xf32>
    %23 = arith.mulf %21, %22 : vector<8x16xf32>
    %c0_6 = arith.constant 0 : index
    %c0_7 = arith.constant 0 : index
    %24 = vector.load %arg1[%c0_6, %c0_7] : memref<8x1xf32, #tpu.memory_space<vmem>>, vector<8x1xf32>
    %25 = vector.broadcast %24 : vector<8x1xf32> to vector<8x16xf32>
    %26 = arith.mulf %23, %25 : vector<8x16xf32>
    %c0_8 = arith.constant 0 : index
    %c0_9 = arith.constant 0 : index
    %27 = vector.load %arg2[%c0_8, %c0_9] : memref<8x1xf32, #tpu.memory_space<vmem>>, vector<8x1xf32>
    %28 = vector.broadcast %27 : vector<8x1xf32> to vector<8x16xf32>
    %29 = arith.addf %26, %28 : vector<8x16xf32>
    %c0_10 = arith.constant 0 : index
    %c0_11 = arith.constant 0 : index
    %30 = vector.load %arg4[%c0_10, %c0_11] : memref<16x32xf32, #tpu.memory_space<vmem>>, vector<16x32xf32>
    %cst_12 = arith.constant dense<0.000000e+00> : vector<8x32xf32>
    %31 = tpu.matmul %29, %30, %cst_12 {dimension_numbers = #tpu.dot_dimension_numbers<[1], [0], [0], [1], [0, 0, 1, 1], [], []>} : vector<8x16xf32>, vector<16x32xf32>, vector<8x32xf32> -> vector<8x32xf32>
    %c0_13 = arith.constant 0 : index
    %c0_14 = arith.constant 0 : index
    %32 = vector.load %arg5[%c0_13, %c0_14] : memref<1x32xf32, #tpu.memory_space<vmem>>, vector<1x32xf32>
    %33 = vector.broadcast %32 : vector<1x32xf32> to vector<8x32xf32>
    %34 = arith.addf %31, %33 : vector<8x32xf32>
    %c0_15 = arith.constant 0 : index
    %c0_16 = arith.constant 0 : index
    %35 = vector.load %arg6[%c0_15, %c0_16] : memref<32x144xf32, #tpu.memory_space<vmem>>, vector<32x144xf32>
    %cst_17 = arith.constant dense<0.000000e+00> : vector<8x144xf32>
    %36 = tpu.matmul %34, %35, %cst_17 {dimension_numbers = #tpu.dot_dimension_numbers<[1], [0], [0], [1], [0, 0, 1, 1], [], []>} : vector<8x32xf32>, vector<32x144xf32>, vector<8x144xf32> -> vector<8x144xf32>
    %c0_18 = arith.constant 0 : index
    %c0_19 = arith.constant 0 : index
    %37 = vector.load %arg7[%c0_18, %c0_19] : memref<1x144xf32, #tpu.memory_space<vmem>>, vector<1x144xf32>
    %38 = vector.broadcast %37 : vector<1x144xf32> to vector<8x144xf32>
    %39 = arith.addf %36, %38 : vector<8x144xf32>
    %c0_20 = arith.constant 0 : index
    %c0_21 = arith.constant 0 : index
    %40 = vector.load %arg8[%c0_20, %c0_21] : memref<16x80xf32, #tpu.memory_space<vmem>>, vector<16x80xf32>
    %cst_22 = arith.constant dense<0.000000e+00> : vector<8x80xf32>
    %41 = tpu.matmul %0, %40, %cst_22 {dimension_numbers = #tpu.dot_dimension_numbers<[1], [0], [0], [1], [0, 0, 1, 1], [], []>} : vector<8x16xf32>, vector<16x80xf32>, vector<8x80xf32> -> vector<8x80xf32>
    %c0_23 = arith.constant 0 : index
    %c0_24 = arith.constant 0 : index
    %42 = vector.load %arg9[%c0_23, %c0_24] : memref<1x80xf32, #tpu.memory_space<vmem>>, vector<1x80xf32>
    %43 = vector.broadcast %42 : vector<1x80xf32> to vector<8x80xf32>
    %44 = arith.addf %41, %43 : vector<8x80xf32>
    %c0_25 = arith.constant 0 : index
    %c0_26 = arith.constant 0 : index
    %45 = vector.load %arg16[%c0_25, %c0_26] : memref<144x144xf32, #tpu.memory_space<vmem>>, vector<144x144xf32>
    %c0_27 = arith.constant 0 : index
    %c0_28 = arith.constant 0 : index
    %c0_29 = arith.constant 0 : index
    %46 = vector.load %arg10[%c0_27, %c0_28, %c0_29] : memref<6x144x144xf32, #tpu.memory_space<vmem>>, vector<1x144x144xf32>
    %47 = vector.shape_cast %46 : vector<1x144x144xf32> to vector<144x144xf32>
    %cst_30 = arith.constant dense<0.000000e+00> : vector<8x144xf32>
    %48 = tpu.matmul %39, %47, %cst_30 {dimension_numbers = #tpu.dot_dimension_numbers<[1], [0], [0], [1], [0, 0, 1, 1], [], []>} : vector<8x144xf32>, vector<144x144xf32>, vector<8x144xf32> -> vector<8x144xf32>
    %c0_31 = arith.constant 0 : index
    %c0_32 = arith.constant 0 : index
    %c0_33 = arith.constant 0 : index
    %49 = vector.load %arg11[%c0_31, %c0_32, %c0_33] : memref<6x1x144xf32, #tpu.memory_space<vmem>>, vector<1x1x144xf32>
    %50 = vector.shape_cast %49 : vector<1x1x144xf32> to vector<1x144xf32>
    %51 = vector.broadcast %50 : vector<1x144xf32> to vector<8x144xf32>
    %52 = arith.addf %48, %51 : vector<8x144xf32>
    %cst_34 = arith.constant 5.000000e-01 : f32
    %53 = vector.broadcast %cst_34 : f32 to vector<8x144xf32>
    %54 = arith.mulf %53, %52 : vector<8x144xf32>
    %cst_35 = arith.constant 0.707106769 : f32
    %55 = vector.broadcast %cst_35 : f32 to vector<8x144xf32>
    %56 = arith.mulf %52, %55 : vector<8x144xf32>
    %57 = math.absf %56 : vector<8x144xf32>
    %cst_36 = arith.constant 0.327591091 : f32
    %58 = vector.broadcast %cst_36 : f32 to vector<8x144xf32>
    %59 = arith.mulf %58, %57 : vector<8x144xf32>
    %cst_37 = arith.constant 1.000000e+00 : f32
    %60 = vector.broadcast %cst_37 : f32 to vector<8x144xf32>
    %61 = arith.addf %60, %59 : vector<8x144xf32>
    %cst_38 = arith.constant 1.000000e+00 : f32
    %62 = vector.broadcast %cst_38 : f32 to vector<8x144xf32>
    %63 = arith.divf %62, %61 : vector<8x144xf32>
    %cst_39 = arith.constant 1.06140542 : f32
    %64 = vector.broadcast %cst_39 : f32 to vector<8x144xf32>
    %65 = arith.mulf %64, %63 : vector<8x144xf32>
    %cst_40 = arith.constant -1.45315206 : f32
    %66 = vector.broadcast %cst_40 : f32 to vector<8x144xf32>
    %67 = arith.addf %65, %66 : vector<8x144xf32>
    %68 = arith.mulf %67, %63 : vector<8x144xf32>
    %cst_41 = arith.constant 1.42141378 : f32
    %69 = vector.broadcast %cst_41 : f32 to vector<8x144xf32>
    %70 = arith.addf %68, %69 : vector<8x144xf32>
    %71 = arith.mulf %70, %63 : vector<8x144xf32>
    %cst_42 = arith.constant -0.284496725 : f32
    %72 = vector.broadcast %cst_42 : f32 to vector<8x144xf32>
    %73 = arith.addf %71, %72 : vector<8x144xf32>
    %74 = arith.mulf %73, %63 : vector<8x144xf32>
    %cst_43 = arith.constant 0.254829586 : f32
    %75 = vector.broadcast %cst_43 : f32 to vector<8x144xf32>
    %76 = arith.addf %74, %75 : vector<8x144xf32>
    %77 = arith.mulf %76, %63 : vector<8x144xf32>
    %cst_44 = arith.constant 0.000000e+00 : f32
    %78 = vector.broadcast %cst_44 : f32 to vector<8x144xf32>
    %79 = arith.subf %78, %57 : vector<8x144xf32>
    %80 = arith.mulf %79, %57 : vector<8x144xf32>
    %81 = math.exp %80 : vector<8x144xf32>
    %82 = arith.mulf %77, %81 : vector<8x144xf32>
    %cst_45 = arith.constant 1.000000e+00 : f32
    %83 = vector.broadcast %cst_45 : f32 to vector<8x144xf32>
    %84 = arith.subf %83, %82 : vector<8x144xf32>
    %cst_46 = arith.constant 0.000000e+00 : f32
    %85 = vector.broadcast %cst_46 : f32 to vector<8x144xf32>
    %86 = arith.cmpf oge, %56, %85 : vector<8x144xf32>
    %cst_47 = arith.constant 0.000000e+00 : f32
    %87 = vector.broadcast %cst_47 : f32 to vector<8x144xf32>
    %88 = arith.subf %87, %84 : vector<8x144xf32>
    %89 = arith.select %86, %84, %88 : vector<8x144xi1>, vector<8x144xf32>
    %cst_48 = arith.constant 1.000000e+00 : f32
    %90 = vector.broadcast %cst_48 : f32 to vector<8x144xf32>
    %91 = arith.addf %90, %89 : vector<8x144xf32>
    %92 = arith.mulf %54, %91 : vector<8x144xf32>
    %c0_49 = arith.constant 0 : index
    %c0_50 = arith.constant 0 : index
    %c0_51 = arith.constant 0 : index
    %93 = vector.load %arg12[%c0_49, %c0_50, %c0_51] : memref<6x144x144xf32, #tpu.memory_space<vmem>>, vector<1x144x144xf32>
    %94 = vector.shape_cast %93 : vector<1x144x144xf32> to vector<144x144xf32>
    %cst_52 = arith.constant dense<0.000000e+00> : vector<8x144xf32>
    %95 = tpu.matmul %92, %94, %cst_52 {dimension_numbers = #tpu.dot_dimension_numbers<[1], [0], [0], [1], [0, 0, 1, 1], [], []>} : vector<8x144xf32>, vector<144x144xf32>, vector<8x144xf32> -> vector<8x144xf32>
    %c0_53 = arith.constant 0 : index
    %c0_54 = arith.constant 0 : index
    %c0_55 = arith.constant 0 : index
    %96 = vector.load %arg13[%c0_53, %c0_54, %c0_55] : memref<6x1x144xf32, #tpu.memory_space<vmem>>, vector<1x1x144xf32>
    %97 = vector.shape_cast %96 : vector<1x1x144xf32> to vector<1x144xf32>
    %98 = vector.broadcast %97 : vector<1x144xf32> to vector<8x144xf32>
    %99 = arith.addf %95, %98 : vector<8x144xf32>
    %100 = arith.addf %99, %39 : vector<8x144xf32>
    %c0_56 = arith.constant 0 : index
    %c0_57 = arith.constant 0 : index
    %c0_58 = arith.constant 0 : index
    %101 = vector.load %arg14[%c0_56, %c0_57, %c0_58] : memref<6x1x144xf32, #tpu.memory_space<vmem>>, vector<1x1x144xf32>
    %102 = vector.shape_cast %101 : vector<1x1x144xf32> to vector<1x144xf32>
    %c0_59 = arith.constant 0 : index
    %c0_60 = arith.constant 0 : index
    %c0_61 = arith.constant 0 : index
    %103 = vector.load %arg15[%c0_59, %c0_60, %c0_61] : memref<6x1x144xf32, #tpu.memory_space<vmem>>, vector<1x1x144xf32>
    %104 = vector.shape_cast %103 : vector<1x1x144xf32> to vector<1x144xf32>
    %105 = arith.mulf %100, %100 : vector<8x144xf32>
    %106 = tpu.concatenate %100, %105 in 0 : vector<8x144xf32>, vector<8x144xf32> -> vector<16x144xf32>
    %cst_62 = arith.constant dense<0.000000e+00> : vector<16x144xf32>
    %107 = tpu.matmul %106, %45, %cst_62 {dimension_numbers = #tpu.dot_dimension_numbers<[1], [0], [0], [1], [0, 0, 1, 1], [], []>} : vector<16x144xf32>, vector<144x144xf32>, vector<16x144xf32> -> vector<16x144xf32>
    %108 = vector.extract_strided_slice %107 {offsets = [0, 0], sizes = [8, 144], strides = [1, 1]} : vector<16x144xf32> to vector<8x144xf32>
    %109 = vector.extract_strided_slice %107 {offsets = [8, 0], sizes = [8, 144], strides = [1, 1]} : vector<16x144xf32> to vector<8x144xf32>
    %110 = arith.mulf %108, %108 : vector<8x144xf32>
    %111 = arith.subf %109, %110 : vector<8x144xf32>
    %112 = arith.subf %100, %108 : vector<8x144xf32>
    %cst_63 = arith.constant 9.99999974E-6 : f32
    %113 = vector.broadcast %cst_63 : f32 to vector<8x144xf32>
    %114 = arith.addf %111, %113 : vector<8x144xf32>
    %115 = math.rsqrt %114 : vector<8x144xf32>
    %116 = arith.mulf %112, %115 : vector<8x144xf32>
    %117 = vector.broadcast %102 : vector<1x144xf32> to vector<8x144xf32>
    %118 = arith.mulf %116, %117 : vector<8x144xf32>
    %119 = vector.broadcast %104 : vector<1x144xf32> to vector<8x144xf32>
    %120 = arith.addf %118, %119 : vector<8x144xf32>
    %c1 = arith.constant 1 : index
    %c0_64 = arith.constant 0 : index
    %c0_65 = arith.constant 0 : index
    %121 = vector.load %arg10[%c1, %c0_64, %c0_65] : memref<6x144x144xf32, #tpu.memory_space<vmem>>, vector<1x144x144xf32>
    %122 = vector.shape_cast %121 : vector<1x144x144xf32> to vector<144x144xf32>
    %cst_66 = arith.constant dense<0.000000e+00> : vector<8x144xf32>
    %123 = tpu.matmul %120, %122, %cst_66 {dimension_numbers = #tpu.dot_dimension_numbers<[1], [0], [0], [1], [0, 0, 1, 1], [], []>} : vector<8x144xf32>, vector<144x144xf32>, vector<8x144xf32> -> vector<8x144xf32>
    %c1_67 = arith.constant 1 : index
    %c0_68 = arith.constant 0 : index
    %c0_69 = arith.constant 0 : index
    %124 = vector.load %arg11[%c1_67, %c0_68, %c0_69] : memref<6x1x144xf32, #tpu.memory_space<vmem>>, vector<1x1x144xf32>
    %125 = vector.shape_cast %124 : vector<1x1x144xf32> to vector<1x144xf32>
    %126 = vector.broadcast %125 : vector<1x144xf32> to vector<8x144xf32>
    %127 = arith.addf %123, %126 : vector<8x144xf32>
    %cst_70 = arith.constant 5.000000e-01 : f32
    %128 = vector.broadcast %cst_70 : f32 to vector<8x144xf32>
    %129 = arith.mulf %128, %127 : vector<8x144xf32>
    %cst_71 = arith.constant 0.707106769 : f32
    %130 = vector.broadcast %cst_71 : f32 to vector<8x144xf32>
    %131 = arith.mulf %127, %130 : vector<8x144xf32>
    %132 = math.absf %131 : vector<8x144xf32>
    %cst_72 = arith.constant 0.327591091 : f32
    %133 = vector.broadcast %cst_72 : f32 to vector<8x144xf32>
    %134 = arith.mulf %133, %132 : vector<8x144xf32>
    %cst_73 = arith.constant 1.000000e+00 : f32
    %135 = vector.broadcast %cst_73 : f32 to vector<8x144xf32>
    %136 = arith.addf %135, %134 : vector<8x144xf32>
    %cst_74 = arith.constant 1.000000e+00 : f32
    %137 = vector.broadcast %cst_74 : f32 to vector<8x144xf32>
    %138 = arith.divf %137, %136 : vector<8x144xf32>
    %cst_75 = arith.constant 1.06140542 : f32
    %139 = vector.broadcast %cst_75 : f32 to vector<8x144xf32>
    %140 = arith.mulf %139, %138 : vector<8x144xf32>
    %cst_76 = arith.constant -1.45315206 : f32
    %141 = vector.broadcast %cst_76 : f32 to vector<8x144xf32>
    %142 = arith.addf %140, %141 : vector<8x144xf32>
    %143 = arith.mulf %142, %138 : vector<8x144xf32>
    %cst_77 = arith.constant 1.42141378 : f32
    %144 = vector.broadcast %cst_77 : f32 to vector<8x144xf32>
    %145 = arith.addf %143, %144 : vector<8x144xf32>
    %146 = arith.mulf %145, %138 : vector<8x144xf32>
    %cst_78 = arith.constant -0.284496725 : f32
    %147 = vector.broadcast %cst_78 : f32 to vector<8x144xf32>
    %148 = arith.addf %146, %147 : vector<8x144xf32>
    %149 = arith.mulf %148, %138 : vector<8x144xf32>
    %cst_79 = arith.constant 0.254829586 : f32
    %150 = vector.broadcast %cst_79 : f32 to vector<8x144xf32>
    %151 = arith.addf %149, %150 : vector<8x144xf32>
    %152 = arith.mulf %151, %138 : vector<8x144xf32>
    %cst_80 = arith.constant 0.000000e+00 : f32
    %153 = vector.broadcast %cst_80 : f32 to vector<8x144xf32>
    %154 = arith.subf %153, %132 : vector<8x144xf32>
    %155 = arith.mulf %154, %132 : vector<8x144xf32>
    %156 = math.exp %155 : vector<8x144xf32>
    %157 = arith.mulf %152, %156 : vector<8x144xf32>
    %cst_81 = arith.constant 1.000000e+00 : f32
    %158 = vector.broadcast %cst_81 : f32 to vector<8x144xf32>
    %159 = arith.subf %158, %157 : vector<8x144xf32>
    %cst_82 = arith.constant 0.000000e+00 : f32
    %160 = vector.broadcast %cst_82 : f32 to vector<8x144xf32>
    %161 = arith.cmpf oge, %131, %160 : vector<8x144xf32>
    %cst_83 = arith.constant 0.000000e+00 : f32
    %162 = vector.broadcast %cst_83 : f32 to vector<8x144xf32>
    %163 = arith.subf %162, %159 : vector<8x144xf32>
    %164 = arith.select %161, %159, %163 : vector<8x144xi1>, vector<8x144xf32>
    %cst_84 = arith.constant 1.000000e+00 : f32
    %165 = vector.broadcast %cst_84 : f32 to vector<8x144xf32>
    %166 = arith.addf %165, %164 : vector<8x144xf32>
    %167 = arith.mulf %129, %166 : vector<8x144xf32>
    %c1_85 = arith.constant 1 : index
    %c0_86 = arith.constant 0 : index
    %c0_87 = arith.constant 0 : index
    %168 = vector.load %arg12[%c1_85, %c0_86, %c0_87] : memref<6x144x144xf32, #tpu.memory_space<vmem>>, vector<1x144x144xf32>
    %169 = vector.shape_cast %168 : vector<1x144x144xf32> to vector<144x144xf32>
    %cst_88 = arith.constant dense<0.000000e+00> : vector<8x144xf32>
    %170 = tpu.matmul %167, %169, %cst_88 {dimension_numbers = #tpu.dot_dimension_numbers<[1], [0], [0], [1], [0, 0, 1, 1], [], []>} : vector<8x144xf32>, vector<144x144xf32>, vector<8x144xf32> -> vector<8x144xf32>
    %c1_89 = arith.constant 1 : index
    %c0_90 = arith.constant 0 : index
    %c0_91 = arith.constant 0 : index
    %171 = vector.load %arg13[%c1_89, %c0_90, %c0_91] : memref<6x1x144xf32, #tpu.memory_space<vmem>>, vector<1x1x144xf32>
    %172 = vector.shape_cast %171 : vector<1x1x144xf32> to vector<1x144xf32>
    %173 = vector.broadcast %172 : vector<1x144xf32> to vector<8x144xf32>
    %174 = arith.addf %170, %173 : vector<8x144xf32>
    %175 = arith.addf %174, %120 : vector<8x144xf32>
    %c1_92 = arith.constant 1 : index
    %c0_93 = arith.constant 0 : index
    %c0_94 = arith.constant 0 : index
    %176 = vector.load %arg14[%c1_92, %c0_93, %c0_94] : memref<6x1x144xf32, #tpu.memory_space<vmem>>, vector<1x1x144xf32>
    %177 = vector.shape_cast %176 : vector<1x1x144xf32> to vector<1x144xf32>
    %c1_95 = arith.constant 1 : index
    %c0_96 = arith.constant 0 : index
    %c0_97 = arith.constant 0 : index
    %178 = vector.load %arg15[%c1_95, %c0_96, %c0_97] : memref<6x1x144xf32, #tpu.memory_space<vmem>>, vector<1x1x144xf32>
    %179 = vector.shape_cast %178 : vector<1x1x144xf32> to vector<1x144xf32>
    %180 = arith.mulf %175, %175 : vector<8x144xf32>
    %181 = tpu.concatenate %175, %180 in 0 : vector<8x144xf32>, vector<8x144xf32> -> vector<16x144xf32>
    %cst_98 = arith.constant dense<0.000000e+00> : vector<16x144xf32>
    %182 = tpu.matmul %181, %45, %cst_98 {dimension_numbers = #tpu.dot_dimension_numbers<[1], [0], [0], [1], [0, 0, 1, 1], [], []>} : vector<16x144xf32>, vector<144x144xf32>, vector<16x144xf32> -> vector<16x144xf32>
    %183 = vector.extract_strided_slice %182 {offsets = [0, 0], sizes = [8, 144], strides = [1, 1]} : vector<16x144xf32> to vector<8x144xf32>
    %184 = vector.extract_strided_slice %182 {offsets = [8, 0], sizes = [8, 144], strides = [1, 1]} : vector<16x144xf32> to vector<8x144xf32>
    %185 = arith.mulf %183, %183 : vector<8x144xf32>
    %186 = arith.subf %184, %185 : vector<8x144xf32>
    %187 = arith.subf %175, %183 : vector<8x144xf32>
    %cst_99 = arith.constant 9.99999974E-6 : f32
    %188 = vector.broadcast %cst_99 : f32 to vector<8x144xf32>
    %189 = arith.addf %186, %188 : vector<8x144xf32>
    %190 = math.rsqrt %189 : vector<8x144xf32>
    %191 = arith.mulf %187, %190 : vector<8x144xf32>
    %192 = vector.broadcast %177 : vector<1x144xf32> to vector<8x144xf32>
    %193 = arith.mulf %191, %192 : vector<8x144xf32>
    %194 = vector.broadcast %179 : vector<1x144xf32> to vector<8x144xf32>
    %195 = arith.addf %193, %194 : vector<8x144xf32>
    %c2 = arith.constant 2 : index
    %c0_100 = arith.constant 0 : index
    %c0_101 = arith.constant 0 : index
    %196 = vector.load %arg10[%c2, %c0_100, %c0_101] : memref<6x144x144xf32, #tpu.memory_space<vmem>>, vector<1x144x144xf32>
    %197 = vector.shape_cast %196 : vector<1x144x144xf32> to vector<144x144xf32>
    %cst_102 = arith.constant dense<0.000000e+00> : vector<8x144xf32>
    %198 = tpu.matmul %195, %197, %cst_102 {dimension_numbers = #tpu.dot_dimension_numbers<[1], [0], [0], [1], [0, 0, 1, 1], [], []>} : vector<8x144xf32>, vector<144x144xf32>, vector<8x144xf32> -> vector<8x144xf32>
    %c2_103 = arith.constant 2 : index
    %c0_104 = arith.constant 0 : index
    %c0_105 = arith.constant 0 : index
    %199 = vector.load %arg11[%c2_103, %c0_104, %c0_105] : memref<6x1x144xf32, #tpu.memory_space<vmem>>, vector<1x1x144xf32>
    %200 = vector.shape_cast %199 : vector<1x1x144xf32> to vector<1x144xf32>
    %201 = vector.broadcast %200 : vector<1x144xf32> to vector<8x144xf32>
    %202 = arith.addf %198, %201 : vector<8x144xf32>
    %cst_106 = arith.constant 5.000000e-01 : f32
    %203 = vector.broadcast %cst_106 : f32 to vector<8x144xf32>
    %204 = arith.mulf %203, %202 : vector<8x144xf32>
    %cst_107 = arith.constant 0.707106769 : f32
    %205 = vector.broadcast %cst_107 : f32 to vector<8x144xf32>
    %206 = arith.mulf %202, %205 : vector<8x144xf32>
    %207 = math.absf %206 : vector<8x144xf32>
    %cst_108 = arith.constant 0.327591091 : f32
    %208 = vector.broadcast %cst_108 : f32 to vector<8x144xf32>
    %209 = arith.mulf %208, %207 : vector<8x144xf32>
    %cst_109 = arith.constant 1.000000e+00 : f32
    %210 = vector.broadcast %cst_109 : f32 to vector<8x144xf32>
    %211 = arith.addf %210, %209 : vector<8x144xf32>
    %cst_110 = arith.constant 1.000000e+00 : f32
    %212 = vector.broadcast %cst_110 : f32 to vector<8x144xf32>
    %213 = arith.divf %212, %211 : vector<8x144xf32>
    %cst_111 = arith.constant 1.06140542 : f32
    %214 = vector.broadcast %cst_111 : f32 to vector<8x144xf32>
    %215 = arith.mulf %214, %213 : vector<8x144xf32>
    %cst_112 = arith.constant -1.45315206 : f32
    %216 = vector.broadcast %cst_112 : f32 to vector<8x144xf32>
    %217 = arith.addf %215, %216 : vector<8x144xf32>
    %218 = arith.mulf %217, %213 : vector<8x144xf32>
    %cst_113 = arith.constant 1.42141378 : f32
    %219 = vector.broadcast %cst_113 : f32 to vector<8x144xf32>
    %220 = arith.addf %218, %219 : vector<8x144xf32>
    %221 = arith.mulf %220, %213 : vector<8x144xf32>
    %cst_114 = arith.constant -0.284496725 : f32
    %222 = vector.broadcast %cst_114 : f32 to vector<8x144xf32>
    %223 = arith.addf %221, %222 : vector<8x144xf32>
    %224 = arith.mulf %223, %213 : vector<8x144xf32>
    %cst_115 = arith.constant 0.254829586 : f32
    %225 = vector.broadcast %cst_115 : f32 to vector<8x144xf32>
    %226 = arith.addf %224, %225 : vector<8x144xf32>
    %227 = arith.mulf %226, %213 : vector<8x144xf32>
    %cst_116 = arith.constant 0.000000e+00 : f32
    %228 = vector.broadcast %cst_116 : f32 to vector<8x144xf32>
    %229 = arith.subf %228, %207 : vector<8x144xf32>
    %230 = arith.mulf %229, %207 : vector<8x144xf32>
    %231 = math.exp %230 : vector<8x144xf32>
    %232 = arith.mulf %227, %231 : vector<8x144xf32>
    %cst_117 = arith.constant 1.000000e+00 : f32
    %233 = vector.broadcast %cst_117 : f32 to vector<8x144xf32>
    %234 = arith.subf %233, %232 : vector<8x144xf32>
    %cst_118 = arith.constant 0.000000e+00 : f32
    %235 = vector.broadcast %cst_118 : f32 to vector<8x144xf32>
    %236 = arith.cmpf oge, %206, %235 : vector<8x144xf32>
    %cst_119 = arith.constant 0.000000e+00 : f32
    %237 = vector.broadcast %cst_119 : f32 to vector<8x144xf32>
    %238 = arith.subf %237, %234 : vector<8x144xf32>
    %239 = arith.select %236, %234, %238 : vector<8x144xi1>, vector<8x144xf32>
    %cst_120 = arith.constant 1.000000e+00 : f32
    %240 = vector.broadcast %cst_120 : f32 to vector<8x144xf32>
    %241 = arith.addf %240, %239 : vector<8x144xf32>
    %242 = arith.mulf %204, %241 : vector<8x144xf32>
    %c2_121 = arith.constant 2 : index
    %c0_122 = arith.constant 0 : index
    %c0_123 = arith.constant 0 : index
    %243 = vector.load %arg12[%c2_121, %c0_122, %c0_123] : memref<6x144x144xf32, #tpu.memory_space<vmem>>, vector<1x144x144xf32>
    %244 = vector.shape_cast %243 : vector<1x144x144xf32> to vector<144x144xf32>
    %cst_124 = arith.constant dense<0.000000e+00> : vector<8x144xf32>
    %245 = tpu.matmul %242, %244, %cst_124 {dimension_numbers = #tpu.dot_dimension_numbers<[1], [0], [0], [1], [0, 0, 1, 1], [], []>} : vector<8x144xf32>, vector<144x144xf32>, vector<8x144xf32> -> vector<8x144xf32>
    %c2_125 = arith.constant 2 : index
    %c0_126 = arith.constant 0 : index
    %c0_127 = arith.constant 0 : index
    %246 = vector.load %arg13[%c2_125, %c0_126, %c0_127] : memref<6x1x144xf32, #tpu.memory_space<vmem>>, vector<1x1x144xf32>
    %247 = vector.shape_cast %246 : vector<1x1x144xf32> to vector<1x144xf32>
    %248 = vector.broadcast %247 : vector<1x144xf32> to vector<8x144xf32>
    %249 = arith.addf %245, %248 : vector<8x144xf32>
    %250 = arith.addf %249, %195 : vector<8x144xf32>
    %c2_128 = arith.constant 2 : index
    %c0_129 = arith.constant 0 : index
    %c0_130 = arith.constant 0 : index
    %251 = vector.load %arg14[%c2_128, %c0_129, %c0_130] : memref<6x1x144xf32, #tpu.memory_space<vmem>>, vector<1x1x144xf32>
    %252 = vector.shape_cast %251 : vector<1x1x144xf32> to vector<1x144xf32>
    %c2_131 = arith.constant 2 : index
    %c0_132 = arith.constant 0 : index
    %c0_133 = arith.constant 0 : index
    %253 = vector.load %arg15[%c2_131, %c0_132, %c0_133] : memref<6x1x144xf32, #tpu.memory_space<vmem>>, vector<1x1x144xf32>
    %254 = vector.shape_cast %253 : vector<1x1x144xf32> to vector<1x144xf32>
    %255 = arith.mulf %250, %250 : vector<8x144xf32>
    %256 = tpu.concatenate %250, %255 in 0 : vector<8x144xf32>, vector<8x144xf32> -> vector<16x144xf32>
    %cst_134 = arith.constant dense<0.000000e+00> : vector<16x144xf32>
    %257 = tpu.matmul %256, %45, %cst_134 {dimension_numbers = #tpu.dot_dimension_numbers<[1], [0], [0], [1], [0, 0, 1, 1], [], []>} : vector<16x144xf32>, vector<144x144xf32>, vector<16x144xf32> -> vector<16x144xf32>
    %258 = vector.extract_strided_slice %257 {offsets = [0, 0], sizes = [8, 144], strides = [1, 1]} : vector<16x144xf32> to vector<8x144xf32>
    %259 = vector.extract_strided_slice %257 {offsets = [8, 0], sizes = [8, 144], strides = [1, 1]} : vector<16x144xf32> to vector<8x144xf32>
    %260 = arith.mulf %258, %258 : vector<8x144xf32>
    %261 = arith.subf %259, %260 : vector<8x144xf32>
    %262 = arith.subf %250, %258 : vector<8x144xf32>
    %cst_135 = arith.constant 9.99999974E-6 : f32
    %263 = vector.broadcast %cst_135 : f32 to vector<8x144xf32>
    %264 = arith.addf %261, %263 : vector<8x144xf32>
    %265 = math.rsqrt %264 : vector<8x144xf32>
    %266 = arith.mulf %262, %265 : vector<8x144xf32>
    %267 = vector.broadcast %252 : vector<1x144xf32> to vector<8x144xf32>
    %268 = arith.mulf %266, %267 : vector<8x144xf32>
    %269 = vector.broadcast %254 : vector<1x144xf32> to vector<8x144xf32>
    %270 = arith.addf %268, %269 : vector<8x144xf32>
    %c3 = arith.constant 3 : index
    %c0_136 = arith.constant 0 : index
    %c0_137 = arith.constant 0 : index
    %271 = vector.load %arg10[%c3, %c0_136, %c0_137] : memref<6x144x144xf32, #tpu.memory_space<vmem>>, vector<1x144x144xf32>
    %272 = vector.shape_cast %271 : vector<1x144x144xf32> to vector<144x144xf32>
    %cst_138 = arith.constant dense<0.000000e+00> : vector<8x144xf32>
    %273 = tpu.matmul %270, %272, %cst_138 {dimension_numbers = #tpu.dot_dimension_numbers<[1], [0], [0], [1], [0, 0, 1, 1], [], []>} : vector<8x144xf32>, vector<144x144xf32>, vector<8x144xf32> -> vector<8x144xf32>
    %c3_139 = arith.constant 3 : index
    %c0_140 = arith.constant 0 : index
    %c0_141 = arith.constant 0 : index
    %274 = vector.load %arg11[%c3_139, %c0_140, %c0_141] : memref<6x1x144xf32, #tpu.memory_space<vmem>>, vector<1x1x144xf32>
    %275 = vector.shape_cast %274 : vector<1x1x144xf32> to vector<1x144xf32>
    %276 = vector.broadcast %275 : vector<1x144xf32> to vector<8x144xf32>
    %277 = arith.addf %273, %276 : vector<8x144xf32>
    %cst_142 = arith.constant 5.000000e-01 : f32
    %278 = vector.broadcast %cst_142 : f32 to vector<8x144xf32>
    %279 = arith.mulf %278, %277 : vector<8x144xf32>
    %cst_143 = arith.constant 0.707106769 : f32
    %280 = vector.broadcast %cst_143 : f32 to vector<8x144xf32>
    %281 = arith.mulf %277, %280 : vector<8x144xf32>
    %282 = math.absf %281 : vector<8x144xf32>
    %cst_144 = arith.constant 0.327591091 : f32
    %283 = vector.broadcast %cst_144 : f32 to vector<8x144xf32>
    %284 = arith.mulf %283, %282 : vector<8x144xf32>
    %cst_145 = arith.constant 1.000000e+00 : f32
    %285 = vector.broadcast %cst_145 : f32 to vector<8x144xf32>
    %286 = arith.addf %285, %284 : vector<8x144xf32>
    %cst_146 = arith.constant 1.000000e+00 : f32
    %287 = vector.broadcast %cst_146 : f32 to vector<8x144xf32>
    %288 = arith.divf %287, %286 : vector<8x144xf32>
    %cst_147 = arith.constant 1.06140542 : f32
    %289 = vector.broadcast %cst_147 : f32 to vector<8x144xf32>
    %290 = arith.mulf %289, %288 : vector<8x144xf32>
    %cst_148 = arith.constant -1.45315206 : f32
    %291 = vector.broadcast %cst_148 : f32 to vector<8x144xf32>
    %292 = arith.addf %290, %291 : vector<8x144xf32>
    %293 = arith.mulf %292, %288 : vector<8x144xf32>
    %cst_149 = arith.constant 1.42141378 : f32
    %294 = vector.broadcast %cst_149 : f32 to vector<8x144xf32>
    %295 = arith.addf %293, %294 : vector<8x144xf32>
    %296 = arith.mulf %295, %288 : vector<8x144xf32>
    %cst_150 = arith.constant -0.284496725 : f32
    %297 = vector.broadcast %cst_150 : f32 to vector<8x144xf32>
    %298 = arith.addf %296, %297 : vector<8x144xf32>
    %299 = arith.mulf %298, %288 : vector<8x144xf32>
    %cst_151 = arith.constant 0.254829586 : f32
    %300 = vector.broadcast %cst_151 : f32 to vector<8x144xf32>
    %301 = arith.addf %299, %300 : vector<8x144xf32>
    %302 = arith.mulf %301, %288 : vector<8x144xf32>
    %cst_152 = arith.constant 0.000000e+00 : f32
    %303 = vector.broadcast %cst_152 : f32 to vector<8x144xf32>
    %304 = arith.subf %303, %282 : vector<8x144xf32>
    %305 = arith.mulf %304, %282 : vector<8x144xf32>
    %306 = math.exp %305 : vector<8x144xf32>
    %307 = arith.mulf %302, %306 : vector<8x144xf32>
    %cst_153 = arith.constant 1.000000e+00 : f32
    %308 = vector.broadcast %cst_153 : f32 to vector<8x144xf32>
    %309 = arith.subf %308, %307 : vector<8x144xf32>
    %cst_154 = arith.constant 0.000000e+00 : f32
    %310 = vector.broadcast %cst_154 : f32 to vector<8x144xf32>
    %311 = arith.cmpf oge, %281, %310 : vector<8x144xf32>
    %cst_155 = arith.constant 0.000000e+00 : f32
    %312 = vector.broadcast %cst_155 : f32 to vector<8x144xf32>
    %313 = arith.subf %312, %309 : vector<8x144xf32>
    %314 = arith.select %311, %309, %313 : vector<8x144xi1>, vector<8x144xf32>
    %cst_156 = arith.constant 1.000000e+00 : f32
    %315 = vector.broadcast %cst_156 : f32 to vector<8x144xf32>
    %316 = arith.addf %315, %314 : vector<8x144xf32>
    %317 = arith.mulf %279, %316 : vector<8x144xf32>
    %c3_157 = arith.constant 3 : index
    %c0_158 = arith.constant 0 : index
    %c0_159 = arith.constant 0 : index
    %318 = vector.load %arg12[%c3_157, %c0_158, %c0_159] : memref<6x144x144xf32, #tpu.memory_space<vmem>>, vector<1x144x144xf32>
    %319 = vector.shape_cast %318 : vector<1x144x144xf32> to vector<144x144xf32>
    %cst_160 = arith.constant dense<0.000000e+00> : vector<8x144xf32>
    %320 = tpu.matmul %317, %319, %cst_160 {dimension_numbers = #tpu.dot_dimension_numbers<[1], [0], [0], [1], [0, 0, 1, 1], [], []>} : vector<8x144xf32>, vector<144x144xf32>, vector<8x144xf32> -> vector<8x144xf32>
    %c3_161 = arith.constant 3 : index
    %c0_162 = arith.constant 0 : index
    %c0_163 = arith.constant 0 : index
    %321 = vector.load %arg13[%c3_161, %c0_162, %c0_163] : memref<6x1x144xf32, #tpu.memory_space<vmem>>, vector<1x1x144xf32>
    %322 = vector.shape_cast %321 : vector<1x1x144xf32> to vector<1x144xf32>
    %323 = vector.broadcast %322 : vector<1x144xf32> to vector<8x144xf32>
    %324 = arith.addf %320, %323 : vector<8x144xf32>
    %325 = arith.addf %324, %270 : vector<8x144xf32>
    %c3_164 = arith.constant 3 : index
    %c0_165 = arith.constant 0 : index
    %c0_166 = arith.constant 0 : index
    %326 = vector.load %arg14[%c3_164, %c0_165, %c0_166] : memref<6x1x144xf32, #tpu.memory_space<vmem>>, vector<1x1x144xf32>
    %327 = vector.shape_cast %326 : vector<1x1x144xf32> to vector<1x144xf32>
    %c3_167 = arith.constant 3 : index
    %c0_168 = arith.constant 0 : index
    %c0_169 = arith.constant 0 : index
    %328 = vector.load %arg15[%c3_167, %c0_168, %c0_169] : memref<6x1x144xf32, #tpu.memory_space<vmem>>, vector<1x1x144xf32>
    %329 = vector.shape_cast %328 : vector<1x1x144xf32> to vector<1x144xf32>
    %330 = arith.mulf %325, %325 : vector<8x144xf32>
    %331 = tpu.concatenate %325, %330 in 0 : vector<8x144xf32>, vector<8x144xf32> -> vector<16x144xf32>
    %cst_170 = arith.constant dense<0.000000e+00> : vector<16x144xf32>
    %332 = tpu.matmul %331, %45, %cst_170 {dimension_numbers = #tpu.dot_dimension_numbers<[1], [0], [0], [1], [0, 0, 1, 1], [], []>} : vector<16x144xf32>, vector<144x144xf32>, vector<16x144xf32> -> vector<16x144xf32>
    %333 = vector.extract_strided_slice %332 {offsets = [0, 0], sizes = [8, 144], strides = [1, 1]} : vector<16x144xf32> to vector<8x144xf32>
    %334 = vector.extract_strided_slice %332 {offsets = [8, 0], sizes = [8, 144], strides = [1, 1]} : vector<16x144xf32> to vector<8x144xf32>
    %335 = arith.mulf %333, %333 : vector<8x144xf32>
    %336 = arith.subf %334, %335 : vector<8x144xf32>
    %337 = arith.subf %325, %333 : vector<8x144xf32>
    %cst_171 = arith.constant 9.99999974E-6 : f32
    %338 = vector.broadcast %cst_171 : f32 to vector<8x144xf32>
    %339 = arith.addf %336, %338 : vector<8x144xf32>
    %340 = math.rsqrt %339 : vector<8x144xf32>
    %341 = arith.mulf %337, %340 : vector<8x144xf32>
    %342 = vector.broadcast %327 : vector<1x144xf32> to vector<8x144xf32>
    %343 = arith.mulf %341, %342 : vector<8x144xf32>
    %344 = vector.broadcast %329 : vector<1x144xf32> to vector<8x144xf32>
    %345 = arith.addf %343, %344 : vector<8x144xf32>
    %c4 = arith.constant 4 : index
    %c0_172 = arith.constant 0 : index
    %c0_173 = arith.constant 0 : index
    %346 = vector.load %arg10[%c4, %c0_172, %c0_173] : memref<6x144x144xf32, #tpu.memory_space<vmem>>, vector<1x144x144xf32>
    %347 = vector.shape_cast %346 : vector<1x144x144xf32> to vector<144x144xf32>
    %cst_174 = arith.constant dense<0.000000e+00> : vector<8x144xf32>
    %348 = tpu.matmul %345, %347, %cst_174 {dimension_numbers = #tpu.dot_dimension_numbers<[1], [0], [0], [1], [0, 0, 1, 1], [], []>} : vector<8x144xf32>, vector<144x144xf32>, vector<8x144xf32> -> vector<8x144xf32>
    %c4_175 = arith.constant 4 : index
    %c0_176 = arith.constant 0 : index
    %c0_177 = arith.constant 0 : index
    %349 = vector.load %arg11[%c4_175, %c0_176, %c0_177] : memref<6x1x144xf32, #tpu.memory_space<vmem>>, vector<1x1x144xf32>
    %350 = vector.shape_cast %349 : vector<1x1x144xf32> to vector<1x144xf32>
    %351 = vector.broadcast %350 : vector<1x144xf32> to vector<8x144xf32>
    %352 = arith.addf %348, %351 : vector<8x144xf32>
    %cst_178 = arith.constant 5.000000e-01 : f32
    %353 = vector.broadcast %cst_178 : f32 to vector<8x144xf32>
    %354 = arith.mulf %353, %352 : vector<8x144xf32>
    %cst_179 = arith.constant 0.707106769 : f32
    %355 = vector.broadcast %cst_179 : f32 to vector<8x144xf32>
    %356 = arith.mulf %352, %355 : vector<8x144xf32>
    %357 = math.absf %356 : vector<8x144xf32>
    %cst_180 = arith.constant 0.327591091 : f32
    %358 = vector.broadcast %cst_180 : f32 to vector<8x144xf32>
    %359 = arith.mulf %358, %357 : vector<8x144xf32>
    %cst_181 = arith.constant 1.000000e+00 : f32
    %360 = vector.broadcast %cst_181 : f32 to vector<8x144xf32>
    %361 = arith.addf %360, %359 : vector<8x144xf32>
    %cst_182 = arith.constant 1.000000e+00 : f32
    %362 = vector.broadcast %cst_182 : f32 to vector<8x144xf32>
    %363 = arith.divf %362, %361 : vector<8x144xf32>
    %cst_183 = arith.constant 1.06140542 : f32
    %364 = vector.broadcast %cst_183 : f32 to vector<8x144xf32>
    %365 = arith.mulf %364, %363 : vector<8x144xf32>
    %cst_184 = arith.constant -1.45315206 : f32
    %366 = vector.broadcast %cst_184 : f32 to vector<8x144xf32>
    %367 = arith.addf %365, %366 : vector<8x144xf32>
    %368 = arith.mulf %367, %363 : vector<8x144xf32>
    %cst_185 = arith.constant 1.42141378 : f32
    %369 = vector.broadcast %cst_185 : f32 to vector<8x144xf32>
    %370 = arith.addf %368, %369 : vector<8x144xf32>
    %371 = arith.mulf %370, %363 : vector<8x144xf32>
    %cst_186 = arith.constant -0.284496725 : f32
    %372 = vector.broadcast %cst_186 : f32 to vector<8x144xf32>
    %373 = arith.addf %371, %372 : vector<8x144xf32>
    %374 = arith.mulf %373, %363 : vector<8x144xf32>
    %cst_187 = arith.constant 0.254829586 : f32
    %375 = vector.broadcast %cst_187 : f32 to vector<8x144xf32>
    %376 = arith.addf %374, %375 : vector<8x144xf32>
    %377 = arith.mulf %376, %363 : vector<8x144xf32>
    %cst_188 = arith.constant 0.000000e+00 : f32
    %378 = vector.broadcast %cst_188 : f32 to vector<8x144xf32>
    %379 = arith.subf %378, %357 : vector<8x144xf32>
    %380 = arith.mulf %379, %357 : vector<8x144xf32>
    %381 = math.exp %380 : vector<8x144xf32>
    %382 = arith.mulf %377, %381 : vector<8x144xf32>
    %cst_189 = arith.constant 1.000000e+00 : f32
    %383 = vector.broadcast %cst_189 : f32 to vector<8x144xf32>
    %384 = arith.subf %383, %382 : vector<8x144xf32>
    %cst_190 = arith.constant 0.000000e+00 : f32
    %385 = vector.broadcast %cst_190 : f32 to vector<8x144xf32>
    %386 = arith.cmpf oge, %356, %385 : vector<8x144xf32>
    %cst_191 = arith.constant 0.000000e+00 : f32
    %387 = vector.broadcast %cst_191 : f32 to vector<8x144xf32>
    %388 = arith.subf %387, %384 : vector<8x144xf32>
    %389 = arith.select %386, %384, %388 : vector<8x144xi1>, vector<8x144xf32>
    %cst_192 = arith.constant 1.000000e+00 : f32
    %390 = vector.broadcast %cst_192 : f32 to vector<8x144xf32>
    %391 = arith.addf %390, %389 : vector<8x144xf32>
    %392 = arith.mulf %354, %391 : vector<8x144xf32>
    %c4_193 = arith.constant 4 : index
    %c0_194 = arith.constant 0 : index
    %c0_195 = arith.constant 0 : index
    %393 = vector.load %arg12[%c4_193, %c0_194, %c0_195] : memref<6x144x144xf32, #tpu.memory_space<vmem>>, vector<1x144x144xf32>
    %394 = vector.shape_cast %393 : vector<1x144x144xf32> to vector<144x144xf32>
    %cst_196 = arith.constant dense<0.000000e+00> : vector<8x144xf32>
    %395 = tpu.matmul %392, %394, %cst_196 {dimension_numbers = #tpu.dot_dimension_numbers<[1], [0], [0], [1], [0, 0, 1, 1], [], []>} : vector<8x144xf32>, vector<144x144xf32>, vector<8x144xf32> -> vector<8x144xf32>
    %c4_197 = arith.constant 4 : index
    %c0_198 = arith.constant 0 : index
    %c0_199 = arith.constant 0 : index
    %396 = vector.load %arg13[%c4_197, %c0_198, %c0_199] : memref<6x1x144xf32, #tpu.memory_space<vmem>>, vector<1x1x144xf32>
    %397 = vector.shape_cast %396 : vector<1x1x144xf32> to vector<1x144xf32>
    %398 = vector.broadcast %397 : vector<1x144xf32> to vector<8x144xf32>
    %399 = arith.addf %395, %398 : vector<8x144xf32>
    %400 = arith.addf %399, %345 : vector<8x144xf32>
    %c4_200 = arith.constant 4 : index
    %c0_201 = arith.constant 0 : index
    %c0_202 = arith.constant 0 : index
    %401 = vector.load %arg14[%c4_200, %c0_201, %c0_202] : memref<6x1x144xf32, #tpu.memory_space<vmem>>, vector<1x1x144xf32>
    %402 = vector.shape_cast %401 : vector<1x1x144xf32> to vector<1x144xf32>
    %c4_203 = arith.constant 4 : index
    %c0_204 = arith.constant 0 : index
    %c0_205 = arith.constant 0 : index
    %403 = vector.load %arg15[%c4_203, %c0_204, %c0_205] : memref<6x1x144xf32, #tpu.memory_space<vmem>>, vector<1x1x144xf32>
    %404 = vector.shape_cast %403 : vector<1x1x144xf32> to vector<1x144xf32>
    %405 = arith.mulf %400, %400 : vector<8x144xf32>
    %406 = tpu.concatenate %400, %405 in 0 : vector<8x144xf32>, vector<8x144xf32> -> vector<16x144xf32>
    %cst_206 = arith.constant dense<0.000000e+00> : vector<16x144xf32>
    %407 = tpu.matmul %406, %45, %cst_206 {dimension_numbers = #tpu.dot_dimension_numbers<[1], [0], [0], [1], [0, 0, 1, 1], [], []>} : vector<16x144xf32>, vector<144x144xf32>, vector<16x144xf32> -> vector<16x144xf32>
    %408 = vector.extract_strided_slice %407 {offsets = [0, 0], sizes = [8, 144], strides = [1, 1]} : vector<16x144xf32> to vector<8x144xf32>
    %409 = vector.extract_strided_slice %407 {offsets = [8, 0], sizes = [8, 144], strides = [1, 1]} : vector<16x144xf32> to vector<8x144xf32>
    %410 = arith.mulf %408, %408 : vector<8x144xf32>
    %411 = arith.subf %409, %410 : vector<8x144xf32>
    %412 = arith.subf %400, %408 : vector<8x144xf32>
    %cst_207 = arith.constant 9.99999974E-6 : f32
    %413 = vector.broadcast %cst_207 : f32 to vector<8x144xf32>
    %414 = arith.addf %411, %413 : vector<8x144xf32>
    %415 = math.rsqrt %414 : vector<8x144xf32>
    %416 = arith.mulf %412, %415 : vector<8x144xf32>
    %417 = vector.broadcast %402 : vector<1x144xf32> to vector<8x144xf32>
    %418 = arith.mulf %416, %417 : vector<8x144xf32>
    %419 = vector.broadcast %404 : vector<1x144xf32> to vector<8x144xf32>
    %420 = arith.addf %418, %419 : vector<8x144xf32>
    %c5 = arith.constant 5 : index
    %c0_208 = arith.constant 0 : index
    %c0_209 = arith.constant 0 : index
    %421 = vector.load %arg10[%c5, %c0_208, %c0_209] : memref<6x144x144xf32, #tpu.memory_space<vmem>>, vector<1x144x144xf32>
    %422 = vector.shape_cast %421 : vector<1x144x144xf32> to vector<144x144xf32>
    %cst_210 = arith.constant dense<0.000000e+00> : vector<8x144xf32>
    %423 = tpu.matmul %420, %422, %cst_210 {dimension_numbers = #tpu.dot_dimension_numbers<[1], [0], [0], [1], [0, 0, 1, 1], [], []>} : vector<8x144xf32>, vector<144x144xf32>, vector<8x144xf32> -> vector<8x144xf32>
    %c5_211 = arith.constant 5 : index
    %c0_212 = arith.constant 0 : index
    %c0_213 = arith.constant 0 : index
    %424 = vector.load %arg11[%c5_211, %c0_212, %c0_213] : memref<6x1x144xf32, #tpu.memory_space<vmem>>, vector<1x1x144xf32>
    %425 = vector.shape_cast %424 : vector<1x1x144xf32> to vector<1x144xf32>
    %426 = vector.broadcast %425 : vector<1x144xf32> to vector<8x144xf32>
    %427 = arith.addf %423, %426 : vector<8x144xf32>
    %cst_214 = arith.constant 5.000000e-01 : f32
    %428 = vector.broadcast %cst_214 : f32 to vector<8x144xf32>
    %429 = arith.mulf %428, %427 : vector<8x144xf32>
    %cst_215 = arith.constant 0.707106769 : f32
    %430 = vector.broadcast %cst_215 : f32 to vector<8x144xf32>
    %431 = arith.mulf %427, %430 : vector<8x144xf32>
    %432 = math.absf %431 : vector<8x144xf32>
    %cst_216 = arith.constant 0.327591091 : f32
    %433 = vector.broadcast %cst_216 : f32 to vector<8x144xf32>
    %434 = arith.mulf %433, %432 : vector<8x144xf32>
    %cst_217 = arith.constant 1.000000e+00 : f32
    %435 = vector.broadcast %cst_217 : f32 to vector<8x144xf32>
    %436 = arith.addf %435, %434 : vector<8x144xf32>
    %cst_218 = arith.constant 1.000000e+00 : f32
    %437 = vector.broadcast %cst_218 : f32 to vector<8x144xf32>
    %438 = arith.divf %437, %436 : vector<8x144xf32>
    %cst_219 = arith.constant 1.06140542 : f32
    %439 = vector.broadcast %cst_219 : f32 to vector<8x144xf32>
    %440 = arith.mulf %439, %438 : vector<8x144xf32>
    %cst_220 = arith.constant -1.45315206 : f32
    %441 = vector.broadcast %cst_220 : f32 to vector<8x144xf32>
    %442 = arith.addf %440, %441 : vector<8x144xf32>
    %443 = arith.mulf %442, %438 : vector<8x144xf32>
    %cst_221 = arith.constant 1.42141378 : f32
    %444 = vector.broadcast %cst_221 : f32 to vector<8x144xf32>
    %445 = arith.addf %443, %444 : vector<8x144xf32>
    %446 = arith.mulf %445, %438 : vector<8x144xf32>
    %cst_222 = arith.constant -0.284496725 : f32
    %447 = vector.broadcast %cst_222 : f32 to vector<8x144xf32>
    %448 = arith.addf %446, %447 : vector<8x144xf32>
    %449 = arith.mulf %448, %438 : vector<8x144xf32>
    %cst_223 = arith.constant 0.254829586 : f32
    %450 = vector.broadcast %cst_223 : f32 to vector<8x144xf32>
    %451 = arith.addf %449, %450 : vector<8x144xf32>
    %452 = arith.mulf %451, %438 : vector<8x144xf32>
    %cst_224 = arith.constant 0.000000e+00 : f32
    %453 = vector.broadcast %cst_224 : f32 to vector<8x144xf32>
    %454 = arith.subf %453, %432 : vector<8x144xf32>
    %455 = arith.mulf %454, %432 : vector<8x144xf32>
    %456 = math.exp %455 : vector<8x144xf32>
    %457 = arith.mulf %452, %456 : vector<8x144xf32>
    %cst_225 = arith.constant 1.000000e+00 : f32
    %458 = vector.broadcast %cst_225 : f32 to vector<8x144xf32>
    %459 = arith.subf %458, %457 : vector<8x144xf32>
    %cst_226 = arith.constant 0.000000e+00 : f32
    %460 = vector.broadcast %cst_226 : f32 to vector<8x144xf32>
    %461 = arith.cmpf oge, %431, %460 : vector<8x144xf32>
    %cst_227 = arith.constant 0.000000e+00 : f32
    %462 = vector.broadcast %cst_227 : f32 to vector<8x144xf32>
    %463 = arith.subf %462, %459 : vector<8x144xf32>
    %464 = arith.select %461, %459, %463 : vector<8x144xi1>, vector<8x144xf32>
    %cst_228 = arith.constant 1.000000e+00 : f32
    %465 = vector.broadcast %cst_228 : f32 to vector<8x144xf32>
    %466 = arith.addf %465, %464 : vector<8x144xf32>
    %467 = arith.mulf %429, %466 : vector<8x144xf32>
    %c5_229 = arith.constant 5 : index
    %c0_230 = arith.constant 0 : index
    %c0_231 = arith.constant 0 : index
    %468 = vector.load %arg12[%c5_229, %c0_230, %c0_231] : memref<6x144x144xf32, #tpu.memory_space<vmem>>, vector<1x144x144xf32>
    %469 = vector.shape_cast %468 : vector<1x144x144xf32> to vector<144x144xf32>
    %cst_232 = arith.constant dense<0.000000e+00> : vector<8x144xf32>
    %470 = tpu.matmul %467, %469, %cst_232 {dimension_numbers = #tpu.dot_dimension_numbers<[1], [0], [0], [1], [0, 0, 1, 1], [], []>} : vector<8x144xf32>, vector<144x144xf32>, vector<8x144xf32> -> vector<8x144xf32>
    %c5_233 = arith.constant 5 : index
    %c0_234 = arith.constant 0 : index
    %c0_235 = arith.constant 0 : index
    %471 = vector.load %arg13[%c5_233, %c0_234, %c0_235] : memref<6x1x144xf32, #tpu.memory_space<vmem>>, vector<1x1x144xf32>
    %472 = vector.shape_cast %471 : vector<1x1x144xf32> to vector<1x144xf32>
    %473 = vector.broadcast %472 : vector<1x144xf32> to vector<8x144xf32>
    %474 = arith.addf %470, %473 : vector<8x144xf32>
    %475 = arith.addf %474, %420 : vector<8x144xf32>
    %c5_236 = arith.constant 5 : index
    %c0_237 = arith.constant 0 : index
    %c0_238 = arith.constant 0 : index
    %476 = vector.load %arg14[%c5_236, %c0_237, %c0_238] : memref<6x1x144xf32, #tpu.memory_space<vmem>>, vector<1x1x144xf32>
    %477 = vector.shape_cast %476 : vector<1x1x144xf32> to vector<1x144xf32>
    %c5_239 = arith.constant 5 : index
    %c0_240 = arith.constant 0 : index
    %c0_241 = arith.constant 0 : index
    %478 = vector.load %arg15[%c5_239, %c0_240, %c0_241] : memref<6x1x144xf32, #tpu.memory_space<vmem>>, vector<1x1x144xf32>
    %479 = vector.shape_cast %478 : vector<1x1x144xf32> to vector<1x144xf32>
    %480 = arith.mulf %475, %475 : vector<8x144xf32>
    %481 = tpu.concatenate %475, %480 in 0 : vector<8x144xf32>, vector<8x144xf32> -> vector<16x144xf32>
    %cst_242 = arith.constant dense<0.000000e+00> : vector<16x144xf32>
    %482 = tpu.matmul %481, %45, %cst_242 {dimension_numbers = #tpu.dot_dimension_numbers<[1], [0], [0], [1], [0, 0, 1, 1], [], []>} : vector<16x144xf32>, vector<144x144xf32>, vector<16x144xf32> -> vector<16x144xf32>
    %483 = vector.extract_strided_slice %482 {offsets = [0, 0], sizes = [8, 144], strides = [1, 1]} : vector<16x144xf32> to vector<8x144xf32>
    %484 = vector.extract_strided_slice %482 {offsets = [8, 0], sizes = [8, 144], strides = [1, 1]} : vector<16x144xf32> to vector<8x144xf32>
    %485 = arith.mulf %483, %483 : vector<8x144xf32>
    %486 = arith.subf %484, %485 : vector<8x144xf32>
    %487 = arith.subf %475, %483 : vector<8x144xf32>
    %cst_243 = arith.constant 9.99999974E-6 : f32
    %488 = vector.broadcast %cst_243 : f32 to vector<8x144xf32>
    %489 = arith.addf %486, %488 : vector<8x144xf32>
    %490 = math.rsqrt %489 : vector<8x144xf32>
    %491 = arith.mulf %487, %490 : vector<8x144xf32>
    %492 = vector.broadcast %477 : vector<1x144xf32> to vector<8x144xf32>
    %493 = arith.mulf %491, %492 : vector<8x144xf32>
    %494 = vector.broadcast %479 : vector<1x144xf32> to vector<8x144xf32>
    %495 = arith.addf %493, %494 : vector<8x144xf32>
    %496 = vector.extract_strided_slice %495 {offsets = [0, 0], sizes = [8, 80], strides = [1, 1]} : vector<8x144xf32> to vector<8x80xf32>
    %497 = tpu.concatenate %44, %496 in 0 : vector<8x80xf32>, vector<8x80xf32> -> vector<16x80xf32>
    %c0_244 = arith.constant 0 : index
    %c0_245 = arith.constant 0 : index
    %498 = vector.load %arg17[%c0_244, %c0_245] : memref<80x80xf32, #tpu.memory_space<vmem>>, vector<80x80xf32>
    %c0_246 = arith.constant 0 : index
    %c0_247 = arith.constant 0 : index
    %499 = vector.load %arg18[%c0_246, %c0_247] : memref<1x80xf32, #tpu.memory_space<vmem>>, vector<1x80xf32>
    %c0_248 = arith.constant 0 : index
    %c0_249 = arith.constant 0 : index
    %500 = vector.load %arg19[%c0_248, %c0_249] : memref<1x80xf32, #tpu.memory_space<vmem>>, vector<1x80xf32>
    %501 = arith.mulf %497, %497 : vector<16x80xf32>
    %502 = tpu.concatenate %497, %501 in 0 : vector<16x80xf32>, vector<16x80xf32> -> vector<32x80xf32>
    %cst_250 = arith.constant dense<0.000000e+00> : vector<32x80xf32>
    %503 = tpu.matmul %502, %498, %cst_250 {dimension_numbers = #tpu.dot_dimension_numbers<[1], [0], [0], [1], [0, 0, 1, 1], [], []>} : vector<32x80xf32>, vector<80x80xf32>, vector<32x80xf32> -> vector<32x80xf32>
    %504 = vector.extract_strided_slice %503 {offsets = [0, 0], sizes = [16, 80], strides = [1, 1]} : vector<32x80xf32> to vector<16x80xf32>
    %505 = vector.extract_strided_slice %503 {offsets = [16, 0], sizes = [16, 80], strides = [1, 1]} : vector<32x80xf32> to vector<16x80xf32>
    %506 = arith.mulf %504, %504 : vector<16x80xf32>
    %507 = arith.subf %505, %506 : vector<16x80xf32>
    %508 = arith.subf %497, %504 : vector<16x80xf32>
    %cst_251 = arith.constant 9.99999974E-6 : f32
    %509 = vector.broadcast %cst_251 : f32 to vector<16x80xf32>
    %510 = arith.addf %507, %509 : vector<16x80xf32>
    %511 = math.rsqrt %510 : vector<16x80xf32>
    %512 = arith.mulf %508, %511 : vector<16x80xf32>
    %513 = vector.broadcast %499 : vector<1x80xf32> to vector<16x80xf32>
    %514 = arith.mulf %512, %513 : vector<16x80xf32>
    %515 = vector.broadcast %500 : vector<1x80xf32> to vector<16x80xf32>
    %516 = arith.addf %514, %515 : vector<16x80xf32>
    %c0_252 = arith.constant 0 : index
    %c0_253 = arith.constant 0 : index
    %517 = vector.load %arg20[%c0_252, %c0_253] : memref<80x96xf32, #tpu.memory_space<vmem>>, vector<80x96xf32>
    %cst_254 = arith.constant dense<0.000000e+00> : vector<16x96xf32>
    %518 = tpu.matmul %516, %517, %cst_254 {dimension_numbers = #tpu.dot_dimension_numbers<[1], [0], [0], [1], [0, 0, 1, 1], [], []>} : vector<16x80xf32>, vector<80x96xf32>, vector<16x96xf32> -> vector<16x96xf32>
    %519 = arith.mulf %518, %518 : vector<16x96xf32>
    %c0_255 = arith.constant 0 : index
    %c0_256 = arith.constant 0 : index
    %520 = vector.load %arg21[%c0_255, %c0_256] : memref<96x64xf32, #tpu.memory_space<vmem>>, vector<96x64xf32>
    %cst_257 = arith.constant dense<0.000000e+00> : vector<16x64xf32>
    %521 = tpu.matmul %519, %520, %cst_257 {dimension_numbers = #tpu.dot_dimension_numbers<[1], [0], [0], [1], [0, 0, 1, 1], [], []>} : vector<16x96xf32>, vector<96x64xf32>, vector<16x64xf32> -> vector<16x64xf32>
    %cst_258 = arith.constant 0.000000e+00 : f32
    %522 = vector.broadcast %cst_258 : f32 to vector<16x64xf32>
    %523 = arith.maximumf %521, %522 : vector<16x64xf32>
    %524 = vector.extract_strided_slice %523 {offsets = [0, 0], sizes = [8, 64], strides = [1, 1]} : vector<16x64xf32> to vector<8x64xf32>
    %525 = vector.extract_strided_slice %523 {offsets = [8, 0], sizes = [8, 64], strides = [1, 1]} : vector<16x64xf32> to vector<8x64xf32>
    %526 = arith.mulf %524, %525 : vector<8x64xf32>
    %527 = arith.mulf %525, %525 : vector<8x64xf32>
    %528 = tpu.concatenate %526, %527 in 0 : vector<8x64xf32>, vector<8x64xf32> -> vector<16x64xf32>
    %c0_259 = arith.constant 0 : index
    %c0_260 = arith.constant 0 : index
    %529 = vector.load %arg22[%c0_259, %c0_260] : memref<64x144xf32, #tpu.memory_space<vmem>>, vector<64x144xf32>
    %cst_261 = arith.constant dense<0.000000e+00> : vector<16x144xf32>
    %530 = tpu.matmul %528, %529, %cst_261 {dimension_numbers = #tpu.dot_dimension_numbers<[1], [0], [0], [1], [0, 0, 1, 1], [], []>} : vector<16x64xf32>, vector<64x144xf32>, vector<16x144xf32> -> vector<16x144xf32>
    %531 = vector.extract_strided_slice %530 {offsets = [0, 0], sizes = [8, 144], strides = [1, 1]} : vector<16x144xf32> to vector<8x144xf32>
    %532 = vector.extract_strided_slice %530 {offsets = [8, 0], sizes = [8, 144], strides = [1, 1]} : vector<16x144xf32> to vector<8x144xf32>
    %cst_262 = arith.constant 1.000000e-03 : f32
    %533 = vector.broadcast %cst_262 : f32 to vector<8x144xf32>
    %534 = arith.addf %532, %533 : vector<8x144xf32>
    %535 = math.sqrt %531 : vector<8x144xf32>
    %536 = math.rsqrt %534 : vector<8x144xf32>
    %537 = arith.mulf %535, %536 : vector<8x144xf32>
    %538 = arith.mulf %537, %495 : vector<8x144xf32>
    %c0_263 = arith.constant 0 : index
    %c0_264 = arith.constant 0 : index
    %539 = vector.load %arg23[%c0_263, %c0_264] : memref<144x16xf32, #tpu.memory_space<vmem>>, vector<144x16xf32>
    %cst_265 = arith.constant dense<0.000000e+00> : vector<8x16xf32>
    %540 = tpu.matmul %538, %539, %cst_265 {dimension_numbers = #tpu.dot_dimension_numbers<[1], [0], [0], [1], [0, 0, 1, 1], [], []>} : vector<8x144xf32>, vector<144x16xf32>, vector<8x16xf32> -> vector<8x16xf32>
    %c0_266 = arith.constant 0 : index
    %c0_267 = arith.constant 0 : index
    %541 = vector.load %arg24[%c0_266, %c0_267] : memref<1x16xf32, #tpu.memory_space<vmem>>, vector<1x16xf32>
    %542 = vector.broadcast %541 : vector<1x16xf32> to vector<8x16xf32>
    %543 = arith.addf %540, %542 : vector<8x16xf32>
    %c0_268 = arith.constant 0 : index
    %c0_269 = arith.constant 0 : index
    %544 = vector.load %arg2[%c0_268, %c0_269] : memref<8x1xf32, #tpu.memory_space<vmem>>, vector<8x1xf32>
    %545 = vector.broadcast %544 : vector<8x1xf32> to vector<8x16xf32>
    %546 = arith.subf %543, %545 : vector<8x16xf32>
    %c0_270 = arith.constant 0 : index
    %c0_271 = arith.constant 0 : index
    %547 = vector.load %arg3[%c0_270, %c0_271] : memref<8x1xf32, #tpu.memory_space<vmem>>, vector<8x1xf32>
    %548 = vector.broadcast %547 : vector<8x1xf32> to vector<8x16xf32>
    %549 = arith.mulf %546, %548 : vector<8x16xf32>
    %550 = vector.broadcast %16 : vector<8x1xf32> to vector<8x16xf32>
    %551 = arith.mulf %549, %550 : vector<8x16xf32>
    %552 = vector.broadcast %4 : vector<8x1xf32> to vector<8x16xf32>
    %553 = arith.addf %551, %552 : vector<8x16xf32>
    %c0_272 = arith.constant 0 : index
    %c0_273 = arith.constant 0 : index
    %554 = vector.load %arg25[%c0_272, %c0_273] : memref<8x16xf32, #tpu.memory_space<vmem>>, vector<8x16xf32>
    tpu.vector_store %arg25[%c0_272, %c0_273], %553 {strides = array<i32>} : memref<8x16xf32, #tpu.memory_space<vmem>>, vector<8x16xf32>,
    return
  }
}

</mosaic_0001>

<bundles_post_ra>
// kernel: umixer_forward.1
= control target key start
LH: loop header
LB: loop body
LE: loop exit
PB: predicated region body
PF: predicated region fallthrough
CT: control target
= control target key end

     0   :  { %s6228_s0 = inlined_call_operand.vmem [shape: f32[8,16], index: 0, kind: input, shape index: {}]   ;;  %s6229_s1 = inlined_call_operand.vmem [shape: f32[8,1], index: 1, kind: input, shape index: {}]   ;;  %s6230_s2 = inlined_call_operand.vmem [shape: f32[8,1], index: 2, kind: input, shape index: {}]   ;;  %s6231_s3 = inlined_call_operand.vmem [shape: f32[8,1], index: 3, kind: input, shape index: {}]   ;;  %s6232_s4 = inlined_call_operand.vmem [shape: f32[16,32], index: 4, kind: input, shape index: {}]   ;;  %s6233_s5 = inlined_call_operand.hbm [shape: f32[1,32], index: 5, kind: input, shape index: {}]   ;;  %s6234_s6 = inlined_call_operand.vmem [shape: f32[32,144], index: 6, kind: input, shape index: {}]   ;;  %s6235_s7 = inlined_call_operand.hbm [shape: f32[1,144], index: 7, kind: input, shape index: {}]   ;;  %s6236_s8 = inlined_call_operand.hbm [shape: f32[16,80], index: 8, kind: input, shape index: {}]   ;;  %s6237_s9 = inlined_call_operand.hbm [shape: f32[1,80], index: 9, kind: input, shape index: {}]   ;;  %s6238_s10 = inlined_call_operand.hbm [shape: f32[6,144,144], index: 10, kind: input, shape index: {}]   ;;  %s6239_s11 = inlined_call_operand.hbm [shape: f32[6,1,144], index: 11, kind: input, shape index: {}]   ;;  %s6240_s12 = inlined_call_operand.hbm [shape: f32[6,144,144], index: 12, kind: input, shape index: {}]   ;;  %s6241_s13 = inlined_call_operand.hbm [shape: f32[6,1,144], index: 13, kind: input, shape index: {}]   ;;  %s6242_s14 = inlined_call_operand.hbm [shape: f32[6,1,144], index: 14, kind: input, shape index: {}]   ;;  %s6243_s15 = inlined_call_operand.hbm [shape: f32[6,1,144], index: 15, kind: input, shape index: {}]   ;;  %s6244_s16 = inlined_call_operand.vmem [shape: f32[144,144], index: 16, kind: input, shape index: {}]   ;;  %s6245_s17 = inlined_call_operand.hbm [shape: f32[80,80], index: 17, kind: input, shape index: {}]   ;;  %s6246_s18 = inlined_call_operand.hbm [shape: f32[1,80], index: 18, kind: input, shape index: {}]   ;;  %s6247_s19 = inlined_call_operand.hbm [shape: f32[1,80], index: 19, kind: input, shape index: {}]   ;;  %s6248_s20 = inlined_call_operand.hbm [shape: f32[80,96], index: 20, kind: input, shape index: {}]   ;;  %s6249_s21 = inlined_call_operand.vmem [shape: f32[96,64], index: 21, kind: input, shape index: {}]   ;;  %s6250_s22 = inlined_call_operand.vmem [shape: f32[64,144], index: 22, kind: input, shape index: {}]   ;;  %s6251_s23 = inlined_call_operand.vmem [shape: f32[144,16], index: 23, kind: input, shape index: {}]   ;;  %s6252_s24 = inlined_call_operand.hbm [shape: f32[1,16], index: 24, kind: input, shape index: {}]   ;;  %s6253_s25 = inlined_call_operand.vmem [shape: f32[8,16], index: 25, kind: output, shape index: {}]  }
   0x1   :  { %6260 = sst [smem:[#allocation33_spill]] %s6228_s0 }
   0x2   :  { %6261 = sst [smem:[#allocation34_spill]] %s6229_s1 }
   0x3   :  { %6262 = sst [smem:[#allocation35_spill]] %s6230_s2 }
   0x4   :  { %6263 = sst [smem:[#allocation36_spill]] %s6231_s3 }
   0x5   :  { %6264 = sst [smem:[#allocation37_spill]] %s6232_s4 }
   0x6   :  { %6265 = sst [smem:[#allocation38_spill]] %s6233_s5 }
   0x7   :  { %6266 = sst [smem:[#allocation39_spill]] %s6234_s6 }
   0x8   :  { %6267 = sst [smem:[#allocation40_spill]] %s6235_s7 }
   0x9   :  { %6268 = sst [smem:[#allocation41_spill]] %s6236_s8 }
   0xa   :  { %6269 = sst [smem:[#allocation42_spill]] %s6237_s9 }
   0xb   :  { %6270 = sst [smem:[#allocation43_spill]] %s6253_s25 }
   0xc   :  { %30 = vsyncpa [#allocation3], 0 }
   0xd   :  { %31 = vsyncpa [#allocation5], 0 }
   0xe   :  { %32 = vsyncpa [#allocation8], 0 }
   0xf   :  { %33 = vsyncpa [#allocation11], 0 }
  0x10   :  { %34 = vsyncpa [#allocation14], 0 }
  0x11   :  { %35 = vsyncpa [#allocation17], 0 }
  0x12   :  { %36 = vsyncpa [#allocation20], 0 }
  0x13   :  { %37 = vsyncpa [#allocation23], 0  ;;  %s5164_s29 = smov [#allocation4]   ;;  %s5165_s6 = smov [#allocation7]  }
  0x14   :  { %s66_s2 = sshll.u32 %s5164_s29, 4  ;;  %s88_s30 = sshll.u32 %s5165_s6, 4  ;;  %s67_s2 = int_to_ptr.vmem [resolvable:$true] %s66_s2  ;;  %s89_s30 = int_to_ptr.vmem [resolvable:$true] %s88_s30 }
  0x15   :  { %s6271_s26 = sld [smem:[#allocation40_spill]] }
  0x1b   :  { %s4818_s1 = scalar_lea.hbm %s6271_s26, 32 }
  0x1c   :  { %p4819_p0 = scmp.ne.s32.totalorder %s6271_s26, %s4818_s1  ;;  %p4822_p1 = scmp.lt.u32.totalorder %s4818_s1, %s6271_s26 }
  0x1e   :  { %p4824_p2 = pnand %p4822_p1, %p4819_p0 }
  0x20   :  { %4827 = shalt.err (!%p4824_p2)
}
  0x21   :  { %s4828_s9 = scalar_lea.vmem %s67_s2, 32  ;;  %p4833_p4 = scmp.lt.s32.totalorder %s67_s2, %s67_s2 }
  0x22   :  { %p4829_p3 = scmp.ne.s32.totalorder %s67_s2, %s4828_s9  ;;  %p4834_p5 = scmp.lt.s32.totalorder %s4828_s9, %s4828_s9 }
  0x24   :  { %p4835_p6 = por %p4834_p5, %p4833_p4 }
  0x26   :  { %p4836_p7 = pnand %p4835_p6, %p4829_p3 }
  0x28   :  { %4839 = shalt.err (!%p4836_p7)
}
  0x29   :  { %69 = dma.hbm_to_vmem [thread:$0]  %s6271_s26, 32, %s67_s2, [#allocation5]  }
  0x2a   :  { %s6272_s7 = sld [smem:[#allocation42_spill]] }
  0x30   :  { %s4840_s3 = scalar_lea.hbm %s6272_s7, 16 }
  0x31   :  { %p4841_p8 = scmp.ne.s32.totalorder %s6272_s7, %s4840_s3  ;;  %p4844_p9 = scmp.lt.u32.totalorder %s4840_s3, %s6272_s7 }
  0x33   :  { %p4846_p10 = pnand %p4844_p9, %p4841_p8 }
  0x35   :  { %4849 = shalt.err (!%p4846_p10)
}
  0x36   :  { %s4850_s28 = scalar_lea.vmem %s89_s30, 16  ;;  %s4854_s9 = scalar_lea.vmem %s89_s30, 32 }
  0x37   :  { %p4851_p11 = scmp.ne.s32.totalorder %s89_s30, %s4850_s28  ;;  %p4855_p12 = scmp.lt.s32.totalorder %s89_s30, %s89_s30 }
  0x38   :  { %p4856_p13 = scmp.lt.s32.totalorder %s4854_s9, %s4850_s28 }
  0x3a   :  { %p4857_p0 = por %p4856_p13, %p4855_p12 }
  0x3c   :  { %p4858_p1 = pnand %p4857_p0, %p4851_p11 }
  0x3e   :  { %4861 = shalt.err (!%p4858_p1)
}
  0x3f   :  { %91 = dma.hbm_to_vmem [thread:$0]  %s6272_s7, 16, %s89_s30, [#allocation8]  }
  0x40   :  { %s5166_s5 = smov [#allocation10]   ;;  %s4862_s3 = scalar_lea.hbm %s6239_s11, 192 }
  0x41   :  { %s109_s0 = sshll.u32 %s5166_s5, 4  ;;  %p4863_p2 = scmp.ne.s32.totalorder %s6239_s11, %s4862_s3  ;;  %s110_s0 = int_to_ptr.vmem [resolvable:$true] %s109_s0 }
  0x42   :  { %p4866_p3 = scmp.lt.u32.totalorder %s4862_s3, %s6239_s11 }
  0x44   :  { %p4868_p4 = pnand %p4866_p3, %p4863_p2 }
  0x46   :  { %4871 = shalt.err (!%p4868_p4)
}
  0x47   :  { %s4872_s28 = scalar_lea.vmem %s110_s0, 192  ;;  %p4877_p6 = scmp.lt.s32.totalorder %s110_s0, %s110_s0 }
  0x48   :  { %p4873_p5 = scmp.ne.s32.totalorder %s110_s0, %s4872_s28  ;;  %p4878_p7 = scmp.lt.s32.totalorder %s4872_s28, %s4872_s28 }
  0x4a   :  { %p4879_p8 = por %p4878_p7, %p4877_p6 }
  0x4c   :  { %p4880_p9 = pnand %p4879_p8, %p4873_p5 }
  0x4e   :  { %4883 = shalt.err (!%p4880_p9)
}
  0x4f   :  { %s5167_s30 = smov 32   ;;  %s5168_s7 = smov 2  }
  0x50   :  { %115 = dma.hbm_to_vmem [thread:$0]  %s6239_s11, 192, %s110_s0, [#allocation11], %s5167_s30, %s5167_s30, %s5168_s7  }
  0x51   :  { %s5169_s26 = smov [#allocation13]   ;;  %s5170_s29 = smov [#allocation16]  }
  0x52   :  { %s133_s5 = sshll.u32 %s5169_s26, 4  ;;  %s157_s6 = sshll.u32 %s5170_s29, 4  ;;  %s134_s5 = int_to_ptr.vmem [resolvable:$true] %s133_s5  ;;  %s158_s6 = int_to_ptr.vmem [resolvable:$true] %s157_s6 }
  0x53   :  { %s4884_s27 = scalar_lea.hbm %s6241_s13, 192 }
  0x54   :  { %p4885_p10 = scmp.ne.s32.totalorder %s6241_s13, %s4884_s27  ;;  %p4888_p11 = scmp.lt.u32.totalorder %s4884_s27, %s6241_s13 }
  0x56   :  { %p4890_p12 = pnand %p4888_p11, %p4885_p10 }
  0x58   :  { %4893 = shalt.err (!%p4890_p12)
}
  0x59   :  { %s4894_s11 = scalar_lea.vmem %s134_s5, 192  ;;  %p4899_p0 = scmp.lt.s32.totalorder %s134_s5, %s134_s5 }
  0x5a   :  { %p4895_p13 = scmp.ne.s32.totalorder %s134_s5, %s4894_s11  ;;  %p4900_p1 = scmp.lt.s32.totalorder %s4894_s11, %s4894_s11 }
  0x5c   :  { %p4901_p2 = por %p4900_p1, %p4899_p0 }
  0x5e   :  { %p4902_p3 = pnand %p4901_p2, %p4895_p13 }
  0x60   :  { %4905 = shalt.err (!%p4902_p3)
}
  0x61   :  { %139 = dma.hbm_to_vmem [thread:$0]  %s6241_s13, 192, %s134_s5, [#allocation14], %s5167_s30, %s5167_s30, %s5168_s7  }
  0x62   :  { %s4906_s26 = scalar_lea.hbm %s6243_s15, 192 }
  0x63   :  { %p4907_p4 = scmp.ne.s32.totalorder %s6243_s15, %s4906_s26  ;;  %p4910_p5 = scmp.lt.u32.totalorder %s4906_s26, %s6243_s15 }
  0x65   :  { %p4912_p6 = pnand %p4910_p5, %p4907_p4 }
  0x67   :  { %4915 = shalt.err (!%p4912_p6)
}
  0x68   :  { %s4916_s1 = scalar_lea.vmem %s158_s6, 192  ;;  %p4921_p8 = scmp.lt.s32.totalorder %s158_s6, %s158_s6 }
  0x69   :  { %p4917_p7 = scmp.ne.s32.totalorder %s158_s6, %s4916_s1  ;;  %p4922_p9 = scmp.lt.s32.totalorder %s4916_s1, %s4916_s1 }
  0x6b   :  { %p4923_p10 = por %p4922_p9, %p4921_p8 }
  0x6d   :  { %p4924_p11 = pnand %p4923_p10, %p4917_p7 }
  0x6f   :  { %4927 = shalt.err (!%p4924_p11)
}
  0x70   :  { %163 = dma.hbm_to_vmem [thread:$0]  %s6243_s15, 192, %s158_s6, [#allocation17], %s5167_s30, %s5167_s30, %s5168_s7  }
  0x71   :  { %s5171_s4 = smov [#allocation19]   ;;  %s4928_s9 = scalar_lea.hbm %s6246_s18, 16 }
  0x72   :  { %s184_s28 = sshll.u32 %s5171_s4, 4  ;;  %p4929_p12 = scmp.ne.s32.totalorder %s6246_s18, %s4928_s9  ;;  %s185_s28 = int_to_ptr.vmem [resolvable:$true] %s184_s28 }
  0x73   :  { %p4932_p13 = scmp.lt.u32.totalorder %s4928_s9, %s6246_s18 }
  0x75   :  { %p4934_p0 = pnand %p4932_p13, %p4929_p12 }
  0x77   :  { %4937 = shalt.err (!%p4934_p0)
}
  0x78   :  { %s4938_s3 = scalar_lea.vmem %s185_s28, 16  ;;  %s4942_s15 = scalar_lea.vmem %s185_s28, 32 }
  0x79   :  { %p4939_p1 = scmp.ne.s32.totalorder %s185_s28, %s4938_s3  ;;  %p4943_p2 = scmp.lt.s32.totalorder %s185_s28, %s185_s28 }
  0x7a   :  { %p4944_p3 = scmp.lt.s32.totalorder %s4942_s15, %s4938_s3 }
  0x7c   :  { %p4945_p4 = por %p4944_p3, %p4943_p2 }
  0x7e   :  { %p4946_p5 = pnand %p4945_p4, %p4939_p1 }
  0x80   :  { %4949 = shalt.err (!%p4946_p5)
}
  0x81   :  { %187 = dma.hbm_to_vmem [thread:$0]  %s6246_s18, 16, %s185_s28, [#allocation20]  }
  0x82   :  { %s5172_s27 = smov [#allocation22]   ;;  %s5173_s13 = smov [#allocation2]  }
  0x83   :  { %s203_s1 = sshll.u32 %s5172_s27, 4  ;;  %s54_s5 = sshll.u32 %s5173_s13, 4  ;;  %s204_s1 = int_to_ptr.vmem [resolvable:$true] %s203_s1  ;;  %s5400_s5 = int_to_ptr.vmem [resolvable:$true] %s54_s5 }
  0x84   :  { %s4950_s0 = scalar_lea.hbm %s6248_s20, 1280 }
  0x85   :  { %p4951_p6 = scmp.ne.s32.totalorder %s6248_s20, %s4950_s0  ;;  %p4954_p7 = scmp.lt.u32.totalorder %s4950_s0, %s6248_s20 }
  0x87   :  { %p4956_p8 = pnand %p4954_p7, %p4951_p6 }
  0x89   :  { %4959 = shalt.err (!%p4956_p8)
}
  0x8a   :  { %s4960_s18 = scalar_lea.vmem %s204_s1, 1280  ;;  %p4965_p10 = scmp.lt.s32.totalorder %s204_s1, %s204_s1 }
  0x8b   :  { %p4961_p9 = scmp.ne.s32.totalorder %s204_s1, %s4960_s18  ;;  %p4966_p11 = scmp.lt.s32.totalorder %s4960_s18, %s4960_s18 }
  0x8d   :  { %p4967_p12 = por %p4966_p11, %p4965_p10 }
  0x8f   :  { %p4968_p13 = pnand %p4967_p12, %p4961_p9 }
  0x91   :  { %4971 = shalt.err (!%p4968_p13)
}
  0x92   :  { %s5174_s28 = smov 128   ;;  %s5175_s29 = smov 8  }
  0x93   :  { %209 = dma.hbm_to_vmem [thread:$0]  %s6248_s20, 1280, %s204_s1, [#allocation23], %s5174_s28, %s5174_s28, %s5175_s29  }
  0x94   :  { %s6273_s27 = sld [smem:[#allocation38_spill]] }
  0x9a   :  { %s4972_s13 = scalar_lea.hbm %s6273_s27, 16 }
  0x9b   :  { %p4973_p0 = scmp.ne.s32.totalorder %s6273_s27, %s4972_s13  ;;  %p4976_p1 = scmp.lt.u32.totalorder %s4972_s13, %s6273_s27 }
  0x9d   :  { %p4978_p2 = pnand %p4976_p1, %p4973_p0 }
  0x9f   :  { %4981 = shalt.err (!%p4978_p2)
}
  0xa0   :  { %s4982_s2 = scalar_lea.vmem %s5400_s5, 16  ;;  %s4986_s20 = scalar_lea.vmem %s5400_s5, 32 }
  0xa1   :  { %p4983_p3 = scmp.ne.s32.totalorder %s5400_s5, %s4982_s2  ;;  %p4987_p4 = scmp.lt.s32.totalorder %s5400_s5, %s5400_s5 }
  0xa2   :  { %p4988_p5 = scmp.lt.s32.totalorder %s4986_s20, %s4982_s2 }
  0xa4   :  { %p4989_p6 = por %p4988_p5, %p4987_p4 }
  0xa6   :  { %p4990_p7 = pnand %p4989_p6, %p4983_p3 }
  0xa8   :  { %4993 = shalt.err (!%p4990_p7)
}
  0xa9   :  { %57 = dma.hbm_to_vmem [thread:$0]  %s6273_s27, 16, %s5400_s5, [#allocation3]  }
  0xaa   :  { %s5176_s26 = smov [#allocation6]   ;;  %s5177_s3 = smov [#allocation9]  }
  0xab   :  { %s75_s18 = sshll.u32 %s5176_s26, 4  ;;  %s97_s15 = sshll.u32 %s5177_s3, 4  ;;  %s76_s18 = int_to_ptr.vmem [resolvable:$true] %s75_s18  ;;  %s5435_s15 = int_to_ptr.vmem [resolvable:$true] %s97_s15 }
  0xac   :  { %s6274_s13 = sld [smem:[#allocation41_spill]] }
  0xb2   :  { %s4994_s4 = scalar_lea.hbm %s6274_s13, 256 }
  0xb3   :  { %p4995_p8 = scmp.ne.s32.totalorder %s6274_s13, %s4994_s4  ;;  %p4998_p9 = scmp.lt.u32.totalorder %s4994_s4, %s6274_s13 }
  0xb5   :  { %p5000_p10 = pnand %p4998_p9, %p4995_p8 }
  0xb7   :  { %5003 = shalt.err (!%p5000_p10)
}
  0xb8   :  { %s5004_s5 = scalar_lea.vmem %s76_s18, 256  ;;  %p5009_p12 = scmp.lt.s32.totalorder %s76_s18, %s76_s18 }
  0xb9   :  { %p5005_p11 = scmp.ne.s32.totalorder %s76_s18, %s5004_s5  ;;  %p5010_p13 = scmp.lt.s32.totalorder %s5004_s5, %s5004_s5 }
  0xbb   :  { %p5011_p0 = por %p5010_p13, %p5009_p12 }
  0xbd   :  { %p5012_p1 = pnand %p5011_p0, %p5005_p11 }
  0xbf   :  { %5015 = shalt.err (!%p5012_p1)
}
  0xc0   :  { %81 = dma.hbm_to_vmem [thread:$0]  %s6274_s13, 256, %s76_s18, [#allocation5], %s5174_s28, %s5174_s28, %s5175_s29  }
  0xc1   :  { %s5016_s26 = scalar_lea.hbm %s6238_s10, 27648 }
  0xc2   :  { %p5017_p2 = scmp.ne.s32.totalorder %s6238_s10, %s5016_s26  ;;  %p5020_p3 = scmp.lt.u32.totalorder %s5016_s26, %s6238_s10 }
  0xc4   :  { %p5022_p4 = pnand %p5020_p3, %p5017_p2 }
  0xc6   :  { %5025 = shalt.err (!%p5022_p4)
}
  0xc7   :  { %s5026_s11 = scalar_lea.vmem %s5435_s15, 27648  ;;  %p5031_p6 = scmp.lt.s32.totalorder %s5435_s15, %s5435_s15 }
  0xc8   :  { %p5027_p5 = scmp.ne.s32.totalorder %s5435_s15, %s5026_s11  ;;  %p5032_p7 = scmp.lt.s32.totalorder %s5026_s11, %s5026_s11 }
  0xca   :  { %p5033_p8 = por %p5032_p7, %p5031_p6 }
  0xcc   :  { %p5034_p9 = pnand %p5033_p8, %p5027_p5 }
  0xce   :  { %5037 = shalt.err (!%p5034_p9)
}
  0xcf   :  { %s5178_s18 = smov 256   ;;  %s5179_s13 = smov 16  }
  0xd0   :  { %103 = dma.hbm_to_vmem [thread:$0]  %s6238_s10, 27648, %s5435_s15, [#allocation8], %s5178_s18, %s5178_s18, %s5179_s13  }
  0xd1   :  { %s5180_s2 = smov [#allocation12]   ;;  %s5181_s27 = smov [#allocation15]  }
  0xd2   :  { %s121_s5 = sshll.u32 %s5180_s2, 4  ;;  %s145_s20 = sshll.u32 %s5181_s27, 4  ;;  %s122_s5 = int_to_ptr.vmem [resolvable:$true] %s121_s5  ;;  %s5469_s20 = int_to_ptr.vmem [resolvable:$true] %s145_s20 }
  0xd3   :  { %s5038_s26 = scalar_lea.hbm %s6240_s12, 27648 }
  0xd4   :  { %p5039_p10 = scmp.ne.s32.totalorder %s6240_s12, %s5038_s26  ;;  %p5042_p11 = scmp.lt.u32.totalorder %s5038_s26, %s6240_s12 }
  0xd6   :  { %p5044_p12 = pnand %p5042_p11, %p5039_p10 }
  0xd8   :  { %5047 = shalt.err (!%p5044_p12)
}
  0xd9   :  { %s5048_s10 = scalar_lea.vmem %s122_s5, 27648  ;;  %p5053_p0 = scmp.lt.s32.totalorder %s122_s5, %s122_s5 }
  0xda   :  { %p5049_p13 = scmp.ne.s32.totalorder %s122_s5, %s5048_s10  ;;  %p5054_p1 = scmp.lt.s32.totalorder %s5048_s10, %s5048_s10 }
  0xdc   :  { %p5055_p2 = por %p5054_p1, %p5053_p0 }
  0xde   :  { %p5056_p3 = pnand %p5055_p2, %p5049_p13 }
  0xe0   :  { %5059 = shalt.err (!%p5056_p3)
}
  0xe1   :  { %127 = dma.hbm_to_vmem [thread:$0]  %s6240_s12, 27648, %s122_s5, [#allocation11], %s5178_s18, %s5178_s18, %s5179_s13  }
  0xe2   :  { %s5060_s2 = scalar_lea.hbm %s6242_s14, 192 }
  0xe3   :  { %p5061_p4 = scmp.ne.s32.totalorder %s6242_s14, %s5060_s2  ;;  %p5064_p5 = scmp.lt.u32.totalorder %s5060_s2, %s6242_s14 }
  0xe5   :  { %p5066_p6 = pnand %p5064_p5, %p5061_p4 }
  0xe7   :  { %5069 = shalt.err (!%p5066_p6)
}
  0xe8   :  { %s5070_s3 = scalar_lea.vmem %s5469_s20, 192  ;;  %p5075_p8 = scmp.lt.s32.totalorder %s5469_s20, %s5469_s20 }
  0xe9   :  { %p5071_p7 = scmp.ne.s32.totalorder %s5469_s20, %s5070_s3  ;;  %p5076_p9 = scmp.lt.s32.totalorder %s5070_s3, %s5070_s3 }
  0xeb   :  { %p5077_p10 = por %p5076_p9, %p5075_p8 }
  0xed   :  { %p5078_p11 = pnand %p5077_p10, %p5071_p7 }
  0xef   :  { %5081 = shalt.err (!%p5078_p11)
}
  0xf0   :  { %151 = dma.hbm_to_vmem [thread:$0]  %s6242_s14, 192, %s5469_s20, [#allocation14], %s5167_s30, %s5167_s30, %s5168_s7  }
  0xf1   :  { %s5182_s13 = smov [#allocation18]   ;;  %s5183_s6 = smov [#allocation21]  }
  0xf2   :  { %s171_s5 = sshll.u32 %s5182_s13, 4  ;;  %s194_s8 = sshll.u32 %s5183_s6, 4  ;;  %s172_s5 = int_to_ptr.vmem [resolvable:$true] %s171_s5  ;;  %s195_s8 = int_to_ptr.vmem [resolvable:$true] %s194_s8 }
  0xf3   :  { %s5082_s15 = scalar_lea.hbm %s6245_s17, 1280 }
  0xf4   :  { %p5083_p12 = scmp.ne.s32.totalorder %s6245_s17, %s5082_s15  ;;  %p5086_p13 = scmp.lt.u32.totalorder %s5082_s15, %s6245_s17 }
  0xf6   :  { %p5088_p0 = pnand %p5086_p13, %p5083_p12 }
  0xf8   :  { %5091 = shalt.err (!%p5088_p0)
}
  0xf9   :  { %s5092_s14 = scalar_lea.vmem %s172_s5, 1280  ;;  %p5097_p2 = scmp.lt.s32.totalorder %s172_s5, %s172_s5 }
  0xfa   :  { %p5093_p1 = scmp.ne.s32.totalorder %s172_s5, %s5092_s14  ;;  %p5098_p3 = scmp.lt.s32.totalorder %s5092_s14, %s5092_s14 }
  0xfc   :  { %p5099_p4 = por %p5098_p3, %p5097_p2 }
  0xfe   :  { %p5100_p5 = pnand %p5099_p4, %p5093_p1 }
 0x100   :  { %5103 = shalt.err (!%p5100_p5)
}
 0x101   :  { %177 = dma.hbm_to_vmem [thread:$0]  %s6245_s17, 1280, %s172_s5, [#allocation17], %s5174_s28, %s5174_s28, %s5175_s29  }
 0x102   :  { %s5104_s1 = scalar_lea.hbm %s6247_s19, 16 }
 0x103   :  { %p5105_p6 = scmp.ne.s32.totalorder %s6247_s19, %s5104_s1  ;;  %p5108_p7 = scmp.lt.u32.totalorder %s5104_s1, %s6247_s19 }
 0x105   :  { %p5110_p8 = pnand %p5108_p7, %p5105_p6 }
 0x107   :  { %5113 = shalt.err (!%p5110_p8)
}
 0x108   :  { %s5114_s18 = scalar_lea.vmem %s195_s8, 16  ;;  %s5118_s13 = scalar_lea.vmem %s195_s8, 32 }
 0x109   :  { %p5115_p9 = scmp.ne.s32.totalorder %s195_s8, %s5114_s18  ;;  %p5119_p10 = scmp.lt.s32.totalorder %s195_s8, %s195_s8 }
 0x10a   :  { %p5120_p11 = scmp.lt.s32.totalorder %s5118_s13, %s5114_s18 }
 0x10c   :  { %p5121_p12 = por %p5120_p11, %p5119_p10 }
 0x10e   :  { %p5122_p13 = pnand %p5121_p12, %p5115_p9 }
 0x110   :  { %5125 = shalt.err (!%p5122_p13)
}
 0x111   :  { %197 = dma.hbm_to_vmem [thread:$0]  %s6247_s19, 16, %s195_s8, [#allocation20]  }
 0x112   :  { %s5184_s29 = smov [#allocation24]   ;;  %s5126_s10 = scalar_lea.hbm %s6252_s24, 16 }
 0x113   :  { %s222_s5 = sshll.u32 %s5184_s29, 4  ;;  %p5127_p0 = scmp.ne.s32.totalorder %s6252_s24, %s5126_s10  ;;  %s223_s5 = int_to_ptr.vmem [resolvable:$true] %s222_s5 }
 0x114   :  { %p5130_p1 = scmp.lt.u32.totalorder %s5126_s10, %s6252_s24 }
 0x116   :  { %p5132_p2 = pnand %p5130_p1, %p5127_p0 }
 0x118   :  { %5135 = shalt.err (!%p5132_p2)
}
 0x119   :  { %s5136_s2 = scalar_lea.vmem %s223_s5, 16  ;;  %s5140_s19 = scalar_lea.vmem %s223_s5, 32 }
 0x11a   :  { %p5137_p3 = scmp.ne.s32.totalorder %s223_s5, %s5136_s2  ;;  %p5141_p4 = scmp.lt.s32.totalorder %s223_s5, %s223_s5 }
 0x11b   :  { %p5142_p5 = scmp.lt.s32.totalorder %s5140_s19, %s5136_s2 }
 0x11d   :  { %p5143_p6 = por %p5142_p5, %p5141_p4 }
 0x11f   :  { %p5144_p7 = pnand %p5143_p6, %p5137_p3 }
 0x121   :  { %5147 = shalt.err (!%p5144_p7)
}
 0x122   :  { %225 = dma.hbm_to_vmem [thread:$0]  %s6252_s24, 16, %s223_s5, [#allocation23]  }
 0x123   :  { %5148 = dma.done.wait [#allocation3], 16  }
 0x124   :  { %5149 = vsyncadd [#allocation3], 4294967280 }
 0x125   :  { %5150 = dma.done.wait [#allocation5], 288  }
 0x126   :  { %5151 = vsyncadd [#allocation5], 4294967008 }
 0x127   :  { %5152 = dma.done.wait [#allocation8], 27664  }
 0x128   :  { %5153 = vsyncadd [#allocation8], 4294939632 }
 0x129   :  { %5154 = dma.done.wait [#allocation11], 27840  }
 0x12a   :  { %5155 = vsyncadd [#allocation11], 4294939456 }
 0x12b   :  { %5156 = dma.done.wait [#allocation14], 384  }
 0x12c   :  { %5157 = vsyncadd [#allocation14], 4294966912 }
 0x12d   :  { %5158 = dma.done.wait [#allocation17], 1472  }
 0x12e   :  { %5159 = vsyncadd [#allocation17], 4294965824 }
 0x12f   :  { %5160 = dma.done.wait [#allocation20], 32  }
 0x130   :  { %5161 = vsyncadd [#allocation20], 4294967264 }
 0x131   :  { %5162 = dma.done.wait [#allocation23], 1296  }
 0x132   :  { %5163 = vsyncadd [#allocation23], 4294966000  ;;  %vm272_vm0 = vcmask 130048   ;;  %s6275_s24 = sld [smem:[#allocation33_spill]]  ;;  %s6276_s1 = sld [smem:[#allocation34_spill]]  ;;  %v5185_v3 = vmov 0  }
 0x133   :  { %4730 = vset.pattern.permute.xlu1 %v5185_v3  ;;  %4731 = vset.pattern.permute.xlu0 %v5185_v3  ;;  %s6277_s3 = sld [smem:[#allocation35_spill]]  ;;  %s6278_s13 = sld [smem:[#allocation37_spill]]  ;;  %v5186_v13 = vmov 0.0|0.0   ;;  %vm5187_vm1 = vmmov 0   ;;  %v5188_v14 = vmov 0.0   ;;  %v485_v40 = vld [vmem:[#allocation6] sm:$0xff] }
 0x134   :  { %3936 = vmatprep.subr.bf16.mxu0 %v5186_v13  ;;  %3850 = vmatprep.mubr.msk.f32.mxu0 %vm5187_vm1, %v5188_v14  ;;  %s6279_s6 = sld [smem:[#allocation39_spill]]  ;;  %v486_v41 = vld [vmem:[#allocation6 + $0x8] sm:$0xff]  ;;  %v3757_v42 = vld [vmem:[#allocation2] ss:$0 sm:$0xff]  ;;  %vm410_vm4 = vcmask 261120   ;;  %v603_v50 = vld [vmem:[#allocation9] sm:$0xff] }
 0x135   :  { %v604_v43 = vld [vmem:[#allocation9 + $0x8] sm:$0xff]  ;;  %v606_v44 = vld [vmem:[#allocation9 + $0x18] sm:$0xff]  ;;  %v3948_v46 = vpack.c.bf16 %v486_v41, %v485_v40  ;;  %v605_v51 = vld [vmem:[#allocation9 + $0x10] sm:$0xff]  ;;  %s6280_s14 = sld [smem:[#allocation36_spill]]  ;;  %s6281_s7 = sld [smem:[#allocation43_spill]] }
 0x136   :  { %v3950_v49 = vpack.c.bf16 %v606_v44, %v604_v43  ;;  %v608_v52 = vld [vmem:[#allocation9 + $0x28] sm:$0xff]  ;;  %v610_v53 = vld [vmem:[#allocation9 + $0x38] sm:$0xff]  ;;  %v3952_v54 = vpack.c.bf16 %v605_v51, %v603_v50  ;;  %v607_v56 = vld [vmem:[#allocation9 + $0x20] sm:$0xff] }
 0x137   :  { %v3954_v55 = vpack.c.bf16 %v610_v53, %v608_v52  ;;  %v609_v57 = vld [vmem:[#allocation9 + $0x30] sm:$0xff]  ;;  %v612_v58 = vld [vmem:[#allocation9 + $0x48] sm:$0xff]  ;;  %v614_v59 = vld [vmem:[#allocation9 + $0x58] sm:$0xff] }
 0x138   :  { %v5545_v0 = vld [vmem:[%s6275_s24] sm:$0xff]  ;;  %v3956_v60 = vpack.c.bf16 %v609_v57, %v607_v56  ;;  %v3958_v61 = vpack.c.bf16 %v614_v59, %v612_v58  ;;  %v613_v63 = vld [vmem:[#allocation9 + $0x50] sm:$0xff]  ;;  %v782_v56 = vld [vmem:[#allocation12 + $0x18] sm:$0xff] }
 0x139   :  { %v273_v1 = vsel %vm272_vm0, %v5545_v0, 0.0  ;;  %v294_v2 = vld [vmem:[%s6276_s1] sm:$0xff]  ;;  %v309_v11 = vld [vmem:[%s6278_s13 + $0x8] sm:$0xff]  ;;  %v637_v40 = vld [vmem:[#allocation9 + $0x110] sm:$0xff] }
 0x13a   :  { %274 = vadd.xlane.f32.xlu0 %v273_v1  ;;  %297 = vperm.xlu1 %4730, %v294_v2   ;;  %v301_v4 = vld [vmem:[%s6277_s3] sm:$0xff]  ;;  %v391_v15 = vld [vmem:[%s6279_s6 + $0x8] sm:$0xff]  ;;  %v393_v16 = vld [vmem:[%s6279_s6 + $0x18] sm:$0xff] }
 0x13b   :  { %v308_v10 = vld [vmem:[%s6278_s13] sm:$0xff]  ;;  %v3939_v17 = vpack.c.bf16 %v393_v16, %v391_v15  ;;  %v392_v25 = vld [vmem:[%s6279_s6 + $0x10] sm:$0xff]  ;;  %v395_v27 = vld [vmem:[%s6279_s6 + $0x28] sm:$0xff] }
 0x13c   :  { %v3937_v12 = vpack.c.bf16 %v309_v11, %v308_v10  ;;  %v390_v24 = vld [vmem:[%s6279_s6] sm:$0xff]  ;;  %v397_v28 = vld [vmem:[%s6279_s6 + $0x38] sm:$0xff]  ;;  %v396_v38 = vld [vmem:[%s6279_s6 + $0x30] sm:$0xff] }
 0x13d   :  { %v3941_v33 = vpack.c.bf16 %v392_v25, %v390_v24  ;;  %v3943_v36 = vpack.c.bf16 %v397_v28, %v395_v27  ;;  %v394_v37 = vld [vmem:[%s6279_s6 + $0x20] sm:$0xff]  ;;  %v616_v1 = vld [vmem:[#allocation9 + $0x68] sm:$0xff] }
 0x13e   :  { %304 = vperm.xlu1 %4730, %v301_v4   ;;  %3938 = vmatpush3.bf16.msra.mxu0 %v3937_v12  ;;  %v3945_v39 = vpack.c.bf16 %v396_v38, %v394_v37  ;;  %v611_v62 = vld [vmem:[#allocation9 + $0x40] sm:$0xff]  ;;  %v618_v2 = vld [vmem:[#allocation9 + $0x78] sm:$0xff]  ;;  %v621_v12 = vld [vmem:[#allocation9 + $0x90] sm:$0xff] }
 0x13f   :  { %3940 = vmatprep.subr.bf16.mxu0 %v3939_v17  ;;  %v3960_v3 = vpack.c.bf16 %v613_v63, %v611_v62  ;;  %v3962_v4 = vpack.c.bf16 %v618_v2, %v616_v1  ;;  %v619_v11 = vld [vmem:[#allocation9 + $0x80] sm:$0xff]  ;;  %v624_v15 = vld [vmem:[#allocation9 + $0xa8] sm:$0xff]  ;;  %v626_v16 = vld [vmem:[#allocation9 + $0xb8] sm:$0xff] }
 0x140   :  { %v3968_v17 = vpack.c.bf16 %v621_v12, %v619_v11  ;;  %v627_v25 = vld [vmem:[#allocation9 + $0xc0] sm:$0xff]  ;;  %v632_v27 = vld [vmem:[#allocation9 + $0xe8] sm:$0xff]  ;;  %v634_v28 = vld [vmem:[#allocation9 + $0xf8] sm:$0xff] }
 0x141   :  { %v638_v37 = vld [vmem:[#allocation9 + $0x118] sm:$0xff]  ;;  %v779_v57 = vld [vmem:[#allocation12] sm:$0xff] }
 0x142   :  { %v781_v59 = vld [vmem:[#allocation12 + $0x10] sm:$0xff]  ;;  %v783_v1 = vld [vmem:[#allocation12 + $0x20] sm:$0xff] }
 0x143   :  { %v3988_v62 = vpack.c.bf16 %v781_v59, %v779_v57  ;;  %v785_v2 = vld [vmem:[#allocation12 + $0x30] sm:$0xff]  ;;  %v569_v59 = vld [vmem:[%s6244_s16 + $0x10] sm:$0xff] }
 0x144   :  { %v567_v57 = vld [vmem:[%s6244_s16] sm:$0xff] }
 0x1b9   :  { %v298_v21 = vpop.permute.xlu1 %297 }
 0x1bd   :  { %v5587_v32 = vpop.permute.xlu1 %304 }
 0x1c7   :  { %v275_v5 = vpop.xlane.xlu0 %274 }
 0x1c8   :  { %v5555_v6 = vmul.f32 0.0625, %v275_v5  ;;  %v615_v5 = vld [vmem:[#allocation9 + $0x60] sm:$0xff] }
 0x1ca   :  { %v278_v7 = vsub.f32 %v5545_v0, %v5555_v6 }
 0x1cc   :  { %v279_v8 = vmul.f32 %v278_v7, %v278_v7 }
 0x1ce   :  { %v280_v9 = vsel %vm272_vm0, %v279_v8, 0.0  ;;  %v620_v8 = vld [vmem:[#allocation9 + $0x88] sm:$0xff] }
 0x1cf   :  { %281 = vadd.xlane.f32.xlu0 %v280_v9  ;;  %v622_v9 = vld [vmem:[#allocation9 + $0x98] sm:$0xff] }
 0x25c   :  { %v282_v18 = vpop.xlane.xlu0 %281 }
 0x25d   :  { %v283_v19 = vmul.f32 0.0625, %v282_v18  ;;  %v3970_v18 = vpack.c.bf16 %v626_v16, %v624_v15  ;;  %v791_v15 = vld [vmem:[#allocation12 + $0x60] sm:$0xff]  ;;  %v793_v16 = vld [vmem:[#allocation12 + $0x70] sm:$0xff] }
 0x25f   :  { %v284_v20 = vadd.f32 1e-05, %v283_v19  ;;  %v623_v19 = vld [vmem:[#allocation9 + $0xa0] sm:$0xff] }
 0x261   :  { %4732 = vrsqrt.f32 %v284_v20  ;;  %vm287_vm2 = vcmp.eq.f32.partialorder %v284_v20, inf  ;;  %v290_v29 = vand.u32 2147483648, %v284_v20  ;;  %vm289_vm3 = vcmp.eq.f32.partialorder %v284_v20, 0.0 }
 0x26b   :  { %v4733_v22 = vpop.eup %4732 }
 0x26c   :  { %v293_v23 = vmul.f32 %v4733_v22, %v278_v7  ;;  %v286_v26 = vmul.f32 %v4733_v22, %v284_v20  ;;  %v617_v7 = vld [vmem:[#allocation9 + $0x70] sm:$0xff]  ;;  %v630_v22 = vld [vmem:[#allocation9 + $0xd8] sm:$0xff] }
 0x26d   :  { %v3964_v10 = vpack.c.bf16 %v617_v7, %v615_v5  ;;  %v3992_v5 = vpack.c.bf16 %v785_v2, %v783_v1  ;;  %v571_v1 = vld [vmem:[%s6244_s16 + $0x20] sm:$0xff]  ;;  %v573_v2 = vld [vmem:[%s6244_s16 + $0x30] sm:$0xff] }
 0x26e   :  { %v300_v30 = vmul.f32 %v298_v21, %v293_v23  ;;  %v288_v31 = vsel %vm287_vm2, %v284_v20, %v286_v26  ;;  %v625_v20 = vld [vmem:[#allocation9 + $0xb0] sm:$0xff]  ;;  %v628_v21 = vld [vmem:[#allocation9 + $0xc8] sm:$0xff]  ;;  %vm3197_vm2 = vcmask 654336  }
 0x26f   :  { %v5589_v34 = vsel %vm289_vm3, %v290_v29, %v288_v31  ;;  %v3972_v23 = vpack.c.bf16 %v625_v20, %v623_v19  ;;  %v3974_v24 = vpack.c.bf16 %v630_v22, %v628_v21  ;;  %v629_v26 = vld [vmem:[#allocation9 + $0xd0] sm:$0xff]  ;;  %v631_v31 = vld [vmem:[#allocation9 + $0xe0] sm:$0xff]  ;;  %v4000_v19 = vpack.c.bf16 %v793_v16, %v791_v15 }
 0x270   :  { %v307_v35 = vadd.f32 %v5587_v32, %v300_v30  ;;  %v3976_v29 = vpack.c.bf16 %v629_v26, %v627_v25  ;;  %v3978_v30 = vpack.c.bf16 %v634_v28, %v632_v27  ;;  %v795_v21 = vld [vmem:[#allocation12 + $0x80] sm:$0xff]  ;;  %v797_v22 = vld [vmem:[#allocation12 + $0x90] sm:$0xff]  ;;  %vm3428_vm3 = vcmask 785408  }
 0x271   :  { %v4004_v25 = vpack.c.bf16 %v797_v22, %v795_v21  ;;  %v799_v27 = vld [vmem:[#allocation12 + $0xa0] sm:$0xff]  ;;  %v801_v28 = vld [vmem:[#allocation12 + $0xb0] sm:$0xff] }
 0x272   :  { %3851 = vmatmul.mubr.msk.f32.vlgmr.msra.gmra.mrb[0].mxu0 %vm272_vm0, %v307_v35  ;;  %v579_v15 = vld [vmem:[%s6244_s16 + $0x60] sm:$0xff]  ;;  %v581_v16 = vld [vmem:[%s6244_s16 + $0x70] sm:$0xff] }
 0x273   :  { %3942 = vmatpush1.bf16.msra.mxu0 %v3941_v33  ;;  %478 = vmatprep.mubr.f32.mxu0 %v5188_v14  ;;  %v633_v33 = vld [vmem:[#allocation9 + $0xf0] sm:$0xff]  ;;  %v583_v21 = vld [vmem:[%s6244_s16 + $0x80] sm:$0xff] }
 0x274   :  { %3944 = vmatprep.subr.bf16.mxu0 %v3943_v36  ;;  %v3980_v35 = vpack.c.bf16 %v633_v33, %v631_v31  ;;  %v636_v36 = vld [vmem:[#allocation9 + $0x108] sm:$0xff]  ;;  %v4008_v31 = vpack.c.bf16 %v801_v28, %v799_v27  ;;  %v587_v27 = vld [vmem:[%s6244_s16 + $0xa0] sm:$0xff] }
 0x275   :  { %v3982_v38 = vpack.c.bf16 %v638_v37, %v636_v36  ;;  %v805_v36 = vld [vmem:[#allocation12 + $0xd0] sm:$0xff]  ;;  %v808_v37 = vld [vmem:[#allocation12 + $0xe8] sm:$0xff]  ;;  %v585_v22 = vld [vmem:[%s6244_s16 + $0x90] sm:$0xff] }
 0x276   :  { %v589_v28 = vld [vmem:[%s6244_s16 + $0xb0] sm:$0xff] }
 0x277   :  { %3946 = vmatpush1.bf16.msra.mxu0 %v3945_v39  ;;  %v635_v39 = vld [vmem:[#allocation9 + $0x100] sm:$0xff] }
 0x278   :  { %3947 = vmatprep.subr.bf16.mxu0 %v5186_v13  ;;  %v3984_v41 = vpack.c.bf16 %v637_v40, %v635_v39 }
 0x345   :  { %v386_v45 = vpop.f32.mrb[0].mxu0 }
 0x346   :  { %v387_v47 = vadd.f32 %v3757_v42, %v386_v45  ;;  %v3852_v48 = vpop.f32.mrb[1].mxu0  ;;  %v400_v42 = vlaneseq  ;;  %v398_v45 = vld [vmem:[#allocation4] sm:$0x3] }
 0x348   :  { %3759 = vmatmul.mubr.msk.f32.vlgmr.msra.gmra.mrb[2].mxu0 %vm410_vm4, %v387_v47  ;;  %v401_v43 = vshrl.u32 %v400_v42, 7  ;;  %v809_v42 = vld [vmem:[#allocation12 + $0xf0] sm:$0xff]  ;;  %vm3530_vm4 = vcmask 523264  }
 0x349   :  { %3949 = vmatpush3.bf16.msra.mxu0 %v3948_v46  ;;  %3857 = vmatprep.mubr.msk.f32.mxu0 %vm5187_vm1, %v5188_v14 }
 0x34a   :  { %3951 = vmatprep.subr.bf16.mxu0 %v3950_v49  ;;  %v5605_v44 = vsub.s32 1, %v401_v43  ;;  %v5607_v46 = vsub.s32 0, %v401_v43  ;;  %v812_v43 = vld [vmem:[#allocation12 + $0x108] sm:$0xff] }
 0x34c   :  { %3858 = vmatmul.mubr.msk.f32.vlgmr.msra.gmra.mrb[4].mxu0 %vm272_vm0, %v5545_v0  ;;  %v3966_v0 = vpack.c.bf16 %v622_v9, %v620_v8  ;;  %v407_v47 = vrot.slane %v398_v45, %v5605_v44  ;;  %v403_v48 = vrot.slane %v398_v45, %v5607_v46  ;;  %v787_v8 = vld [vmem:[#allocation12 + $0x40] sm:$0xff]  ;;  %v789_v9 = vld [vmem:[#allocation12 + $0x50] sm:$0xff]  ;;  %v814_v45 = vld [vmem:[#allocation12 + $0x118] sm:$0xff] }
 0x34d   :  { %3953 = vmatpush1.bf16.msra.mxu0 %v3952_v54  ;;  %v3996_v11 = vpack.c.bf16 %v789_v9, %v787_v8  ;;  %v575_v8 = vld [vmem:[%s6244_s16 + $0x40] sm:$0xff]  ;;  %v577_v9 = vld [vmem:[%s6244_s16 + $0x50] sm:$0xff] }
 0x34e   :  { %3955 = vmatprep.subr.bf16.mxu0 %v3954_v55  ;;  %v780_v55 = vld [vmem:[#allocation12 + $0x8] sm:$0xff] }
 0x34f   :  { %v3986_v58 = vpack.c.bf16 %v782_v56, %v780_v55  ;;  %v568_v55 = vld [vmem:[%s6244_s16 + $0x8] sm:$0xff]  ;;  %v570_v56 = vld [vmem:[%s6244_s16 + $0x18] sm:$0xff] }
 0x351   :  { %3957 = vmatpush1.bf16.msra.mxu0 %v3956_v60  ;;  %v784_v60 = vld [vmem:[#allocation12 + $0x28] sm:$0xff]  ;;  %3987 = vmatprep.subr.bf16.mxu1 %v3986_v58  ;;  %v5629_v58 = vpack.c.bf16 %v570_v56, %v568_v55 }
 0x352   :  { %3959 = vmatprep.subr.bf16.mxu0 %v3958_v61  ;;  %v786_v61 = vld [vmem:[#allocation12 + $0x38] sm:$0xff]  ;;  %3989 = vmatpush1.bf16.msra.mxu1 %v3988_v62  ;;  %v5640_v62 = vpack.c.bf16 %v569_v59, %v567_v57 }
 0x353   :  { %v3990_v63 = vpack.c.bf16 %v786_v61, %v784_v60  ;;  %v572_v60 = vld [vmem:[%s6244_s16 + $0x28] sm:$0xff]  ;;  %v574_v61 = vld [vmem:[%s6244_s16 + $0x38] sm:$0xff] }
 0x355   :  { %3961 = vmatpush1.bf16.msra.mxu0 %v3960_v3  ;;  %v788_v3 = vld [vmem:[#allocation12 + $0x48] sm:$0xff]  ;;  %3991 = vmatprep.subr.bf16.mxu1 %v3990_v63  ;;  %v5642_v63 = vpack.c.bf16 %v574_v61, %v572_v60 }
 0x356   :  { %3963 = vmatprep.subr.bf16.mxu0 %v3962_v4  ;;  %v790_v4 = vld [vmem:[#allocation12 + $0x58] sm:$0xff]  ;;  %3993 = vmatpush1.bf16.msra.mxu1 %v3992_v5  ;;  %v5658_v5 = vpack.c.bf16 %v573_v2, %v571_v1 }
 0x357   :  { %v3994_v7 = vpack.c.bf16 %v790_v4, %v788_v3  ;;  %v576_v3 = vld [vmem:[%s6244_s16 + $0x48] sm:$0xff]  ;;  %v578_v4 = vld [vmem:[%s6244_s16 + $0x58] sm:$0xff] }
 0x359   :  { %3965 = vmatpush1.bf16.msra.mxu0 %v3964_v10  ;;  %v792_v10 = vld [vmem:[#allocation12 + $0x68] sm:$0xff]  ;;  %3995 = vmatprep.subr.bf16.mxu1 %v3994_v7  ;;  %v5661_v7 = vpack.c.bf16 %v578_v4, %v576_v3 }
 0x35a   :  { %3967 = vmatprep.subr.bf16.mxu0 %v3966_v0  ;;  %v794_v0 = vld [vmem:[#allocation12 + $0x78] sm:$0xff]  ;;  %3997 = vmatpush1.bf16.msra.mxu1 %v3996_v11  ;;  %v5676_v11 = vpack.c.bf16 %v577_v9, %v575_v8 }
 0x35b   :  { %v3998_v12 = vpack.c.bf16 %v794_v0, %v792_v10  ;;  %v580_v10 = vld [vmem:[%s6244_s16 + $0x68] sm:$0xff]  ;;  %v582_v0 = vld [vmem:[%s6244_s16 + $0x78] sm:$0xff] }
 0x35d   :  { %3969 = vmatpush1.bf16.msra.mxu0 %v3968_v17  ;;  %v796_v17 = vld [vmem:[#allocation12 + $0x88] sm:$0xff]  ;;  %3999 = vmatprep.subr.bf16.mxu1 %v3998_v12  ;;  %v5679_v12 = vpack.c.bf16 %v582_v0, %v580_v10 }
 0x35e   :  { %3971 = vmatprep.subr.bf16.mxu0 %v3970_v18  ;;  %v798_v18 = vld [vmem:[#allocation12 + $0x98] sm:$0xff]  ;;  %4001 = vmatpush1.bf16.msra.mxu1 %v4000_v19  ;;  %v5694_v19 = vpack.c.bf16 %v581_v16, %v579_v15 }
 0x35f   :  { %v4002_v20 = vpack.c.bf16 %v798_v18, %v796_v17  ;;  %v584_v17 = vld [vmem:[%s6244_s16 + $0x88] sm:$0xff]  ;;  %v586_v18 = vld [vmem:[%s6244_s16 + $0x98] sm:$0xff] }
 0x361   :  { %3973 = vmatpush1.bf16.msra.mxu0 %v3972_v23  ;;  %v800_v23 = vld [vmem:[#allocation12 + $0xa8] sm:$0xff]  ;;  %4003 = vmatprep.subr.bf16.mxu1 %v4002_v20  ;;  %v5697_v20 = vpack.c.bf16 %v586_v18, %v584_v17 }
 0x362   :  { %3975 = vmatprep.subr.bf16.mxu0 %v3974_v24  ;;  %v802_v24 = vld [vmem:[#allocation12 + $0xb8] sm:$0xff]  ;;  %4005 = vmatpush1.bf16.msra.mxu1 %v4004_v25  ;;  %v5712_v25 = vpack.c.bf16 %v585_v22, %v583_v21 }
 0x363   :  { %v4006_v26 = vpack.c.bf16 %v802_v24, %v800_v23  ;;  %v588_v23 = vld [vmem:[%s6244_s16 + $0xa8] sm:$0xff]  ;;  %v590_v24 = vld [vmem:[%s6244_s16 + $0xb8] sm:$0xff] }
 0x365   :  { %3977 = vmatpush1.bf16.msra.mxu0 %v3976_v29  ;;  %v804_v29 = vld [vmem:[#allocation12 + $0xc8] sm:$0xff]  ;;  %4007 = vmatprep.subr.bf16.mxu1 %v4006_v26  ;;  %v5715_v26 = vpack.c.bf16 %v590_v24, %v588_v23 }
 0x366   :  { %3979 = vmatprep.subr.bf16.mxu0 %v3978_v30  ;;  %v806_v30 = vld [vmem:[#allocation12 + $0xd8] sm:$0xff]  ;;  %4009 = vmatpush1.bf16.msra.mxu1 %v4008_v31  ;;  %v5730_v31 = vpack.c.bf16 %v589_v28, %v587_v27 }
 0x367   :  { %v4010_v33 = vpack.c.bf16 %v806_v30, %v804_v29  ;;  %v592_v29 = vld [vmem:[%s6244_s16 + $0xc8] sm:$0xff]  ;;  %v594_v30 = vld [vmem:[%s6244_s16 + $0xd8] sm:$0xff] }
 0x369   :  { %3981 = vmatpush1.bf16.msra.mxu0 %v3980_v35  ;;  %v803_v35 = vld [vmem:[#allocation12 + $0xc0] sm:$0xff]  ;;  %4011 = vmatprep.subr.bf16.mxu1 %v4010_v33  ;;  %v5733_v33 = vpack.c.bf16 %v594_v30, %v592_v29 }
 0x36a   :  { %3983 = vmatprep.subr.bf16.mxu0 %v3982_v38  ;;  %v810_v38 = vld [vmem:[#allocation12 + $0xf8] sm:$0xff]  ;;  %v4012_v39 = vpack.c.bf16 %v805_v36, %v803_v35  ;;  %v591_v35 = vld [vmem:[%s6244_s16 + $0xc0] sm:$0xff] }
 0x36b   :  { %v4014_v40 = vpack.c.bf16 %v810_v38, %v808_v37  ;;  %v593_v36 = vld [vmem:[%s6244_s16 + $0xd0] sm:$0xff]  ;;  %v596_v37 = vld [vmem:[%s6244_s16 + $0xe8] sm:$0xff]  ;;  %v598_v38 = vld [vmem:[%s6244_s16 + $0xf8] sm:$0xff] }
 0x36c   :  { %4013 = vmatpush1.bf16.msra.mxu1 %v4012_v39  ;;  %v5748_v39 = vpack.c.bf16 %v593_v36, %v591_v35 }
 0x36d   :  { %3985 = vmatpush1.bf16.msra.mxu0 %v3984_v41  ;;  %v807_v41 = vld [vmem:[#allocation12 + $0xe0] sm:$0xff]  ;;  %4015 = vmatprep.subr.bf16.mxu1 %v4014_v40  ;;  %v5751_v40 = vpack.c.bf16 %v598_v38, %v596_v37 }
 0x36e   :  { %4023 = vmatprep.subr.bf16.mxu0 %v5629_v58 }
 0x41b   :  { %v480_v49 = vpop.f32.mrb[2].mxu0 }
 0x41c   :  { %v482_v50 = vpop.f32.mrb[3].mxu0  ;;  %v5613_v52 = vadd.f32 %v480_v49, %v403_v48  ;;  %v4018_v48 = vpack.c.bf16 %v814_v45, %v812_v43  ;;  %v811_v49 = vld [vmem:[#allocation12 + $0x100] sm:$0xff] }
 0x41d   :  { %v5611_v51 = vadd.f32 %v482_v50, %v407_v47  ;;  %v4016_v47 = vpack.c.bf16 %v809_v42, %v807_v41  ;;  %v813_v50 = vld [vmem:[#allocation12 + $0x110] sm:$0xff] }
 0x41e   :  { %v639_v41 = vld [vmem:[#allocation10] sm:$0x3] }
 0x41f   :  { %3762 = vmatprep.mubr.msk.f32.mxu0 %vm272_vm0, %v5611_v51  ;;  %v5617_v53 = vpop.f32.mrb[4].mxu0  ;;  %4017 = vmatpush1.bf16.msra.mxu1 %v4016_v47  ;;  %v644_v42 = vrot.slane %v639_v41, %v5607_v46  ;;  %v648_v43 = vrot.slane %v639_v41, %v5605_v44 }
 0x420   :  { %719 = vmatmul.mubr.f32.vlgmr.msra.gmra.mrb[6].mxu0 %v5613_v52  ;;  %v3859_v54 = vpop.f32.mrb[5].mxu0  ;;  %4019 = vmatprep.subr.bf16.mxu1 %v4018_v48 }
 0x421   :  { %v4020_v54 = vpack.c.bf16 %v813_v50, %v811_v49  ;;  %4025 = vmatpush1.bf16.msra.mxu0 %v5640_v62 }
 0x422   :  { %4027 = vmatprep.subr.bf16.mxu0 %v5642_v63 }
 0x423   :  { %4021 = vmatpush1.bf16.msra.mxu1 %v4020_v54 }
 0x425   :  { %4029 = vmatpush1.bf16.msra.mxu0 %v5658_v5 }
 0x426   :  { %4031 = vmatprep.subr.bf16.mxu0 %v5661_v7 }
 0x429   :  { %4033 = vmatpush1.bf16.msra.mxu0 %v5676_v11 }
 0x42a   :  { %4035 = vmatprep.subr.bf16.mxu0 %v5679_v12 }
 0x42d   :  { %4037 = vmatpush1.bf16.msra.mxu0 %v5694_v19 }
 0x42e   :  { %4039 = vmatprep.subr.bf16.mxu0 %v5697_v20 }
 0x431   :  { %4041 = vmatpush1.bf16.msra.mxu0 %v5712_v25 }
 0x432   :  { %4043 = vmatprep.subr.bf16.mxu0 %v5715_v26 }
 0x435   :  { %4045 = vmatpush1.bf16.msra.mxu0 %v5730_v31 }
 0x436   :  { %4047 = vmatprep.subr.bf16.mxu0 %v5733_v33 }
 0x439   :  { %4049 = vmatpush1.bf16.msra.mxu0 %v5748_v39 }
 0x43a   :  { %4051 = vmatprep.subr.bf16.mxu0 %v5751_v40 }
 0x4f3   :  { %v720_v45 = vpop.f32.mrb[6].mxu0 }
 0x4f4   :  { %v721_v47 = vadd.f32 %v720_v45, %v644_v42  ;;  %v722_v48 = vpop.f32.mrb[7].mxu0 }
 0x4f5   :  { %v723_v49 = vadd.f32 %v722_v48, %v648_v43 }
 0x4f6   :  { %v727_v50 = vmul.f32 0.70710677, %v721_v47 }
 0x4f7   :  { %v728_v54 = vmul.f32 0.70710677, %v723_v49 }
 0x4f8   :  { %v729_v55 = vand.u32 2147483647, %v727_v50  ;;  %vm769_vm5 = vcmp.ge.f32.partialorder %v727_v50, 0.0  ;;  %v597_v50 = vld [vmem:[%s6244_s16 + $0xf0] sm:$0xff] }
 0x4f9   :  { %v730_v56 = vand.u32 2147483647, %v728_v54  ;;  %vm770_vm6 = vcmp.ge.f32.partialorder %v728_v54, 0.0 }
 0x4fa   :  { %v731_v57 = vmul.f32 0.3275911, %v729_v55  ;;  %v757_v1 = vsub.f32 0.0, %v729_v55 }
 0x4fb   :  { %v732_v59 = vmul.f32 0.3275911, %v730_v56  ;;  %v758_v2 = vsub.f32 0.0, %v730_v56 }
 0x4fc   :  { %v733_v60 = vadd.f32 1.0, %v731_v57  ;;  %v759_v4 = vmul.f32 %v757_v1, %v729_v55 }
 0x4fd   :  { %v734_v61 = vadd.f32 1.0, %v732_v59  ;;  %v760_v9 = vmul.f32 %v758_v2, %v730_v56 }
 0x4fe   :  { %4734 = vrcp.f32 %v733_v60  ;;  %v761_v16 = vmul.f32 1.442695, %v759_v4  ;;  %v726_v4 = vmul.f32 0.5, %v723_v49  ;;  %v602_v49 = vld [vmem:[%s6244_s16 + $0x118] sm:$0xff] }
 0x4ff   :  { %4736 = vrcp.f32 %v734_v61  ;;  %v763_v18 = vmul.f32 1.442695, %v760_v9 }
 0x500   :  { %4738 = vpow2.f32 %v761_v16  ;;  %v599_v16 = vld [vmem:[%s6244_s16 + $0x100] sm:$0xff] }
 0x501   :  { %4740 = vpow2.f32 %v763_v18 }
 0x508   :  { %v4735_v3 = vpop.eup %4734 }
 0x509   :  { %v4737_v8 = vpop.eup %4736  ;;  %v739_v10 = vmul.f32 1.0614054, %v4735_v3 }
 0x50a   :  { %v740_v0 = vmul.f32 1.0614054, %v4737_v8  ;;  %v4739_v42 = vpop.eup %4738 }
 0x50b   :  { %v741_v15 = vadd.f32 -1.4531521, %v739_v10  ;;  %v4741_v45 = vpop.eup %4740  ;;  %v725_v10 = vmul.f32 0.5, %v721_v47  ;;  %v600_v47 = vld [vmem:[%s6244_s16 + $0x108] sm:$0xff] }
 0x50c   :  { %v742_v17 = vadd.f32 -1.4531521, %v740_v0 }
 0x50d   :  { %v743_v21 = vmul.f32 %v4735_v3, %v741_v15 }
 0x50e   :  { %v744_v22 = vmul.f32 %v4737_v8, %v742_v17  ;;  %v601_v17 = vld [vmem:[%s6244_s16 + $0x110] sm:$0xff] }
 0x50f   :  { %v745_v23 = vadd.f32 1.4214138, %v743_v21  ;;  %v5781_v18 = vpack.c.bf16 %v601_v17, %v599_v16  ;;  %v1030_v21 = vld [vmem:[#allocation9 + $0x128] sm:$0xff]  ;;  %v1048_v16 = vld [vmem:[#allocation9 + $0x1b8] sm:$0xff] }
 0x510   :  { %v746_v24 = vadd.f32 1.4214138, %v744_v22  ;;  %v1032_v22 = vld [vmem:[#allocation9 + $0x138] sm:$0xff] }
 0x511   :  { %v747_v27 = vmul.f32 %v4735_v3, %v745_v23  ;;  %v1029_v23 = vld [vmem:[#allocation9 + $0x120] sm:$0xff] }
 0x512   :  { %v748_v28 = vmul.f32 %v4737_v8, %v746_v24  ;;  %v4058_v24 = vpack.c.bf16 %v1032_v22, %v1030_v21  ;;  %v1045_v21 = vld [vmem:[#allocation9 + $0x1a0] sm:$0xff]  ;;  %v1047_v22 = vld [vmem:[#allocation9 + $0x1b0] sm:$0xff] }
 0x513   :  { %v749_v29 = vadd.f32 -0.28449672, %v747_v27  ;;  %v1031_v27 = vld [vmem:[#allocation9 + $0x130] sm:$0xff] }
 0x514   :  { %v750_v30 = vadd.f32 -0.28449672, %v748_v28  ;;  %v1034_v28 = vld [vmem:[#allocation9 + $0x148] sm:$0xff]  ;;  %4059 = vmatprep.subr.bf16.mxu1 %v4058_v24 }
 0x515   :  { %v751_v35 = vmul.f32 %v4735_v3, %v749_v29  ;;  %v1036_v29 = vld [vmem:[#allocation9 + $0x158] sm:$0xff]  ;;  %v1050_v24 = vld [vmem:[#allocation9 + $0x1c8] sm:$0xff] }
 0x516   :  { %v752_v36 = vmul.f32 %v4737_v8, %v750_v30  ;;  %v4060_v30 = vpack.c.bf16 %v1031_v27, %v1029_v23  ;;  %v4076_v23 = vpack.c.bf16 %v1047_v22, %v1045_v21  ;;  %v1052_v27 = vld [vmem:[#allocation9 + $0x1d8] sm:$0xff] }
 0x517   :  { %v753_v37 = vadd.f32 0.2548296, %v751_v35  ;;  %v4062_v35 = vpack.c.bf16 %v1036_v29, %v1034_v28  ;;  %v4078_v28 = vpack.c.bf16 %v1052_v27, %v1050_v24  ;;  %v1049_v29 = vld [vmem:[#allocation9 + $0x1c0] sm:$0xff]  ;;  %v903_v22 = vld [vmem:[#allocation15] sm:$0x3] }
 0x518   :  { %v754_v38 = vadd.f32 0.2548296, %v752_v36  ;;  %v1033_v36 = vld [vmem:[#allocation9 + $0x140] sm:$0xff]  ;;  %v1006_v27 = vrot.slane %v903_v22, %v5607_v46 }
 0x519   :  { %v755_v41 = vmul.f32 %v4735_v3, %v753_v37  ;;  %v595_v3 = vld [vmem:[%s6244_s16 + $0xe0] sm:$0xff]  ;;  %v1035_v37 = vld [vmem:[#allocation9 + $0x150] sm:$0xff]  ;;  %v904_v24 = vld [vmem:[#allocation16] sm:$0x3] }
 0x51a   :  { %v756_v43 = vmul.f32 %v4737_v8, %v754_v38  ;;  %v5764_v54 = vpack.c.bf16 %v597_v50, %v595_v3  ;;  %v5773_v8 = vpack.c.bf16 %v602_v49, %v600_v47  ;;  %v4064_v38 = vpack.c.bf16 %v1035_v37, %v1033_v36  ;;  %v1041_v3 = vld [vmem:[#allocation9 + $0x180] sm:$0xff]  ;;  %v1043_v50 = vld [vmem:[#allocation9 + $0x190] sm:$0xff]  ;;  %v1046_v49 = vld [vmem:[#allocation9 + $0x1a8] sm:$0xff] }
 0x51b   :  { %v765_v48 = vmul.f32 %v4739_v42, %v755_v41  ;;  %v815_v41 = vld [vmem:[#allocation13] sm:$0x3]  ;;  %v4072_v47 = vpack.c.bf16 %v1043_v50, %v1041_v3  ;;  %v4074_v17 = vpack.c.bf16 %v1048_v16, %v1046_v49  ;;  %v1056_v37 = vld [vmem:[#allocation9 + $0x1f8] sm:$0xff] }
 0x51c   :  { %v766_v55 = vmul.f32 %v4741_v45, %v756_v43  ;;  %4053 = vmatpush1.bf16.msra.mxu0 %v5764_v54  ;;  %v820_v42 = vrot.slane %v815_v41, %v5607_v46  ;;  %v824_v43 = vrot.slane %v815_v41, %v5605_v44  ;;  %v1055_v41 = vld [vmem:[#allocation9 + $0x1f0] sm:$0xff] }
 0x51d   :  { %v767_v56 = vsub.f32 1.0, %v765_v48  ;;  %4055 = vmatprep.subr.bf16.mxu0 %v5773_v8 }
 0x51e   :  { %v768_v57 = vsub.f32 1.0, %v766_v55 }
 0x51f   :  { %v771_v59 = vsub.f32 0.0, %v767_v56 }
 0x520   :  { %v772_v60 = vsub.f32 0.0, %v768_v57  ;;  %4057 = vmatpush1.bf16.msra.mxu0 %v5781_v18 }
 0x521   :  { %v773_v61 = vsel %vm769_vm5, %v767_v56, %v771_v59 }
 0x522   :  { %v774_v1 = vsel %vm770_vm6, %v768_v57, %v772_v60  ;;  %v775_v2 = vadd.f32 1.0, %v773_v61 }
 0x523   :  { %v776_v9 = vadd.f32 1.0, %v774_v1  ;;  %v1038_v1 = vld [vmem:[#allocation9 + $0x168] sm:$0xff] }
 0x524   :  { %v777_v15 = vmul.f32 %v775_v2, %v725_v10  ;;  %v1042_v10 = vld [vmem:[#allocation9 + $0x188] sm:$0xff] }
 0x525   :  { %v778_v0 = vmul.f32 %v776_v9, %v726_v4  ;;  %v1037_v4 = vld [vmem:[#allocation9 + $0x160] sm:$0xff] }
 0x527   :  { %3763 = vmatprep.mubr.msk.f32.mxu1 %vm272_vm0, %v778_v0  ;;  %v1044_v0 = vld [vmem:[#allocation9 + $0x198] sm:$0xff] }
 0x528   :  { %895 = vmatmul.mubr.f32.vlgmr.msra.gmra.mrb[0].mxu1 %v777_v15  ;;  %v4070_v15 = vpack.c.bf16 %v1044_v0, %v1042_v10 }
 0x529   :  { %4061 = vmatpush1.bf16.msra.mxu1 %v4060_v30  ;;  %v1051_v30 = vld [vmem:[#allocation9 + $0x1d0] sm:$0xff] }
 0x52a   :  { %4063 = vmatprep.subr.bf16.mxu1 %v4062_v35  ;;  %v1054_v35 = vld [vmem:[#allocation9 + $0x1e8] sm:$0xff]  ;;  %v4080_v36 = vpack.c.bf16 %v1051_v30, %v1049_v29  ;;  %v1010_v30 = vrot.slane %v903_v22, %v5605_v44  ;;  %v1221_v22 = vld [vmem:[#allocation12 + $0x190] sm:$0xff] }
 0x52d   :  { %4065 = vmatpush1.bf16.msra.mxu1 %v4064_v38  ;;  %v1053_v38 = vld [vmem:[#allocation9 + $0x1e0] sm:$0xff] }
 0x5fb   :  { %v896_v45 = vpop.f32.mrb[0].mxu1 }
 0x5fc   :  { %v897_v48 = vadd.f32 %v896_v45, %v820_v42  ;;  %v898_v55 = vpop.f32.mrb[1].mxu1  ;;  %v4082_v42 = vpack.c.bf16 %v1056_v37, %v1054_v35  ;;  %v1060_v45 = vld [vmem:[#allocation9 + $0x218] sm:$0xff] }
 0x5fd   :  { %v899_v56 = vadd.f32 %v898_v55, %v824_v43  ;;  %v1058_v43 = vld [vmem:[#allocation9 + $0x208] sm:$0xff] }
 0x5fe   :  { %v5791_v59 = vadd.f32 %v897_v48, %v5613_v52  ;;  %v1039_v52 = vld [vmem:[#allocation9 + $0x170] sm:$0xff]  ;;  %v4084_v48 = vpack.c.bf16 %v1055_v41, %v1053_v38  ;;  %v4086_v55 = vpack.c.bf16 %v1060_v45, %v1058_v43  ;;  %v1023_v38 = vrot.slane %v904_v24, %v5605_v44 }
 0x5ff   :  { %v5788_v57 = vadd.f32 %v899_v56, %v5611_v51  ;;  %v1040_v51 = vld [vmem:[#allocation9 + $0x178] sm:$0xff]  ;;  %v4068_v9 = vpack.c.bf16 %v1039_v52, %v1037_v4  ;;  %v1057_v56 = vld [vmem:[#allocation9 + $0x200] sm:$0xff]  ;;  %v1063_v52 = vld [vmem:[#allocation9 + $0x230] sm:$0xff] }
 0x600   :  { %v905_v61 = vmul.f32 %v5791_v59, %v5791_v59  ;;  %v4066_v2 = vpack.c.bf16 %v1040_v51, %v1038_v1  ;;  %v1064_v1 = vld [vmem:[#allocation9 + $0x238] sm:$0xff]  ;;  %v1061_v4 = vld [vmem:[#allocation9 + $0x220] sm:$0xff] }
 0x601   :  { %v906_v60 = vmul.f32 %v5788_v57, %v5788_v57  ;;  %3764 = vmatprep.mubr.msk.f32.mxu0 %vm272_vm0, %v5788_v57 }
 0x602   :  { %978 = vmatmul.mubr.f32.vlgmr.msra.gmra.mrb[8].mxu0 %v5791_v59  ;;  %4067 = vmatprep.subr.bf16.mxu1 %v4066_v2 }
 0x603   :  { %3765 = vmatprep.mubr.msk.f32.mxu0 %vm272_vm0, %v906_v60  ;;  %4069 = vmatpush1.bf16.msra.mxu1 %v4068_v9  ;;  %v1059_v60 = vld [vmem:[#allocation9 + $0x210] sm:$0xff]  ;;  %v4092_v9 = vpack.c.bf16 %v1063_v52, %v1061_v4  ;;  %v1213_v52 = vld [vmem:[#allocation12 + $0x150] sm:$0xff] }
 0x604   :  { %4071 = vmatprep.subr.bf16.mxu1 %v4070_v15  ;;  %v4088_v51 = vpack.c.bf16 %v1059_v60, %v1057_v56  ;;  %v1207_v56 = vld [vmem:[#allocation12 + $0x120] sm:$0xff]  ;;  %v1209_v60 = vld [vmem:[#allocation12 + $0x130] sm:$0xff] }
 0x605   :  { %v1211_v4 = vld [vmem:[#allocation12 + $0x140] sm:$0xff] }
 0x606   :  { %984 = vmatmul.mubr.f32.gmra.mrb[10].mxu0 %v905_v61  ;;  %v1062_v61 = vld [vmem:[#allocation9 + $0x228] sm:$0xff] }
 0x607   :  { %4073 = vmatpush1.bf16.msra.mxu1 %v4072_v47  ;;  %v4090_v2 = vpack.c.bf16 %v1064_v1, %v1062_v61  ;;  %v4096_v61 = vpack.c.bf16 %v1209_v60, %v1207_v56  ;;  %v1212_v1 = vld [vmem:[#allocation12 + $0x148] sm:$0xff]  ;;  %v1231_v56 = vld [vmem:[#allocation12 + $0x1e0] sm:$0xff]  ;;  %v1233_v60 = vld [vmem:[#allocation12 + $0x1f0] sm:$0xff] }
 0x608   :  { %4075 = vmatprep.subr.bf16.mxu1 %v4074_v17 }
 0x60b   :  { %4077 = vmatpush1.bf16.msra.mxu1 %v4076_v23 }
 0x60c   :  { %4079 = vmatprep.subr.bf16.mxu1 %v4078_v28 }
 0x60f   :  { %4081 = vmatpush1.bf16.msra.mxu1 %v4080_v36 }
 0x610   :  { %4083 = vmatprep.subr.bf16.mxu1 %v4082_v42  ;;  %v1019_v42 = vrot.slane %v904_v24, %v5607_v46  ;;  %v1224_v24 = vld [vmem:[#allocation12 + $0x1a8] sm:$0xff] }
 0x613   :  { %4085 = vmatpush1.bf16.msra.mxu1 %v4084_v48  ;;  %v1210_v48 = vld [vmem:[#allocation12 + $0x138] sm:$0xff] }
 0x614   :  { %4087 = vmatprep.subr.bf16.mxu1 %v4086_v55 }
 0x617   :  { %4089 = vmatpush1.bf16.msra.mxu1 %v4088_v51  ;;  %v1214_v51 = vld [vmem:[#allocation12 + $0x158] sm:$0xff] }
 0x618   :  { %4091 = vmatprep.subr.bf16.mxu1 %v4090_v2  ;;  %v4098_v2 = vpack.c.bf16 %v1214_v51, %v1212_v1  ;;  %v1236_v1 = vld [vmem:[#allocation12 + $0x208] sm:$0xff]  ;;  %v1238_v51 = vld [vmem:[#allocation12 + $0x218] sm:$0xff] }
 0x61b   :  { %4093 = vmatpush1.bf16.msra.mxu1 %v4092_v9  ;;  %v4100_v9 = vpack.c.bf16 %v1213_v52, %v1211_v4  ;;  %v1235_v4 = vld [vmem:[#allocation12 + $0x200] sm:$0xff]  ;;  %v1237_v52 = vld [vmem:[#allocation12 + $0x210] sm:$0xff] }
 0x61c   :  { %4131 = vmatprep.subr.bf16.mxu1 %v5629_v58 }
 0x6d5   :  { %v979_v10 = vpop.f32.mrb[8].mxu0 }
 0x6d6   :  { %v981_v0 = vpop.f32.mrb[9].mxu0  ;;  %v990_v15 = vmul.f32 %v979_v10, %v979_v10  ;;  %v994_v23 = vsub.f32 %v5791_v59, %v979_v10  ;;  %v1216_v10 = vld [vmem:[#allocation12 + $0x168] sm:$0xff] }
 0x6d7   :  { %v991_v3 = vmul.f32 %v981_v0, %v981_v0  ;;  %v995_v29 = vsub.f32 %v5788_v57, %v981_v0  ;;  %v1208_v57 = vld [vmem:[#allocation12 + $0x128] sm:$0xff]  ;;  %v1218_v0 = vld [vmem:[#allocation12 + $0x178] sm:$0xff] }
 0x6d8   :  { %v4094_v55 = vpack.c.bf16 %v1210_v48, %v1208_v57  ;;  %v1232_v57 = vld [vmem:[#allocation12 + $0x1e8] sm:$0xff]  ;;  %v1234_v48 = vld [vmem:[#allocation12 + $0x1f8] sm:$0xff] }
 0x6d9   :  { %v985_v50 = vpop.f32.mrb[10].mxu0 }
 0x6da   :  { %v992_v47 = vsub.f32 %v985_v50, %v990_v15  ;;  %v987_v49 = vpop.f32.mrb[11].mxu0  ;;  %4095 = vmatprep.subr.bf16.mxu0 %v4094_v55  ;;  %v4102_v15 = vpack.c.bf16 %v1218_v0, %v1216_v10  ;;  %v1217_v50 = vld [vmem:[#allocation12 + $0x170] sm:$0xff]  ;;  %v4118_v55 = vpack.c.bf16 %v1234_v48, %v1232_v57  ;;  %v1240_v10 = vld [vmem:[#allocation12 + $0x228] sm:$0xff]  ;;  %v1242_v0 = vld [vmem:[#allocation12 + $0x238] sm:$0xff] }
 0x6db   :  { %v993_v16 = vsub.f32 %v987_v49, %v991_v3  ;;  %4097 = vmatpush1.bf16.msra.mxu0 %v4096_v61  ;;  %v1215_v3 = vld [vmem:[#allocation12 + $0x160] sm:$0xff]  ;;  %v1220_v49 = vld [vmem:[#allocation12 + $0x188] sm:$0xff]  ;;  %v4120_v61 = vpack.c.bf16 %v1233_v60, %v1231_v56 }
 0x6dc   :  { %v996_v17 = vadd.f32 1e-05, %v992_v47  ;;  %4099 = vmatprep.subr.bf16.mxu0 %v4098_v2  ;;  %v4104_v47 = vpack.c.bf16 %v1217_v50, %v1215_v3  ;;  %v4122_v2 = vpack.c.bf16 %v1238_v51, %v1236_v1  ;;  %v1239_v3 = vld [vmem:[#allocation12 + $0x220] sm:$0xff]  ;;  %v1241_v50 = vld [vmem:[#allocation12 + $0x230] sm:$0xff] }
 0x6dd   :  { %v997_v21 = vadd.f32 1e-05, %v993_v16  ;;  %v1222_v16 = vld [vmem:[#allocation12 + $0x198] sm:$0xff] }
 0x6de   :  { %4742 = vrsqrt.f32 %v996_v17  ;;  %v4106_v17 = vpack.c.bf16 %v1222_v16, %v1220_v49  ;;  %v1066_v49 = vld [vmem:[#allocation10 + $0x2] sm:$0x3] }
 0x6df   :  { %4744 = vrsqrt.f32 %v997_v21  ;;  %4101 = vmatpush1.bf16.msra.mxu0 %v4100_v9  ;;  %v1219_v21 = vld [vmem:[#allocation12 + $0x180] sm:$0xff]  ;;  %v4124_v9 = vpack.c.bf16 %v1237_v52, %v1235_v4  ;;  %v1071_v16 = vrot.slane %v1066_v49, %v5607_v46 }
 0x6e0   :  { %4103 = vmatprep.subr.bf16.mxu0 %v4102_v15  ;;  %v4126_v15 = vpack.c.bf16 %v1242_v0, %v1240_v10 }
 0x6e3   :  { %4105 = vmatpush1.bf16.msra.mxu0 %v4104_v47  ;;  %v4128_v47 = vpack.c.bf16 %v1241_v50, %v1239_v3 }
 0x6e4   :  { %4107 = vmatprep.subr.bf16.mxu0 %v4106_v17  ;;  %v1075_v17 = vrot.slane %v1066_v49, %v5605_v44 }
 0x6e8   :  { %v4743_v28 = vpop.eup %4742 }
 0x6e9   :  { %v4745_v35 = vpop.eup %4744  ;;  %v1000_v36 = vmul.f32 %v4743_v28, %v994_v23  ;;  %v4108_v23 = vpack.c.bf16 %v1221_v22, %v1219_v21 }
 0x6ea   :  { %v1001_v37 = vmul.f32 %v4745_v35, %v995_v29  ;;  %v1223_v29 = vld [vmem:[#allocation12 + $0x1a0] sm:$0xff] }
 0x6eb   :  { %v1013_v41 = vmul.f32 %v1006_v27, %v1000_v36  ;;  %4109 = vmatpush1.bf16.msra.mxu0 %v4108_v23  ;;  %v1226_v27 = vld [vmem:[#allocation12 + $0x1b8] sm:$0xff]  ;;  %v1228_v36 = vld [vmem:[#allocation12 + $0x1c8] sm:$0xff] }
 0x6ec   :  { %v1014_v43 = vmul.f32 %v1010_v30, %v1001_v37  ;;  %v4110_v28 = vpack.c.bf16 %v1226_v27, %v1224_v24  ;;  %v1225_v30 = vld [vmem:[#allocation12 + $0x1b0] sm:$0xff]  ;;  %v1230_v37 = vld [vmem:[#allocation12 + $0x1d8] sm:$0xff] }
 0x6ed   :  { %v5810_v59 = vadd.f32 %v1019_v42, %v1013_v41  ;;  %v4112_v35 = vpack.c.bf16 %v1225_v30, %v1223_v29  ;;  %v1227_v41 = vld [vmem:[#allocation12 + $0x1c0] sm:$0xff]  ;;  %v1229_v42 = vld [vmem:[#allocation12 + $0x1d0] sm:$0xff] }
 0x6ee   :  { %v5808_v45 = vadd.f32 %v1023_v38, %v1014_v43  ;;  %4111 = vmatprep.subr.bf16.mxu0 %v4110_v28  ;;  %v4114_v38 = vpack.c.bf16 %v1230_v37, %v1228_v36  ;;  %v4116_v43 = vpack.c.bf16 %v1229_v42, %v1227_v41 }
 0x6ef   :  { %4113 = vmatpush1.bf16.msra.mxu0 %v4112_v35 }
 0x6f0   :  { %3766 = vmatprep.mubr.msk.f32.mxu1 %vm272_vm0, %v5808_v45  ;;  %4115 = vmatprep.subr.bf16.mxu0 %v4114_v38 }
 0x6f1   :  { %1146 = vmatmul.mubr.f32.vlgmr.msra.gmra.mrb[2].mxu1 %v5810_v59 }
 0x6f2   :  { %4133 = vmatpush1.bf16.msra.mxu1 %v5640_v62 }
 0x6f3   :  { %4135 = vmatprep.subr.bf16.mxu1 %v5642_v63  ;;  %4117 = vmatpush1.bf16.msra.mxu0 %v4116_v43 }
 0x6f4   :  { %4119 = vmatprep.subr.bf16.mxu0 %v4118_v55 }
 0x6f6   :  { %4137 = vmatpush1.bf16.msra.mxu1 %v5658_v5 }
 0x6f7   :  { %4139 = vmatprep.subr.bf16.mxu1 %v5661_v7  ;;  %4121 = vmatpush1.bf16.msra.mxu0 %v4120_v61 }
 0x6f8   :  { %4123 = vmatprep.subr.bf16.mxu0 %v4122_v2 }
 0x6fa   :  { %4141 = vmatpush1.bf16.msra.mxu1 %v5676_v11 }
 0x6fb   :  { %4143 = vmatprep.subr.bf16.mxu1 %v5679_v12  ;;  %4125 = vmatpush1.bf16.msra.mxu0 %v4124_v9 }
 0x6fc   :  { %4127 = vmatprep.subr.bf16.mxu0 %v4126_v15 }
 0x6fe   :  { %4145 = vmatpush1.bf16.msra.mxu1 %v5694_v19 }
 0x6ff   :  { %4147 = vmatprep.subr.bf16.mxu1 %v5697_v20  ;;  %4129 = vmatpush1.bf16.msra.mxu0 %v4128_v47 }
 0x702   :  { %4149 = vmatpush1.bf16.msra.mxu1 %v5712_v25 }
 0x703   :  { %4151 = vmatprep.subr.bf16.mxu1 %v5715_v26 }
 0x706   :  { %4153 = vmatpush1.bf16.msra.mxu1 %v5730_v31 }
 0x707   :  { %4155 = vmatprep.subr.bf16.mxu1 %v5733_v33 }
 0x70a   :  { %4157 = vmatpush1.bf16.msra.mxu1 %v5748_v39 }
 0x70b   :  { %4159 = vmatprep.subr.bf16.mxu1 %v5751_v40 }
 0x70e   :  { %4161 = vmatpush1.bf16.msra.mxu1 %v5764_v54 }
 0x70f   :  { %4163 = vmatprep.subr.bf16.mxu1 %v5773_v8 }
 0x712   :  { %4165 = vmatpush1.bf16.msra.mxu1 %v5781_v18 }
 0x7c4   :  { %v1147_v21 = vpop.f32.mrb[2].mxu1 }
 0x7c5   :  { %v1148_v22 = vadd.f32 %v1147_v21, %v1071_v16  ;;  %v1149_v23 = vpop.f32.mrb[3].mxu1 }
 0x7c6   :  { %v1150_v24 = vadd.f32 %v1149_v23, %v1075_v17 }
 0x7c7   :  { %v1154_v27 = vmul.f32 0.70710677, %v1148_v22 }
 0x7c8   :  { %v1155_v28 = vmul.f32 0.70710677, %v1150_v24 }
 0x7c9   :  { %v1156_v29 = vand.u32 2147483647, %v1154_v27  ;;  %vm1196_vm7 = vcmp.ge.f32.partialorder %v1154_v27, 0.0  ;;  %v1467_v27 = vld [vmem:[#allocation9 + $0x278] sm:$0xff] }
 0x7ca   :  { %v1157_v30 = vand.u32 2147483647, %v1155_v28  ;;  %vm1197_vm8 = vcmp.ge.f32.partialorder %v1155_v28, 0.0  ;;  %v1464_v28 = vld [vmem:[#allocation9 + $0x260] sm:$0xff] }
 0x7cb   :  { %v1158_v35 = vmul.f32 0.3275911, %v1156_v29  ;;  %v1184_v41 = vsub.f32 0.0, %v1156_v29 }
 0x7cc   :  { %v1159_v36 = vmul.f32 0.3275911, %v1157_v30  ;;  %v1185_v42 = vsub.f32 0.0, %v1157_v30 }
 0x7cd   :  { %v1160_v37 = vadd.f32 1.0, %v1158_v35  ;;  %v1186_v57 = vmul.f32 %v1184_v41, %v1156_v29 }
 0x7ce   :  { %v1161_v38 = vadd.f32 1.0, %v1159_v36  ;;  %v1187_v56 = vmul.f32 %v1185_v42, %v1157_v30 }
 0x7cf   :  { %4746 = vrcp.f32 %v1160_v37  ;;  %v1188_v1 = vmul.f32 1.442695, %v1186_v57 }
 0x7d0   :  { %4748 = vrcp.f32 %v1161_v38  ;;  %v1190_v4 = vmul.f32 1.442695, %v1187_v56 }
 0x7d1   :  { %4750 = vpow2.f32 %v1188_v1  ;;  %v1152_v1 = vmul.f32 0.5, %v1148_v22  ;;  %v1244_v22 = vld [vmem:[#allocation13 + $0x2] sm:$0x3] }
 0x7d2   :  { %4752 = vpow2.f32 %v1190_v4  ;;  %v1460_v4 = vld [vmem:[#allocation9 + $0x240] sm:$0xff] }
 0x7d9   :  { %v4747_v43 = vpop.eup %4746 }
 0x7da   :  { %v4749_v48 = vpop.eup %4748  ;;  %v1166_v55 = vmul.f32 1.0614054, %v4747_v43 }
 0x7db   :  { %v1167_v60 = vmul.f32 1.0614054, %v4749_v48  ;;  %v4751_v23 = vpop.eup %4750 }
 0x7dc   :  { %v1168_v61 = vadd.f32 -1.4531521, %v1166_v55  ;;  %v4753_v30 = vpop.eup %4752 }
 0x7dd   :  { %v1169_v51 = vadd.f32 -1.4531521, %v1167_v60  ;;  %v1153_v60 = vmul.f32 0.5, %v1150_v24 }
 0x7de   :  { %v1170_v2 = vmul.f32 %v4747_v43, %v1168_v61 }
 0x7df   :  { %v1171_v52 = vmul.f32 %v4749_v48, %v1169_v51 }
 0x7e0   :  { %v1172_v9 = vadd.f32 1.4214138, %v1170_v2 }
 0x7e1   :  { %v1173_v10 = vadd.f32 1.4214138, %v1171_v52 }
 0x7e2   :  { %v1174_v0 = vmul.f32 %v4747_v43, %v1172_v9  ;;  %v1462_v9 = vld [vmem:[#allocation9 + $0x250] sm:$0xff] }
 0x7e3   :  { %v1175_v15 = vmul.f32 %v4749_v48, %v1173_v10  ;;  %v1465_v10 = vld [vmem:[#allocation9 + $0x268] sm:$0xff] }
 0x7e4   :  { %v1176_v3 = vadd.f32 -0.28449672, %v1174_v0  ;;  %v4168_v0 = vpack.c.bf16 %v1462_v9, %v1460_v4  ;;  %v1483_v9 = vld [vmem:[#allocation9 + $0x2f8] sm:$0xff] }
 0x7e5   :  { %v1177_v50 = vadd.f32 -0.28449672, %v1175_v15  ;;  %v4170_v15 = vpack.c.bf16 %v1467_v27, %v1465_v10  ;;  %v1480_v27 = vld [vmem:[#allocation9 + $0x2e0] sm:$0xff] }
 0x7e6   :  { %v1178_v47 = vmul.f32 %v4747_v43, %v1176_v3  ;;  %v1466_v3 = vld [vmem:[#allocation9 + $0x270] sm:$0xff] }
 0x7e7   :  { %v1179_v49 = vmul.f32 %v4749_v48, %v1177_v50  ;;  %v4172_v24 = vpack.c.bf16 %v1466_v3, %v1464_v28  ;;  %v1249_v50 = vrot.slane %v1244_v22, %v5607_v46  ;;  %v1487_v3 = vld [vmem:[#allocation9 + $0x318] sm:$0xff] }
 0x7e8   :  { %v1180_v16 = vadd.f32 0.2548296, %v1178_v47  ;;  %v1253_v47 = vrot.slane %v1244_v22, %v5605_v44  ;;  %v1486_v22 = vld [vmem:[#allocation9 + $0x310] sm:$0xff] }
 0x7e9   :  { %v1181_v17 = vadd.f32 0.2548296, %v1179_v49 }
 0x7ea   :  { %v1182_v21 = vmul.f32 %v4747_v43, %v1180_v16  ;;  %v1461_v43 = vld [vmem:[#allocation9 + $0x248] sm:$0xff] }
 0x7eb   :  { %v1183_v29 = vmul.f32 %v4749_v48, %v1181_v17  ;;  %v1463_v48 = vld [vmem:[#allocation9 + $0x258] sm:$0xff] }
 0x7ec   :  { %v1192_v35 = vmul.f32 %v4751_v23, %v1182_v21  ;;  %v4166_v52 = vpack.c.bf16 %v1463_v48, %v1461_v43  ;;  %v1476_v43 = vld [vmem:[#allocation9 + $0x2c0] sm:$0xff]  ;;  %v1478_v48 = vld [vmem:[#allocation9 + $0x2d0] sm:$0xff] }
 0x7ed   :  { %v1193_v36 = vmul.f32 %v4753_v30, %v1183_v29  ;;  %v4184_v4 = vpack.c.bf16 %v1478_v48, %v1476_v43  ;;  %v1333_v48 = vld [vmem:[#allocation15 + $0x2] sm:$0x3] }
 0x7ee   :  { %v1194_v37 = vsub.f32 1.0, %v1192_v35  ;;  %4167 = vmatprep.subr.bf16.mxu0 %v4166_v52  ;;  %v1481_v52 = vld [vmem:[#allocation9 + $0x2e8] sm:$0xff] }
 0x7ef   :  { %v1195_v38 = vsub.f32 1.0, %v1193_v36  ;;  %v1469_v36 = vld [vmem:[#allocation9 + $0x288] sm:$0xff]  ;;  %v4186_v10 = vpack.c.bf16 %v1483_v9, %v1481_v52  ;;  %v1335_v52 = vld [vmem:[#allocation16 + $0x2] sm:$0x3]  ;;  %v1437_v9 = vrot.slane %v1333_v48, %v5607_v46 }
 0x7f0   :  { %v1198_v41 = vsub.f32 0.0, %v1194_v37 }
 0x7f1   :  { %v1199_v42 = vsub.f32 0.0, %v1195_v38 }
 0x7f2   :  { %v1200_v57 = vsel %vm1196_vm7, %v1194_v37, %v1198_v41 }
 0x7f3   :  { %v1202_v55 = vadd.f32 1.0, %v1200_v57  ;;  %v1201_v56 = vsel %vm1197_vm8, %v1195_v38, %v1199_v42  ;;  %v1468_v38 = vld [vmem:[#allocation9 + $0x280] sm:$0xff]  ;;  %v1473_v42 = vld [vmem:[#allocation9 + $0x2a8] sm:$0xff]  ;;  %v1475_v57 = vld [vmem:[#allocation9 + $0x2b8] sm:$0xff] }
 0x7f4   :  { %v1203_v61 = vadd.f32 1.0, %v1201_v56  ;;  %v1472_v56 = vld [vmem:[#allocation9 + $0x2a0] sm:$0xff] }
 0x7f5   :  { %v1204_v2 = vmul.f32 %v1202_v55, %v1152_v1  ;;  %v4178_v55 = vpack.c.bf16 %v1475_v57, %v1473_v42  ;;  %v1477_v1 = vld [vmem:[#allocation9 + $0x2c8] sm:$0xff] }
 0x7f6   :  { %v1205_v51 = vmul.f32 %v1203_v61, %v1153_v60  ;;  %v1474_v60 = vld [vmem:[#allocation9 + $0x2b0] sm:$0xff] }
 0x7f7   :  { %v4180_v61 = vpack.c.bf16 %v1474_v60, %v1472_v56 }
 0x7f8   :  { %3767 = vmatprep.mubr.msk.f32.mxu0 %vm272_vm0, %v1205_v51  ;;  %v1479_v51 = vld [vmem:[#allocation9 + $0x2d8] sm:$0xff] }
 0x7f9   :  { %1324 = vmatmul.mubr.f32.vlgmr.msra.gmra.mrb[12].mxu0 %v1204_v2  ;;  %v4182_v2 = vpack.c.bf16 %v1479_v51, %v1477_v1 }
 0x7fa   :  { %4169 = vmatpush1.bf16.msra.mxu0 %v4168_v0  ;;  %v1482_v0 = vld [vmem:[#allocation9 + $0x2f0] sm:$0xff] }
 0x7fb   :  { %4171 = vmatprep.subr.bf16.mxu0 %v4170_v15  ;;  %v1485_v15 = vld [vmem:[#allocation9 + $0x308] sm:$0xff]  ;;  %v4188_v28 = vpack.c.bf16 %v1482_v0, %v1480_v27  ;;  %v1441_v0 = vrot.slane %v1333_v48, %v5605_v44  ;;  %v1652_v48 = vld [vmem:[#allocation12 + $0x2b0] sm:$0xff] }
 0x7fe   :  { %4173 = vmatpush1.bf16.msra.mxu0 %v4172_v24  ;;  %v1484_v24 = vld [vmem:[#allocation9 + $0x300] sm:$0xff] }
 0x8cc   :  { %v1325_v49 = vpop.f32.mrb[12].mxu0 }
 0x8cd   :  { %v1326_v16 = vadd.f32 %v1325_v49, %v1249_v50  ;;  %v1327_v17 = vpop.f32.mrb[13].mxu0  ;;  %v4190_v50 = vpack.c.bf16 %v1487_v3, %v1485_v15  ;;  %v1491_v49 = vld [vmem:[#allocation9 + $0x338] sm:$0xff] }
 0x8ce   :  { %v1328_v21 = vadd.f32 %v1327_v17, %v1253_v47  ;;  %v1489_v47 = vld [vmem:[#allocation9 + $0x328] sm:$0xff] }
 0x8cf   :  { %v5841_v29 = vadd.f32 %v1326_v16, %v5810_v59  ;;  %v1470_v59 = vld [vmem:[#allocation9 + $0x290] sm:$0xff]  ;;  %v4192_v16 = vpack.c.bf16 %v1486_v22, %v1484_v24  ;;  %v4194_v17 = vpack.c.bf16 %v1491_v49, %v1489_v47  ;;  %v1454_v24 = vrot.slane %v1335_v52, %v5605_v44 }
 0x8d0   :  { %v5838_v23 = vadd.f32 %v1328_v21, %v5808_v45  ;;  %v1471_v45 = vld [vmem:[#allocation9 + $0x298] sm:$0xff]  ;;  %v4176_v41 = vpack.c.bf16 %v1470_v59, %v1468_v38  ;;  %v1488_v21 = vld [vmem:[#allocation9 + $0x320] sm:$0xff]  ;;  %v1494_v59 = vld [vmem:[#allocation9 + $0x350] sm:$0xff] }
 0x8d1   :  { %v1336_v35 = vmul.f32 %v5841_v29, %v5841_v29  ;;  %v4174_v37 = vpack.c.bf16 %v1471_v45, %v1469_v36  ;;  %v1495_v36 = vld [vmem:[#allocation9 + $0x358] sm:$0xff]  ;;  %v1492_v38 = vld [vmem:[#allocation9 + $0x340] sm:$0xff] }
 0x8d2   :  { %v1337_v30 = vmul.f32 %v5838_v23, %v5838_v23  ;;  %3768 = vmatprep.mubr.msk.f32.mxu1 %vm272_vm0, %v5838_v23 }
 0x8d3   :  { %1409 = vmatmul.mubr.f32.vlgmr.msra.gmra.mrb[4].mxu1 %v5841_v29  ;;  %4175 = vmatprep.subr.bf16.mxu0 %v4174_v37 }
 0x8d4   :  { %3769 = vmatprep.mubr.msk.f32.mxu1 %vm272_vm0, %v1337_v30  ;;  %4177 = vmatpush1.bf16.msra.mxu0 %v4176_v41  ;;  %v1490_v30 = vld [vmem:[#allocation9 + $0x330] sm:$0xff]  ;;  %v4200_v41 = vpack.c.bf16 %v1494_v59, %v1492_v38  ;;  %v1644_v59 = vld [vmem:[#allocation12 + $0x270] sm:$0xff] }
 0x8d5   :  { %4179 = vmatprep.subr.bf16.mxu0 %v4178_v55  ;;  %v4196_v45 = vpack.c.bf16 %v1490_v30, %v1488_v21  ;;  %v1638_v21 = vld [vmem:[#allocation12 + $0x240] sm:$0xff]  ;;  %v1640_v30 = vld [vmem:[#allocation12 + $0x250] sm:$0xff] }
 0x8d6   :  { %v1642_v38 = vld [vmem:[#allocation12 + $0x260] sm:$0xff] }
 0x8d7   :  { %1415 = vmatmul.mubr.f32.gmra.mrb[6].mxu1 %v1336_v35  ;;  %v1493_v35 = vld [vmem:[#allocation9 + $0x348] sm:$0xff] }
 0x8d8   :  { %4181 = vmatpush1.bf16.msra.mxu0 %v4180_v61  ;;  %v4198_v37 = vpack.c.bf16 %v1495_v36, %v1493_v35  ;;  %v4204_v35 = vpack.c.bf16 %v1640_v30, %v1638_v21  ;;  %v1643_v36 = vld [vmem:[#allocation12 + $0x268] sm:$0xff]  ;;  %v1662_v21 = vld [vmem:[#allocation12 + $0x300] sm:$0xff]  ;;  %v1664_v30 = vld [vmem:[#allocation12 + $0x310] sm:$0xff] }
 0x8d9   :  { %4183 = vmatprep.subr.bf16.mxu0 %v4182_v2 }
 0x8dc   :  { %4185 = vmatpush1.bf16.msra.mxu0 %v4184_v4 }
 0x8dd   :  { %4187 = vmatprep.subr.bf16.mxu0 %v4186_v10 }
 0x8e0   :  { %4189 = vmatpush1.bf16.msra.mxu0 %v4188_v28 }
 0x8e1   :  { %4191 = vmatprep.subr.bf16.mxu0 %v4190_v50  ;;  %v1450_v50 = vrot.slane %v1335_v52, %v5607_v46  ;;  %v1655_v52 = vld [vmem:[#allocation12 + $0x2c8] sm:$0xff] }
 0x8e4   :  { %4193 = vmatpush1.bf16.msra.mxu0 %v4192_v16  ;;  %v1641_v16 = vld [vmem:[#allocation12 + $0x258] sm:$0xff] }
 0x8e5   :  { %4195 = vmatprep.subr.bf16.mxu0 %v4194_v17 }
 0x8e8   :  { %4197 = vmatpush1.bf16.msra.mxu0 %v4196_v45  ;;  %v1645_v45 = vld [vmem:[#allocation12 + $0x278] sm:$0xff] }
 0x8e9   :  { %4199 = vmatprep.subr.bf16.mxu0 %v4198_v37  ;;  %v4206_v37 = vpack.c.bf16 %v1645_v45, %v1643_v36  ;;  %v1667_v36 = vld [vmem:[#allocation12 + $0x328] sm:$0xff]  ;;  %v1669_v45 = vld [vmem:[#allocation12 + $0x338] sm:$0xff] }
 0x8ec   :  { %4201 = vmatpush1.bf16.msra.mxu0 %v4200_v41  ;;  %v4208_v41 = vpack.c.bf16 %v1644_v59, %v1642_v38  ;;  %v1666_v38 = vld [vmem:[#allocation12 + $0x320] sm:$0xff]  ;;  %v1668_v59 = vld [vmem:[#allocation12 + $0x330] sm:$0xff] }
 0x8ed   :  { %4239 = vmatprep.subr.bf16.mxu0 %v5629_v58 }
 0x9a6   :  { %v1410_v42 = vpop.f32.mrb[4].mxu1 }
 0x9a7   :  { %v1412_v57 = vpop.f32.mrb[5].mxu1  ;;  %v1421_v55 = vmul.f32 %v1410_v42, %v1410_v42  ;;  %v1425_v4 = vsub.f32 %v5841_v29, %v1410_v42  ;;  %v1647_v42 = vld [vmem:[#allocation12 + $0x288] sm:$0xff] }
 0x9a8   :  { %v1422_v56 = vmul.f32 %v1412_v57, %v1412_v57  ;;  %v1426_v27 = vsub.f32 %v5838_v23, %v1412_v57  ;;  %v1639_v23 = vld [vmem:[#allocation12 + $0x248] sm:$0xff]  ;;  %v1649_v57 = vld [vmem:[#allocation12 + $0x298] sm:$0xff] }
 0x9a9   :  { %v4202_v17 = vpack.c.bf16 %v1641_v16, %v1639_v23  ;;  %v1663_v23 = vld [vmem:[#allocation12 + $0x308] sm:$0xff]  ;;  %v1665_v16 = vld [vmem:[#allocation12 + $0x318] sm:$0xff] }
 0x9aa   :  { %v1416_v60 = vpop.f32.mrb[6].mxu1 }
 0x9ab   :  { %v1423_v61 = vsub.f32 %v1416_v60, %v1421_v55  ;;  %v1418_v1 = vpop.f32.mrb[7].mxu1  ;;  %4203 = vmatprep.subr.bf16.mxu1 %v4202_v17  ;;  %v4210_v55 = vpack.c.bf16 %v1649_v57, %v1647_v42  ;;  %v1648_v60 = vld [vmem:[#allocation12 + $0x290] sm:$0xff]  ;;  %v4226_v17 = vpack.c.bf16 %v1665_v16, %v1663_v23  ;;  %v1671_v42 = vld [vmem:[#allocation12 + $0x348] sm:$0xff]  ;;  %v1673_v57 = vld [vmem:[#allocation12 + $0x358] sm:$0xff] }
 0x9ac   :  { %v1424_v51 = vsub.f32 %v1418_v1, %v1422_v56  ;;  %4205 = vmatpush1.bf16.msra.mxu1 %v4204_v35  ;;  %v1646_v56 = vld [vmem:[#allocation12 + $0x280] sm:$0xff]  ;;  %v1651_v1 = vld [vmem:[#allocation12 + $0x2a8] sm:$0xff]  ;;  %v4228_v35 = vpack.c.bf16 %v1664_v30, %v1662_v21 }
 0x9ad   :  { %v1427_v2 = vadd.f32 1e-05, %v1423_v61  ;;  %4207 = vmatprep.subr.bf16.mxu1 %v4206_v37  ;;  %v4212_v61 = vpack.c.bf16 %v1648_v60, %v1646_v56  ;;  %v4230_v37 = vpack.c.bf16 %v1669_v45, %v1667_v36  ;;  %v1670_v56 = vld [vmem:[#allocation12 + $0x340] sm:$0xff]  ;;  %v1672_v60 = vld [vmem:[#allocation12 + $0x350] sm:$0xff] }
 0x9ae   :  { %v1428_v43 = vadd.f32 1e-05, %v1424_v51  ;;  %v1653_v51 = vld [vmem:[#allocation12 + $0x2b8] sm:$0xff] }
 0x9af   :  { %4754 = vrsqrt.f32 %v1427_v2  ;;  %v4214_v2 = vpack.c.bf16 %v1653_v51, %v1651_v1  ;;  %v1497_v1 = vld [vmem:[#allocation10 + $0x4] sm:$0x3] }
 0x9b0   :  { %4756 = vrsqrt.f32 %v1428_v43  ;;  %4209 = vmatpush1.bf16.msra.mxu1 %v4208_v41  ;;  %v1650_v43 = vld [vmem:[#allocation12 + $0x2a0] sm:$0xff]  ;;  %v4232_v41 = vpack.c.bf16 %v1668_v59, %v1666_v38  ;;  %v1502_v51 = vrot.slane %v1497_v1, %v5607_v46 }
 0x9b1   :  { %4211 = vmatprep.subr.bf16.mxu1 %v4210_v55  ;;  %v4234_v55 = vpack.c.bf16 %v1673_v57, %v1671_v42 }
 0x9b4   :  { %4213 = vmatpush1.bf16.msra.mxu1 %v4212_v61  ;;  %v4236_v61 = vpack.c.bf16 %v1672_v60, %v1670_v56 }
 0x9b5   :  { %4215 = vmatprep.subr.bf16.mxu1 %v4214_v2  ;;  %v1506_v2 = vrot.slane %v1497_v1, %v5605_v44 }
 0x9b9   :  { %v4755_v10 = vpop.eup %4754 }
 0x9ba   :  { %v4757_v15 = vpop.eup %4756  ;;  %v1431_v28 = vmul.f32 %v4755_v10, %v1425_v4  ;;  %v4216_v4 = vpack.c.bf16 %v1652_v48, %v1650_v43 }
 0x9bb   :  { %v1432_v3 = vmul.f32 %v4757_v15, %v1426_v27  ;;  %v1654_v27 = vld [vmem:[#allocation12 + $0x2c0] sm:$0xff] }
 0x9bc   :  { %v1444_v22 = vmul.f32 %v1437_v9, %v1431_v28  ;;  %4217 = vmatpush1.bf16.msra.mxu1 %v4216_v4  ;;  %v1657_v9 = vld [vmem:[#allocation12 + $0x2d8] sm:$0xff]  ;;  %v1659_v28 = vld [vmem:[#allocation12 + $0x2e8] sm:$0xff] }
 0x9bd   :  { %v1445_v47 = vmul.f32 %v1441_v0, %v1432_v3  ;;  %v4218_v10 = vpack.c.bf16 %v1657_v9, %v1655_v52  ;;  %v1656_v0 = vld [vmem:[#allocation12 + $0x2d0] sm:$0xff]  ;;  %v1661_v3 = vld [vmem:[#allocation12 + $0x2f8] sm:$0xff] }
 0x9be   :  { %v5860_v29 = vadd.f32 %v1450_v50, %v1444_v22  ;;  %v4220_v15 = vpack.c.bf16 %v1656_v0, %v1654_v27  ;;  %v1658_v22 = vld [vmem:[#allocation12 + $0x2e0] sm:$0xff]  ;;  %v1660_v50 = vld [vmem:[#allocation12 + $0x2f0] sm:$0xff] }
 0x9bf   :  { %v5858_v49 = vadd.f32 %v1454_v24, %v1445_v47  ;;  %4219 = vmatprep.subr.bf16.mxu1 %v4218_v10  ;;  %v4222_v24 = vpack.c.bf16 %v1661_v3, %v1659_v28  ;;  %v4224_v47 = vpack.c.bf16 %v1660_v50, %v1658_v22 }
 0x9c0   :  { %4221 = vmatpush1.bf16.msra.mxu1 %v4220_v15 }
 0x9c1   :  { %3770 = vmatprep.mubr.msk.f32.mxu0 %vm272_vm0, %v5858_v49  ;;  %4223 = vmatprep.subr.bf16.mxu1 %v4222_v24 }
 0x9c2   :  { %1577 = vmatmul.mubr.f32.vlgmr.msra.gmra.mrb[14].mxu0 %v5860_v29 }
 0x9c3   :  { %4241 = vmatpush1.bf16.msra.mxu0 %v5640_v62 }
 0x9c4   :  { %4243 = vmatprep.subr.bf16.mxu0 %v5642_v63  ;;  %4225 = vmatpush1.bf16.msra.mxu1 %v4224_v47 }
 0x9c5   :  { %4227 = vmatprep.subr.bf16.mxu1 %v4226_v17 }
 0x9c7   :  { %4245 = vmatpush1.bf16.msra.mxu0 %v5658_v5 }
 0x9c8   :  { %4247 = vmatprep.subr.bf16.mxu0 %v5661_v7  ;;  %4229 = vmatpush1.bf16.msra.mxu1 %v4228_v35 }
 0x9c9   :  { %4231 = vmatprep.subr.bf16.mxu1 %v4230_v37 }
 0x9cb   :  { %4249 = vmatpush1.bf16.msra.mxu0 %v5676_v11 }
 0x9cc   :  { %4251 = vmatprep.subr.bf16.mxu0 %v5679_v12  ;;  %4233 = vmatpush1.bf16.msra.mxu1 %v4232_v41 }
 0x9cd   :  { %4235 = vmatprep.subr.bf16.mxu1 %v4234_v55 }
 0x9cf   :  { %4253 = vmatpush1.bf16.msra.mxu0 %v5694_v19 }
 0x9d0   :  { %4255 = vmatprep.subr.bf16.mxu0 %v5697_v20  ;;  %4237 = vmatpush1.bf16.msra.mxu1 %v4236_v61 }
 0x9d3   :  { %4257 = vmatpush1.bf16.msra.mxu0 %v5712_v25 }
 0x9d4   :  { %4259 = vmatprep.subr.bf16.mxu0 %v5715_v26 }
 0x9d7   :  { %4261 = vmatpush1.bf16.msra.mxu0 %v5730_v31 }
 0x9d8   :  { %4263 = vmatprep.subr.bf16.mxu0 %v5733_v33 }
 0x9db   :  { %4265 = vmatpush1.bf16.msra.mxu0 %v5748_v39 }
 0x9dc   :  { %4267 = vmatprep.subr.bf16.mxu0 %v5751_v40 }
 0x9df   :  { %4269 = vmatpush1.bf16.msra.mxu0 %v5764_v54 }
 0x9e0   :  { %4271 = vmatprep.subr.bf16.mxu0 %v5773_v8 }
 0x9e3   :  { %4273 = vmatpush1.bf16.msra.mxu0 %v5781_v18 }
 0xa95   :  { %v1578_v43 = vpop.f32.mrb[14].mxu0 }
 0xa96   :  { %v1579_v48 = vadd.f32 %v1578_v43, %v1502_v51  ;;  %v1580_v4 = vpop.f32.mrb[15].mxu0 }
 0xa97   :  { %v1581_v52 = vadd.f32 %v1580_v4, %v1506_v2 }
 0xa98   :  { %v1585_v9 = vmul.f32 0.70710677, %v1579_v48 }
 0xa99   :  { %v1586_v10 = vmul.f32 0.70710677, %v1581_v52 }
 0xa9a   :  { %v1587_v27 = vand.u32 2147483647, %v1585_v9  ;;  %vm1627_vm9 = vcmp.ge.f32.partialorder %v1585_v9, 0.0  ;;  %v1898_v9 = vld [vmem:[#allocation9 + $0x398] sm:$0xff] }
 0xa9b   :  { %v1588_v0 = vand.u32 2147483647, %v1586_v10  ;;  %vm1628_vm10 = vcmp.ge.f32.partialorder %v1586_v10, 0.0  ;;  %v1895_v10 = vld [vmem:[#allocation9 + $0x380] sm:$0xff] }
 0xa9c   :  { %v1589_v15 = vmul.f32 0.3275911, %v1587_v27  ;;  %v1615_v22 = vsub.f32 0.0, %v1587_v27 }
 0xa9d   :  { %v1590_v28 = vmul.f32 0.3275911, %v1588_v0  ;;  %v1616_v50 = vsub.f32 0.0, %v1588_v0 }
 0xa9e   :  { %v1591_v3 = vadd.f32 1.0, %v1589_v15  ;;  %v1617_v23 = vmul.f32 %v1615_v22, %v1587_v27 }
 0xa9f   :  { %v1592_v24 = vadd.f32 1.0, %v1590_v28  ;;  %v1618_v21 = vmul.f32 %v1616_v50, %v1588_v0 }
 0xaa0   :  { %4758 = vrcp.f32 %v1591_v3  ;;  %v1619_v36 = vmul.f32 1.442695, %v1617_v23 }
 0xaa1   :  { %4760 = vrcp.f32 %v1592_v24  ;;  %v1621_v38 = vmul.f32 1.442695, %v1618_v21 }
 0xaa2   :  { %4762 = vpow2.f32 %v1619_v36  ;;  %v1583_v36 = vmul.f32 0.5, %v1579_v48  ;;  %v1675_v48 = vld [vmem:[#allocation13 + $0x4] sm:$0x3] }
 0xaa3   :  { %4764 = vpow2.f32 %v1621_v38  ;;  %v1891_v38 = vld [vmem:[#allocation9 + $0x360] sm:$0xff] }
 0xaaa   :  { %v4759_v47 = vpop.eup %4758 }
 0xaab   :  { %v4761_v16 = vpop.eup %4760  ;;  %v1597_v17 = vmul.f32 1.0614054, %v4759_v47 }
 0xaac   :  { %v1598_v30 = vmul.f32 1.0614054, %v4761_v16  ;;  %v4763_v4 = vpop.eup %4762 }
 0xaad   :  { %v1599_v35 = vadd.f32 -1.4531521, %v1597_v17  ;;  %v4765_v0 = vpop.eup %4764 }
 0xaae   :  { %v1600_v45 = vadd.f32 -1.4531521, %v1598_v30  ;;  %v1584_v30 = vmul.f32 0.5, %v1581_v52 }
 0xaaf   :  { %v1601_v37 = vmul.f32 %v4759_v47, %v1599_v35 }
 0xab0   :  { %v1602_v59 = vmul.f32 %v4761_v16, %v1600_v45 }
 0xab1   :  { %v1603_v41 = vadd.f32 1.4214138, %v1601_v37 }
 0xab2   :  { %v1604_v42 = vadd.f32 1.4214138, %v1602_v59 }
 0xab3   :  { %v1605_v57 = vmul.f32 %v4759_v47, %v1603_v41  ;;  %v1893_v41 = vld [vmem:[#allocation9 + $0x370] sm:$0xff] }
 0xab4   :  { %v1606_v55 = vmul.f32 %v4761_v16, %v1604_v42  ;;  %v1896_v42 = vld [vmem:[#allocation9 + $0x388] sm:$0xff] }
 0xab5   :  { %v1607_v56 = vadd.f32 -0.28449672, %v1605_v57  ;;  %v4276_v57 = vpack.c.bf16 %v1893_v41, %v1891_v38  ;;  %v1914_v41 = vld [vmem:[#allocation9 + $0x418] sm:$0xff] }
 0xab6   :  { %v1608_v60 = vadd.f32 -0.28449672, %v1606_v55  ;;  %v4278_v55 = vpack.c.bf16 %v1898_v9, %v1896_v42  ;;  %v1911_v9 = vld [vmem:[#allocation9 + $0x400] sm:$0xff] }
 0xab7   :  { %v1609_v61 = vmul.f32 %v4759_v47, %v1607_v56  ;;  %v1897_v56 = vld [vmem:[#allocation9 + $0x390] sm:$0xff] }
 0xab8   :  { %v1610_v1 = vmul.f32 %v4761_v16, %v1608_v60  ;;  %v4280_v52 = vpack.c.bf16 %v1897_v56, %v1895_v10  ;;  %v1680_v60 = vrot.slane %v1675_v48, %v5607_v46  ;;  %v1918_v56 = vld [vmem:[#allocation9 + $0x438] sm:$0xff] }
 0xab9   :  { %v1611_v51 = vadd.f32 0.2548296, %v1609_v61  ;;  %v1684_v61 = vrot.slane %v1675_v48, %v5605_v44  ;;  %v1917_v48 = vld [vmem:[#allocation9 + $0x430] sm:$0xff] }
 0xaba   :  { %v1612_v2 = vadd.f32 0.2548296, %v1610_v1 }
 0xabb   :  { %v1613_v43 = vmul.f32 %v4759_v47, %v1611_v51  ;;  %v1892_v47 = vld [vmem:[#allocation9 + $0x368] sm:$0xff] }
 0xabc   :  { %v1614_v27 = vmul.f32 %v4761_v16, %v1612_v2  ;;  %v1894_v16 = vld [vmem:[#allocation9 + $0x378] sm:$0xff] }
 0xabd   :  { %v1623_v15 = vmul.f32 %v4763_v4, %v1613_v43  ;;  %v4274_v59 = vpack.c.bf16 %v1894_v16, %v1892_v47  ;;  %v1907_v47 = vld [vmem:[#allocation9 + $0x3e0] sm:$0xff]  ;;  %v1909_v16 = vld [vmem:[#allocation9 + $0x3f0] sm:$0xff] }
 0xabe   :  { %v1624_v28 = vmul.f32 %v4765_v0, %v1614_v27  ;;  %v4292_v38 = vpack.c.bf16 %v1909_v16, %v1907_v47  ;;  %v1764_v16 = vld [vmem:[#allocation15 + $0x4] sm:$0x3] }
 0xabf   :  { %v1625_v3 = vsub.f32 1.0, %v1623_v15  ;;  %4275 = vmatprep.subr.bf16.mxu1 %v4274_v59  ;;  %v1912_v59 = vld [vmem:[#allocation9 + $0x408] sm:$0xff] }
 0xac0   :  { %v1626_v24 = vsub.f32 1.0, %v1624_v28  ;;  %v1900_v28 = vld [vmem:[#allocation9 + $0x3a8] sm:$0xff]  ;;  %v4294_v42 = vpack.c.bf16 %v1914_v41, %v1912_v59  ;;  %v1868_v41 = vrot.slane %v1764_v16, %v5607_v46 }
 0xac1   :  { %v1629_v22 = vsub.f32 0.0, %v1625_v3  ;;  %v1766_v59 = vld [vmem:[#allocation16 + $0x4] sm:$0x3] }
 0xac2   :  { %v1630_v50 = vsub.f32 0.0, %v1626_v24 }
 0xac3   :  { %v1631_v23 = vsel %vm1627_vm9, %v1625_v3, %v1629_v22 }
 0xac4   :  { %v1633_v17 = vadd.f32 1.0, %v1631_v23  ;;  %v1632_v21 = vsel %vm1628_vm10, %v1626_v24, %v1630_v50  ;;  %v1899_v24 = vld [vmem:[#allocation9 + $0x3a0] sm:$0xff]  ;;  %v1904_v50 = vld [vmem:[#allocation9 + $0x3c8] sm:$0xff]  ;;  %v1906_v23 = vld [vmem:[#allocation9 + $0x3d8] sm:$0xff] }
 0xac5   :  { %v1634_v35 = vadd.f32 1.0, %v1632_v21  ;;  %v1903_v21 = vld [vmem:[#allocation9 + $0x3c0] sm:$0xff] }
 0xac6   :  { %v1635_v37 = vmul.f32 %v1633_v17, %v1583_v36  ;;  %v4286_v17 = vpack.c.bf16 %v1906_v23, %v1904_v50  ;;  %v1908_v36 = vld [vmem:[#allocation9 + $0x3e8] sm:$0xff] }
 0xac7   :  { %v1636_v45 = vmul.f32 %v1634_v35, %v1584_v30  ;;  %v1905_v30 = vld [vmem:[#allocation9 + $0x3d0] sm:$0xff] }
 0xac8   :  { %v4288_v35 = vpack.c.bf16 %v1905_v30, %v1903_v21 }
 0xac9   :  { %3771 = vmatprep.mubr.msk.f32.mxu1 %vm272_vm0, %v1636_v45  ;;  %v1910_v45 = vld [vmem:[#allocation9 + $0x3f8] sm:$0xff] }
 0xaca   :  { %1755 = vmatmul.mubr.f32.vlgmr.msra.gmra.mrb[8].mxu1 %v1635_v37  ;;  %v4290_v37 = vpack.c.bf16 %v1910_v45, %v1908_v36 }
 0xacb   :  { %4277 = vmatpush1.bf16.msra.mxu1 %v4276_v57  ;;  %v1913_v57 = vld [vmem:[#allocation9 + $0x410] sm:$0xff] }
 0xacc   :  { %4279 = vmatprep.subr.bf16.mxu1 %v4278_v55  ;;  %v1916_v55 = vld [vmem:[#allocation9 + $0x428] sm:$0xff]  ;;  %v4296_v10 = vpack.c.bf16 %v1913_v57, %v1911_v9  ;;  %v1872_v57 = vrot.slane %v1764_v16, %v5605_v44  ;;  %v2083_v16 = vld [vmem:[#allocation12 + $0x3d0] sm:$0xff] }
 0xacf   :  { %4281 = vmatpush1.bf16.msra.mxu1 %v4280_v52  ;;  %v1915_v52 = vld [vmem:[#allocation9 + $0x420] sm:$0xff] }
 0xb9d   :  { %v1756_v1 = vpop.f32.mrb[8].mxu1 }
 0xb9e   :  { %v1757_v51 = vadd.f32 %v1756_v1, %v1680_v60  ;;  %v1758_v2 = vpop.f32.mrb[9].mxu1  ;;  %v4298_v60 = vpack.c.bf16 %v1918_v56, %v1916_v55  ;;  %v1922_v1 = vld [vmem:[#allocation9 + $0x458] sm:$0xff] }
 0xb9f   :  { %v1759_v43 = vadd.f32 %v1758_v2, %v1684_v61  ;;  %v1920_v61 = vld [vmem:[#allocation9 + $0x448] sm:$0xff] }
 0xba0   :  { %v5891_v27 = vadd.f32 %v1757_v51, %v5860_v29  ;;  %v1901_v29 = vld [vmem:[#allocation9 + $0x3b0] sm:$0xff]  ;;  %v4300_v51 = vpack.c.bf16 %v1917_v48, %v1915_v52  ;;  %v4302_v2 = vpack.c.bf16 %v1922_v1, %v1920_v61  ;;  %v1885_v52 = vrot.slane %v1766_v59, %v5605_v44 }
 0xba1   :  { %v5888_v4 = vadd.f32 %v1759_v43, %v5858_v49  ;;  %v1902_v49 = vld [vmem:[#allocation9 + $0x3b8] sm:$0xff]  ;;  %v4284_v22 = vpack.c.bf16 %v1901_v29, %v1899_v24  ;;  %v1919_v43 = vld [vmem:[#allocation9 + $0x440] sm:$0xff]  ;;  %v1925_v29 = vld [vmem:[#allocation9 + $0x470] sm:$0xff] }
 0xba2   :  { %v1767_v15 = vmul.f32 %v5891_v27, %v5891_v27  ;;  %v4282_v3 = vpack.c.bf16 %v1902_v49, %v1900_v28  ;;  %v1926_v28 = vld [vmem:[#allocation9 + $0x478] sm:$0xff]  ;;  %v1923_v24 = vld [vmem:[#allocation9 + $0x460] sm:$0xff] }
 0xba3   :  { %v1768_v0 = vmul.f32 %v5888_v4, %v5888_v4  ;;  %3772 = vmatprep.mubr.msk.f32.mxu0 %vm272_vm0, %v5888_v4 }
 0xba4   :  { %1840 = vmatmul.mubr.f32.vlgmr.msra.gmra.mrb[16].mxu0 %v5891_v27  ;;  %4283 = vmatprep.subr.bf16.mxu1 %v4282_v3 }
 0xba5   :  { %3773 = vmatprep.mubr.msk.f32.mxu0 %vm272_vm0, %v1768_v0  ;;  %4285 = vmatpush1.bf16.msra.mxu1 %v4284_v22  ;;  %v1921_v0 = vld [vmem:[#allocation9 + $0x450] sm:$0xff]  ;;  %v4308_v22 = vpack.c.bf16 %v1925_v29, %v1923_v24  ;;  %v2075_v29 = vld [vmem:[#allocation12 + $0x390] sm:$0xff] }
 0xba6   :  { %4287 = vmatprep.subr.bf16.mxu1 %v4286_v17  ;;  %v4304_v49 = vpack.c.bf16 %v1921_v0, %v1919_v43  ;;  %v2069_v43 = vld [vmem:[#allocation12 + $0x360] sm:$0xff]  ;;  %v2071_v0 = vld [vmem:[#allocation12 + $0x370] sm:$0xff] }
 0xba7   :  { %v2073_v24 = vld [vmem:[#allocation12 + $0x380] sm:$0xff] }
 0xba8   :  { %1846 = vmatmul.mubr.f32.gmra.mrb[18].mxu0 %v1767_v15  ;;  %v1924_v15 = vld [vmem:[#allocation9 + $0x468] sm:$0xff] }
 0xba9   :  { %4289 = vmatpush1.bf16.msra.mxu1 %v4288_v35  ;;  %v4306_v3 = vpack.c.bf16 %v1926_v28, %v1924_v15  ;;  %v4312_v15 = vpack.c.bf16 %v2071_v0, %v2069_v43  ;;  %v2074_v28 = vld [vmem:[#allocation12 + $0x388] sm:$0xff]  ;;  %v2093_v43 = vld [vmem:[#allocation12 + $0x420] sm:$0xff]  ;;  %v2095_v0 = vld [vmem:[#allocation12 + $0x430] sm:$0xff] }
 0xbaa   :  { %4291 = vmatprep.subr.bf16.mxu1 %v4290_v37 }
 0xbad   :  { %4293 = vmatpush1.bf16.msra.mxu1 %v4292_v38 }
 0xbae   :  { %4295 = vmatprep.subr.bf16.mxu1 %v4294_v42 }
 0xbb1   :  { %4297 = vmatpush1.bf16.msra.mxu1 %v4296_v10 }
 0xbb2   :  { %4299 = vmatprep.subr.bf16.mxu1 %v4298_v60  ;;  %v1881_v60 = vrot.slane %v1766_v59, %v5607_v46  ;;  %v2086_v59 = vld [vmem:[#allocation12 + $0x3e8] sm:$0xff] }
 0xbb5   :  { %4301 = vmatpush1.bf16.msra.mxu1 %v4300_v51  ;;  %v2072_v51 = vld [vmem:[#allocation12 + $0x378] sm:$0xff] }
 0xbb6   :  { %4303 = vmatprep.subr.bf16.mxu1 %v4302_v2 }
 0xbb9   :  { %4305 = vmatpush1.bf16.msra.mxu1 %v4304_v49  ;;  %v2076_v49 = vld [vmem:[#allocation12 + $0x398] sm:$0xff] }
 0xbba   :  { %4307 = vmatprep.subr.bf16.mxu1 %v4306_v3  ;;  %v4314_v3 = vpack.c.bf16 %v2076_v49, %v2074_v28  ;;  %v2098_v28 = vld [vmem:[#allocation12 + $0x448] sm:$0xff]  ;;  %v2100_v49 = vld [vmem:[#allocation12 + $0x458] sm:$0xff] }
 0xbbd   :  { %4309 = vmatpush1.bf16.msra.mxu1 %v4308_v22  ;;  %v4316_v22 = vpack.c.bf16 %v2075_v29, %v2073_v24  ;;  %v2097_v24 = vld [vmem:[#allocation12 + $0x440] sm:$0xff]  ;;  %v2099_v29 = vld [vmem:[#allocation12 + $0x450] sm:$0xff] }
 0xbbe   :  { %4347 = vmatprep.subr.bf16.mxu1 %v5629_v58 }
 0xc77   :  { %v1841_v50 = vpop.f32.mrb[16].mxu0 }
 0xc78   :  { %v1843_v23 = vpop.f32.mrb[17].mxu0  ;;  %v1852_v17 = vmul.f32 %v1841_v50, %v1841_v50  ;;  %v1856_v38 = vsub.f32 %v5891_v27, %v1841_v50  ;;  %v2078_v50 = vld [vmem:[#allocation12 + $0x3a8] sm:$0xff] }
 0xc79   :  { %v1853_v21 = vmul.f32 %v1843_v23, %v1843_v23  ;;  %v1857_v9 = vsub.f32 %v5888_v4, %v1843_v23  ;;  %v2070_v4 = vld [vmem:[#allocation12 + $0x368] sm:$0xff]  ;;  %v2080_v23 = vld [vmem:[#allocation12 + $0x3b8] sm:$0xff] }
 0xc7a   :  { %v4310_v2 = vpack.c.bf16 %v2072_v51, %v2070_v4  ;;  %v2094_v4 = vld [vmem:[#allocation12 + $0x428] sm:$0xff]  ;;  %v2096_v51 = vld [vmem:[#allocation12 + $0x438] sm:$0xff] }
 0xc7b   :  { %v1847_v30 = vpop.f32.mrb[18].mxu0 }
 0xc7c   :  { %v1854_v35 = vsub.f32 %v1847_v30, %v1852_v17  ;;  %v1849_v36 = vpop.f32.mrb[19].mxu0  ;;  %4311 = vmatprep.subr.bf16.mxu0 %v4310_v2  ;;  %v4318_v17 = vpack.c.bf16 %v2080_v23, %v2078_v50  ;;  %v2079_v30 = vld [vmem:[#allocation12 + $0x3b0] sm:$0xff]  ;;  %v4334_v2 = vpack.c.bf16 %v2096_v51, %v2094_v4  ;;  %v2102_v50 = vld [vmem:[#allocation12 + $0x468] sm:$0xff]  ;;  %v2104_v23 = vld [vmem:[#allocation12 + $0x478] sm:$0xff] }
 0xc7d   :  { %v1855_v45 = vsub.f32 %v1849_v36, %v1853_v21  ;;  %4313 = vmatpush1.bf16.msra.mxu0 %v4312_v15  ;;  %v2077_v21 = vld [vmem:[#allocation12 + $0x3a0] sm:$0xff]  ;;  %v2082_v36 = vld [vmem:[#allocation12 + $0x3c8] sm:$0xff]  ;;  %v4336_v15 = vpack.c.bf16 %v2095_v0, %v2093_v43 }
 0xc7e   :  { %v1858_v37 = vadd.f32 1e-05, %v1854_v35  ;;  %4315 = vmatprep.subr.bf16.mxu0 %v4314_v3  ;;  %v4320_v35 = vpack.c.bf16 %v2079_v30, %v2077_v21  ;;  %v4338_v3 = vpack.c.bf16 %v2100_v49, %v2098_v28  ;;  %v2101_v21 = vld [vmem:[#allocation12 + $0x460] sm:$0xff]  ;;  %v2103_v30 = vld [vmem:[#allocation12 + $0x470] sm:$0xff] }
 0xc7f   :  { %v1859_v47 = vadd.f32 1e-05, %v1855_v45  ;;  %v2084_v45 = vld [vmem:[#allocation12 + $0x3d8] sm:$0xff] }
 0xc80   :  { %4766 = vrsqrt.f32 %v1858_v37  ;;  %v4322_v37 = vpack.c.bf16 %v2084_v45, %v2082_v36  ;;  %v1928_v36 = vld [vmem:[#allocation10 + $0x6] sm:$0x3] }
 0xc81   :  { %4768 = vrsqrt.f32 %v1859_v47  ;;  %4317 = vmatpush1.bf16.msra.mxu0 %v4316_v22  ;;  %v2081_v47 = vld [vmem:[#allocation12 + $0x3c0] sm:$0xff]  ;;  %v4340_v22 = vpack.c.bf16 %v2099_v29, %v2097_v24  ;;  %v1933_v45 = vrot.slane %v1928_v36, %v5607_v46 }
 0xc82   :  { %4319 = vmatprep.subr.bf16.mxu0 %v4318_v17  ;;  %v4342_v17 = vpack.c.bf16 %v2104_v23, %v2102_v50 }
 0xc85   :  { %4321 = vmatpush1.bf16.msra.mxu0 %v4320_v35  ;;  %v4344_v35 = vpack.c.bf16 %v2103_v30, %v2101_v21 }
 0xc86   :  { %4323 = vmatprep.subr.bf16.mxu0 %v4322_v37  ;;  %v1937_v37 = vrot.slane %v1928_v36, %v5605_v44 }
 0xc8a   :  { %v4767_v42 = vpop.eup %4766 }
 0xc8b   :  { %v4769_v55 = vpop.eup %4768  ;;  %v1862_v10 = vmul.f32 %v4767_v42, %v1856_v38  ;;  %v4324_v38 = vpack.c.bf16 %v2083_v16, %v2081_v47 }
 0xc8c   :  { %v1863_v56 = vmul.f32 %v4769_v55, %v1857_v9  ;;  %v2085_v9 = vld [vmem:[#allocation12 + $0x3e0] sm:$0xff] }
 0xc8d   :  { %v1875_v48 = vmul.f32 %v1868_v41, %v1862_v10  ;;  %4325 = vmatpush1.bf16.msra.mxu0 %v4324_v38  ;;  %v2088_v41 = vld [vmem:[#allocation12 + $0x3f8] sm:$0xff]  ;;  %v2090_v10 = vld [vmem:[#allocation12 + $0x408] sm:$0xff] }
 0xc8e   :  { %v1876_v61 = vmul.f32 %v1872_v57, %v1863_v56  ;;  %v4326_v42 = vpack.c.bf16 %v2088_v41, %v2086_v59  ;;  %v2087_v57 = vld [vmem:[#allocation12 + $0x3f0] sm:$0xff]  ;;  %v2092_v56 = vld [vmem:[#allocation12 + $0x418] sm:$0xff] }
 0xc8f   :  { %v5910_v27 = vadd.f32 %v1881_v60, %v1875_v48  ;;  %v4328_v55 = vpack.c.bf16 %v2087_v57, %v2085_v9  ;;  %v2089_v48 = vld [vmem:[#allocation12 + $0x400] sm:$0xff]  ;;  %v2091_v60 = vld [vmem:[#allocation12 + $0x410] sm:$0xff] }
 0xc90   :  { %v5908_v1 = vadd.f32 %v1885_v52, %v1876_v61  ;;  %4327 = vmatprep.subr.bf16.mxu0 %v4326_v42  ;;  %v4330_v52 = vpack.c.bf16 %v2092_v56, %v2090_v10  ;;  %v4332_v61 = vpack.c.bf16 %v2091_v60, %v2089_v48 }
 0xc91   :  { %4329 = vmatpush1.bf16.msra.mxu0 %v4328_v55 }
 0xc92   :  { %3774 = vmatprep.mubr.msk.f32.mxu1 %vm272_vm0, %v5908_v1  ;;  %4331 = vmatprep.subr.bf16.mxu0 %v4330_v52 }
 0xc93   :  { %2008 = vmatmul.mubr.f32.vlgmr.msra.gmra.mrb[10].mxu1 %v5910_v27 }
 0xc94   :  { %4349 = vmatpush1.bf16.msra.mxu1 %v5640_v62 }
 0xc95   :  { %4351 = vmatprep.subr.bf16.mxu1 %v5642_v63  ;;  %4333 = vmatpush1.bf16.msra.mxu0 %v4332_v61 }
 0xc96   :  { %4335 = vmatprep.subr.bf16.mxu0 %v4334_v2 }
 0xc98   :  { %4353 = vmatpush1.bf16.msra.mxu1 %v5658_v5 }
 0xc99   :  { %4355 = vmatprep.subr.bf16.mxu1 %v5661_v7  ;;  %4337 = vmatpush1.bf16.msra.mxu0 %v4336_v15 }
 0xc9a   :  { %4339 = vmatprep.subr.bf16.mxu0 %v4338_v3 }
 0xc9c   :  { %4357 = vmatpush1.bf16.msra.mxu1 %v5676_v11 }
 0xc9d   :  { %4359 = vmatprep.subr.bf16.mxu1 %v5679_v12  ;;  %4341 = vmatpush1.bf16.msra.mxu0 %v4340_v22 }
 0xc9e   :  { %4343 = vmatprep.subr.bf16.mxu0 %v4342_v17 }
 0xca0   :  { %4361 = vmatpush1.bf16.msra.mxu1 %v5694_v19 }
 0xca1   :  { %4363 = vmatprep.subr.bf16.mxu1 %v5697_v20  ;;  %4345 = vmatpush1.bf16.msra.mxu0 %v4344_v35 }
 0xca4   :  { %4365 = vmatpush1.bf16.msra.mxu1 %v5712_v25 }
 0xca5   :  { %4367 = vmatprep.subr.bf16.mxu1 %v5715_v26 }
 0xca8   :  { %4369 = vmatpush1.bf16.msra.mxu1 %v5730_v31 }
 0xca9   :  { %4371 = vmatprep.subr.bf16.mxu1 %v5733_v33 }
 0xcac   :  { %4373 = vmatpush1.bf16.msra.mxu1 %v5748_v39 }
 0xcad   :  { %4375 = vmatprep.subr.bf16.mxu1 %v5751_v40 }
 0xcb0   :  { %4377 = vmatpush1.bf16.msra.mxu1 %v5764_v54 }
 0xcb1   :  { %4379 = vmatprep.subr.bf16.mxu1 %v5773_v8 }
 0xcb4   :  { %4381 = vmatpush1.bf16.msra.mxu1 %v5781_v18 }
 0xd66   :  { %v2009_v47 = vpop.f32.mrb[10].mxu1 }
 0xd67   :  { %v2010_v16 = vadd.f32 %v2009_v47, %v1933_v45  ;;  %v2011_v38 = vpop.f32.mrb[11].mxu1 }
 0xd68   :  { %v2012_v59 = vadd.f32 %v2011_v38, %v1937_v37 }
 0xd69   :  { %v2016_v41 = vmul.f32 0.70710677, %v2010_v16 }
 0xd6a   :  { %v2017_v42 = vmul.f32 0.70710677, %v2012_v59 }
 0xd6b   :  { %v2018_v9 = vand.u32 2147483647, %v2016_v41  ;;  %vm2058_vm11 = vcmp.ge.f32.partialorder %v2016_v41, 0.0  ;;  %v2329_v41 = vld [vmem:[#allocation9 + $0x4b8] sm:$0xff] }
 0xd6c   :  { %v2019_v57 = vand.u32 2147483647, %v2017_v42  ;;  %vm2059_vm12 = vcmp.ge.f32.partialorder %v2017_v42, 0.0  ;;  %v2326_v42 = vld [vmem:[#allocation9 + $0x4a0] sm:$0xff] }
 0xd6d   :  { %v2020_v55 = vmul.f32 0.3275911, %v2018_v9  ;;  %v2046_v48 = vsub.f32 0.0, %v2018_v9 }
 0xd6e   :  { %v2021_v10 = vmul.f32 0.3275911, %v2019_v57  ;;  %v2047_v60 = vsub.f32 0.0, %v2019_v57 }
 0xd6f   :  { %v2022_v56 = vadd.f32 1.0, %v2020_v55  ;;  %v2048_v4 = vmul.f32 %v2046_v48, %v2018_v9 }
 0xd70   :  { %v2023_v52 = vadd.f32 1.0, %v2021_v10  ;;  %v2049_v43 = vmul.f32 %v2047_v60, %v2019_v57 }
 0xd71   :  { %4770 = vrcp.f32 %v2022_v56  ;;  %v2050_v28 = vmul.f32 1.442695, %v2048_v4 }
 0xd72   :  { %4772 = vrcp.f32 %v2023_v52  ;;  %v2052_v24 = vmul.f32 1.442695, %v2049_v43 }
 0xd73   :  { %4774 = vpow2.f32 %v2050_v28  ;;  %v2014_v28 = vmul.f32 0.5, %v2010_v16  ;;  %v2106_v16 = vld [vmem:[#allocation13 + $0x6] sm:$0x3] }
 0xd74   :  { %4776 = vpow2.f32 %v2052_v24  ;;  %v2322_v24 = vld [vmem:[#allocation9 + $0x480] sm:$0xff] }
 0xd7b   :  { %v4771_v61 = vpop.eup %4770 }
 0xd7c   :  { %v4773_v51 = vpop.eup %4772  ;;  %v2028_v2 = vmul.f32 1.0614054, %v4771_v61 }
 0xd7d   :  { %v2029_v0 = vmul.f32 1.0614054, %v4773_v51  ;;  %v4775_v38 = vpop.eup %4774 }
 0xd7e   :  { %v2030_v15 = vadd.f32 -1.4531521, %v2028_v2  ;;  %v4777_v57 = vpop.eup %4776 }
 0xd7f   :  { %v2031_v49 = vadd.f32 -1.4531521, %v2029_v0  ;;  %v2015_v0 = vmul.f32 0.5, %v2012_v59 }
 0xd80   :  { %v2032_v3 = vmul.f32 %v4771_v61, %v2030_v15 }
 0xd81   :  { %v2033_v29 = vmul.f32 %v4773_v51, %v2031_v49 }
 0xd82   :  { %v2034_v22 = vadd.f32 1.4214138, %v2032_v3 }
 0xd83   :  { %v2035_v50 = vadd.f32 1.4214138, %v2033_v29 }
 0xd84   :  { %v2036_v23 = vmul.f32 %v4771_v61, %v2034_v22  ;;  %v2324_v22 = vld [vmem:[#allocation9 + $0x490] sm:$0xff] }
 0xd85   :  { %v2037_v17 = vmul.f32 %v4773_v51, %v2035_v50  ;;  %v2327_v50 = vld [vmem:[#allocation9 + $0x4a8] sm:$0xff] }
 0xd86   :  { %v2038_v21 = vadd.f32 -0.28449672, %v2036_v23  ;;  %v4384_v23 = vpack.c.bf16 %v2324_v22, %v2322_v24  ;;  %v2345_v22 = vld [vmem:[#allocation9 + $0x538] sm:$0xff] }
 0xd87   :  { %v2039_v30 = vadd.f32 -0.28449672, %v2037_v17  ;;  %v4386_v17 = vpack.c.bf16 %v2329_v41, %v2327_v50  ;;  %v2342_v41 = vld [vmem:[#allocation9 + $0x520] sm:$0xff] }
 0xd88   :  { %v2040_v35 = vmul.f32 %v4771_v61, %v2038_v21  ;;  %v2328_v21 = vld [vmem:[#allocation9 + $0x4b0] sm:$0xff] }
 0xd89   :  { %v2041_v36 = vmul.f32 %v4773_v51, %v2039_v30  ;;  %v4388_v59 = vpack.c.bf16 %v2328_v21, %v2326_v42  ;;  %v2111_v30 = vrot.slane %v2106_v16, %v5607_v46  ;;  %v2349_v21 = vld [vmem:[#allocation9 + $0x558] sm:$0xff] }
 0xd8a   :  { %v2042_v45 = vadd.f32 0.2548296, %v2040_v35  ;;  %v2115_v35 = vrot.slane %v2106_v16, %v5605_v44  ;;  %v2348_v16 = vld [vmem:[#allocation9 + $0x550] sm:$0xff] }
 0xd8b   :  { %v2043_v37 = vadd.f32 0.2548296, %v2041_v36 }
 0xd8c   :  { %v2044_v47 = vmul.f32 %v4771_v61, %v2042_v45  ;;  %v2323_v61 = vld [vmem:[#allocation9 + $0x488] sm:$0xff] }
 0xd8d   :  { %v2045_v9 = vmul.f32 %v4773_v51, %v2043_v37  ;;  %v2325_v51 = vld [vmem:[#allocation9 + $0x498] sm:$0xff] }
 0xd8e   :  { %v2054_v55 = vmul.f32 %v4775_v38, %v2044_v47  ;;  %v4382_v29 = vpack.c.bf16 %v2325_v51, %v2323_v61  ;;  %v2338_v61 = vld [vmem:[#allocation9 + $0x500] sm:$0xff]  ;;  %v2340_v51 = vld [vmem:[#allocation9 + $0x510] sm:$0xff] }
 0xd8f   :  { %v2055_v10 = vmul.f32 %v4777_v57, %v2045_v9  ;;  %v4400_v24 = vpack.c.bf16 %v2340_v51, %v2338_v61  ;;  %v2195_v51 = vld [vmem:[#allocation15 + $0x6] sm:$0x3] }
 0xd90   :  { %v2056_v56 = vsub.f32 1.0, %v2054_v55  ;;  %4383 = vmatprep.subr.bf16.mxu0 %v4382_v29  ;;  %v2343_v29 = vld [vmem:[#allocation9 + $0x528] sm:$0xff] }
 0xd91   :  { %v2057_v52 = vsub.f32 1.0, %v2055_v10  ;;  %v2331_v10 = vld [vmem:[#allocation9 + $0x4c8] sm:$0xff]  ;;  %v4402_v50 = vpack.c.bf16 %v2345_v22, %v2343_v29  ;;  %v2299_v22 = vrot.slane %v2195_v51, %v5607_v46 }
 0xd92   :  { %v2060_v48 = vsub.f32 0.0, %v2056_v56  ;;  %v2197_v29 = vld [vmem:[#allocation16 + $0x6] sm:$0x3] }
 0xd93   :  { %v2061_v60 = vsub.f32 0.0, %v2057_v52 }
 0xd94   :  { %v2062_v4 = vsel %vm2058_vm11, %v2056_v56, %v2060_v48 }
 0xd95   :  { %v2064_v2 = vadd.f32 1.0, %v2062_v4  ;;  %v2063_v43 = vsel %vm2059_vm12, %v2057_v52, %v2061_v60  ;;  %v2330_v52 = vld [vmem:[#allocation9 + $0x4c0] sm:$0xff]  ;;  %v2335_v60 = vld [vmem:[#allocation9 + $0x4e8] sm:$0xff]  ;;  %v2337_v4 = vld [vmem:[#allocation9 + $0x4f8] sm:$0xff] }
 0xd96   :  { %v2065_v15 = vadd.f32 1.0, %v2063_v43  ;;  %v2334_v43 = vld [vmem:[#allocation9 + $0x4e0] sm:$0xff] }
 0xd97   :  { %v2066_v3 = vmul.f32 %v2064_v2, %v2014_v28  ;;  %v4394_v2 = vpack.c.bf16 %v2337_v4, %v2335_v60  ;;  %v2339_v28 = vld [vmem:[#allocation9 + $0x508] sm:$0xff] }
 0xd98   :  { %v2067_v49 = vmul.f32 %v2065_v15, %v2015_v0  ;;  %v2336_v0 = vld [vmem:[#allocation9 + $0x4f0] sm:$0xff] }
 0xd99   :  { %v4396_v15 = vpack.c.bf16 %v2336_v0, %v2334_v43 }
 0xd9a   :  { %3775 = vmatprep.mubr.msk.f32.mxu0 %vm272_vm0, %v2067_v49  ;;  %v2341_v49 = vld [vmem:[#allocation9 + $0x518] sm:$0xff] }
 0xd9b   :  { %2186 = vmatmul.mubr.f32.vlgmr.msra.gmra.mrb[20].mxu0 %v2066_v3  ;;  %v4398_v3 = vpack.c.bf16 %v2341_v49, %v2339_v28 }
 0xd9c   :  { %4385 = vmatpush1.bf16.msra.mxu0 %v4384_v23  ;;  %v2344_v23 = vld [vmem:[#allocation9 + $0x530] sm:$0xff] }
 0xd9d   :  { %4387 = vmatprep.subr.bf16.mxu0 %v4386_v17  ;;  %v2347_v17 = vld [vmem:[#allocation9 + $0x548] sm:$0xff]  ;;  %v4404_v42 = vpack.c.bf16 %v2344_v23, %v2342_v41  ;;  %v2303_v23 = vrot.slane %v2195_v51, %v5605_v44  ;;  %v2514_v51 = vld [vmem:[#allocation12 + $0x4f0] sm:$0xff] }
 0xda0   :  { %4389 = vmatpush1.bf16.msra.mxu0 %v4388_v59  ;;  %v2346_v59 = vld [vmem:[#allocation9 + $0x540] sm:$0xff] }
 0xe6e   :  { %v2187_v36 = vpop.f32.mrb[20].mxu0 }
 0xe6f   :  { %v2188_v45 = vadd.f32 %v2187_v36, %v2111_v30  ;;  %v2189_v37 = vpop.f32.mrb[21].mxu0  ;;  %v4406_v30 = vpack.c.bf16 %v2349_v21, %v2347_v17  ;;  %v2353_v36 = vld [vmem:[#allocation9 + $0x578] sm:$0xff] }
 0xe70   :  { %v2190_v47 = vadd.f32 %v2189_v37, %v2115_v35  ;;  %v2351_v35 = vld [vmem:[#allocation9 + $0x568] sm:$0xff] }
 0xe71   :  { %v5941_v9 = vadd.f32 %v2188_v45, %v5910_v27  ;;  %v2332_v27 = vld [vmem:[#allocation9 + $0x4d0] sm:$0xff]  ;;  %v4408_v45 = vpack.c.bf16 %v2348_v16, %v2346_v59  ;;  %v4410_v37 = vpack.c.bf16 %v2353_v36, %v2351_v35  ;;  %v2316_v59 = vrot.slane %v2197_v29, %v5605_v44 }
 0xe72   :  { %v5938_v38 = vadd.f32 %v2190_v47, %v5908_v1  ;;  %v2333_v1 = vld [vmem:[#allocation9 + $0x4d8] sm:$0xff]  ;;  %v4392_v48 = vpack.c.bf16 %v2332_v27, %v2330_v52  ;;  %v2350_v47 = vld [vmem:[#allocation9 + $0x560] sm:$0xff]  ;;  %v2356_v27 = vld [vmem:[#allocation9 + $0x590] sm:$0xff] }
 0xe73   :  { %v2198_v55 = vmul.f32 %v5941_v9, %v5941_v9  ;;  %v4390_v56 = vpack.c.bf16 %v2333_v1, %v2331_v10  ;;  %v2357_v10 = vld [vmem:[#allocation9 + $0x598] sm:$0xff]  ;;  %v2354_v52 = vld [vmem:[#allocation9 + $0x580] sm:$0xff] }
 0xe74   :  { %v2199_v57 = vmul.f32 %v5938_v38, %v5938_v38  ;;  %3776 = vmatprep.mubr.msk.f32.mxu1 %vm272_vm0, %v5938_v38 }
 0xe75   :  { %2271 = vmatmul.mubr.f32.vlgmr.msra.gmra.mrb[12].mxu1 %v5941_v9  ;;  %4391 = vmatprep.subr.bf16.mxu0 %v4390_v56 }
 0xe76   :  { %3777 = vmatprep.mubr.msk.f32.mxu1 %vm272_vm0, %v2199_v57  ;;  %4393 = vmatpush1.bf16.msra.mxu0 %v4392_v48  ;;  %v2352_v57 = vld [vmem:[#allocation9 + $0x570] sm:$0xff]  ;;  %v4416_v48 = vpack.c.bf16 %v2356_v27, %v2354_v52  ;;  %v2506_v27 = vld [vmem:[#allocation12 + $0x4b0] sm:$0xff] }
 0xe77   :  { %4395 = vmatprep.subr.bf16.mxu0 %v4394_v2  ;;  %v4412_v1 = vpack.c.bf16 %v2352_v57, %v2350_v47  ;;  %v2500_v47 = vld [vmem:[#allocation12 + $0x480] sm:$0xff]  ;;  %v2502_v57 = vld [vmem:[#allocation12 + $0x490] sm:$0xff] }
 0xe78   :  { %v2504_v52 = vld [vmem:[#allocation12 + $0x4a0] sm:$0xff] }
 0xe79   :  { %2277 = vmatmul.mubr.f32.gmra.mrb[14].mxu1 %v2198_v55  ;;  %v2355_v55 = vld [vmem:[#allocation9 + $0x588] sm:$0xff] }
 0xe7a   :  { %4397 = vmatpush1.bf16.msra.mxu0 %v4396_v15  ;;  %v4414_v56 = vpack.c.bf16 %v2357_v10, %v2355_v55  ;;  %v4420_v55 = vpack.c.bf16 %v2502_v57, %v2500_v47  ;;  %v2505_v10 = vld [vmem:[#allocation12 + $0x4a8] sm:$0xff]  ;;  %v2524_v47 = vld [vmem:[#allocation12 + $0x540] sm:$0xff]  ;;  %v2526_v57 = vld [vmem:[#allocation12 + $0x550] sm:$0xff] }
 0xe7b   :  { %4399 = vmatprep.subr.bf16.mxu0 %v4398_v3 }
 0xe7e   :  { %4401 = vmatpush1.bf16.msra.mxu0 %v4400_v24 }
 0xe7f   :  { %4403 = vmatprep.subr.bf16.mxu0 %v4402_v50 }
 0xe82   :  { %4405 = vmatpush1.bf16.msra.mxu0 %v4404_v42 }
 0xe83   :  { %4407 = vmatprep.subr.bf16.mxu0 %v4406_v30  ;;  %v2312_v30 = vrot.slane %v2197_v29, %v5607_v46  ;;  %v2517_v29 = vld [vmem:[#allocation12 + $0x508] sm:$0xff] }
 0xe86   :  { %4409 = vmatpush1.bf16.msra.mxu0 %v4408_v45  ;;  %v2503_v45 = vld [vmem:[#allocation12 + $0x498] sm:$0xff] }
 0xe87   :  { %4411 = vmatprep.subr.bf16.mxu0 %v4410_v37 }
 0xe8a   :  { %4413 = vmatpush1.bf16.msra.mxu0 %v4412_v1  ;;  %v2507_v1 = vld [vmem:[#allocation12 + $0x4b8] sm:$0xff] }
 0xe8b   :  { %4415 = vmatprep.subr.bf16.mxu0 %v4414_v56  ;;  %v4422_v56 = vpack.c.bf16 %v2507_v1, %v2505_v10  ;;  %v2529_v10 = vld [vmem:[#allocation12 + $0x568] sm:$0xff]  ;;  %v2531_v1 = vld [vmem:[#allocation12 + $0x578] sm:$0xff] }
 0xe8e   :  { %4417 = vmatpush1.bf16.msra.mxu0 %v4416_v48  ;;  %v4424_v48 = vpack.c.bf16 %v2506_v27, %v2504_v52  ;;  %v2528_v52 = vld [vmem:[#allocation12 + $0x560] sm:$0xff]  ;;  %v2530_v27 = vld [vmem:[#allocation12 + $0x570] sm:$0xff] }
 0xe8f   :  { %4455 = vmatprep.subr.bf16.mxu0 %v5629_v58 }
 0xf48   :  { %v2272_v60 = vpop.f32.mrb[12].mxu1 }
 0xf49   :  { %v2274_v4 = vpop.f32.mrb[13].mxu1  ;;  %v2283_v2 = vmul.f32 %v2272_v60, %v2272_v60  ;;  %v2287_v24 = vsub.f32 %v5941_v9, %v2272_v60  ;;  %v2509_v60 = vld [vmem:[#allocation12 + $0x4c8] sm:$0xff] }
 0xf4a   :  { %v2284_v43 = vmul.f32 %v2274_v4, %v2274_v4  ;;  %v2288_v41 = vsub.f32 %v5938_v38, %v2274_v4  ;;  %v2501_v38 = vld [vmem:[#allocation12 + $0x488] sm:$0xff]  ;;  %v2511_v4 = vld [vmem:[#allocation12 + $0x4d8] sm:$0xff] }
 0xf4b   :  { %v4418_v37 = vpack.c.bf16 %v2503_v45, %v2501_v38  ;;  %v2525_v38 = vld [vmem:[#allocation12 + $0x548] sm:$0xff]  ;;  %v2527_v45 = vld [vmem:[#allocation12 + $0x558] sm:$0xff] }
 0xf4c   :  { %v2278_v0 = vpop.f32.mrb[14].mxu1 }
 0xf4d   :  { %v2285_v15 = vsub.f32 %v2278_v0, %v2283_v2  ;;  %v2280_v28 = vpop.f32.mrb[15].mxu1  ;;  %4419 = vmatprep.subr.bf16.mxu1 %v4418_v37  ;;  %v4426_v2 = vpack.c.bf16 %v2511_v4, %v2509_v60  ;;  %v2510_v0 = vld [vmem:[#allocation12 + $0x4d0] sm:$0xff]  ;;  %v4442_v37 = vpack.c.bf16 %v2527_v45, %v2525_v38  ;;  %v2533_v60 = vld [vmem:[#allocation12 + $0x588] sm:$0xff]  ;;  %v2535_v4 = vld [vmem:[#allocation12 + $0x598] sm:$0xff] }
 0xf4e   :  { %v2286_v49 = vsub.f32 %v2280_v28, %v2284_v43  ;;  %4421 = vmatpush1.bf16.msra.mxu1 %v4420_v55  ;;  %v2508_v43 = vld [vmem:[#allocation12 + $0x4c0] sm:$0xff]  ;;  %v2513_v28 = vld [vmem:[#allocation12 + $0x4e8] sm:$0xff]  ;;  %v4444_v55 = vpack.c.bf16 %v2526_v57, %v2524_v47 }
 0xf4f   :  { %v2289_v3 = vadd.f32 1e-05, %v2285_v15  ;;  %4423 = vmatprep.subr.bf16.mxu1 %v4422_v56  ;;  %v4428_v15 = vpack.c.bf16 %v2510_v0, %v2508_v43  ;;  %v4446_v56 = vpack.c.bf16 %v2531_v1, %v2529_v10  ;;  %v2532_v43 = vld [vmem:[#allocation12 + $0x580] sm:$0xff]  ;;  %v2534_v0 = vld [vmem:[#allocation12 + $0x590] sm:$0xff] }
 0xf50   :  { %v2290_v61 = vadd.f32 1e-05, %v2286_v49  ;;  %v2515_v49 = vld [vmem:[#allocation12 + $0x4f8] sm:$0xff] }
 0xf51   :  { %4778 = vrsqrt.f32 %v2289_v3  ;;  %v4430_v3 = vpack.c.bf16 %v2515_v49, %v2513_v28  ;;  %v2359_v28 = vld [vmem:[#allocation10 + $0x8] sm:$0x3] }
 0xf52   :  { %4780 = vrsqrt.f32 %v2290_v61  ;;  %4425 = vmatpush1.bf16.msra.mxu1 %v4424_v48  ;;  %v2512_v61 = vld [vmem:[#allocation12 + $0x4e0] sm:$0xff]  ;;  %v4448_v48 = vpack.c.bf16 %v2530_v27, %v2528_v52  ;;  %v2364_v49 = vrot.slane %v2359_v28, %v5607_v46 }
 0xf53   :  { %4427 = vmatprep.subr.bf16.mxu1 %v4426_v2  ;;  %v4450_v2 = vpack.c.bf16 %v2535_v4, %v2533_v60 }
 0xf56   :  { %4429 = vmatpush1.bf16.msra.mxu1 %v4428_v15  ;;  %v4452_v15 = vpack.c.bf16 %v2534_v0, %v2532_v43 }
 0xf57   :  { %4431 = vmatprep.subr.bf16.mxu1 %v4430_v3  ;;  %v2368_v3 = vrot.slane %v2359_v28, %v5605_v44 }
 0xf5b   :  { %v4779_v50 = vpop.eup %4778 }
 0xf5c   :  { %v4781_v17 = vpop.eup %4780  ;;  %v2293_v42 = vmul.f32 %v4779_v50, %v2287_v24  ;;  %v4432_v24 = vpack.c.bf16 %v2514_v51, %v2512_v61 }
 0xf5d   :  { %v2294_v21 = vmul.f32 %v4781_v17, %v2288_v41  ;;  %v2516_v41 = vld [vmem:[#allocation12 + $0x500] sm:$0xff] }
 0xf5e   :  { %v2306_v16 = vmul.f32 %v2299_v22, %v2293_v42  ;;  %4433 = vmatpush1.bf16.msra.mxu1 %v4432_v24  ;;  %v2519_v22 = vld [vmem:[#allocation12 + $0x518] sm:$0xff]  ;;  %v2521_v42 = vld [vmem:[#allocation12 + $0x528] sm:$0xff] }
 0xf5f   :  { %v2307_v35 = vmul.f32 %v2303_v23, %v2294_v21  ;;  %v4434_v50 = vpack.c.bf16 %v2519_v22, %v2517_v29  ;;  %v2518_v23 = vld [vmem:[#allocation12 + $0x510] sm:$0xff]  ;;  %v2523_v21 = vld [vmem:[#allocation12 + $0x538] sm:$0xff] }
 0xf60   :  { %v5960_v9 = vadd.f32 %v2312_v30, %v2306_v16  ;;  %v4436_v17 = vpack.c.bf16 %v2518_v23, %v2516_v41  ;;  %v2520_v16 = vld [vmem:[#allocation12 + $0x520] sm:$0xff]  ;;  %v2522_v30 = vld [vmem:[#allocation12 + $0x530] sm:$0xff] }
 0xf61   :  { %v5958_v36 = vadd.f32 %v2316_v59, %v2307_v35  ;;  %4435 = vmatprep.subr.bf16.mxu1 %v4434_v50  ;;  %v4438_v59 = vpack.c.bf16 %v2523_v21, %v2521_v42  ;;  %v4440_v35 = vpack.c.bf16 %v2522_v30, %v2520_v16 }
 0xf62   :  { %4437 = vmatpush1.bf16.msra.mxu1 %v4436_v17 }
 0xf63   :  { %3778 = vmatprep.mubr.msk.f32.mxu0 %vm272_vm0, %v5958_v36  ;;  %4439 = vmatprep.subr.bf16.mxu1 %v4438_v59 }
 0xf64   :  { %2439 = vmatmul.mubr.f32.vlgmr.msra.gmra.mrb[22].mxu0 %v5960_v9 }
 0xf65   :  { %4457 = vmatpush1.bf16.msra.mxu0 %v5640_v62 }
 0xf66   :  { %4459 = vmatprep.subr.bf16.mxu0 %v5642_v63  ;;  %4441 = vmatpush1.bf16.msra.mxu1 %v4440_v35 }
 0xf67   :  { %4443 = vmatprep.subr.bf16.mxu1 %v4442_v37 }
 0xf69   :  { %4461 = vmatpush1.bf16.msra.mxu0 %v5658_v5 }
 0xf6a   :  { %4463 = vmatprep.subr.bf16.mxu0 %v5661_v7  ;;  %4445 = vmatpush1.bf16.msra.mxu1 %v4444_v55 }
 0xf6b   :  { %4447 = vmatprep.subr.bf16.mxu1 %v4446_v56 }
 0xf6d   :  { %4465 = vmatpush1.bf16.msra.mxu0 %v5676_v11 }
 0xf6e   :  { %4467 = vmatprep.subr.bf16.mxu0 %v5679_v12  ;;  %4449 = vmatpush1.bf16.msra.mxu1 %v4448_v48 }
 0xf6f   :  { %4451 = vmatprep.subr.bf16.mxu1 %v4450_v2 }
 0xf71   :  { %4469 = vmatpush1.bf16.msra.mxu0 %v5694_v19 }
 0xf72   :  { %4471 = vmatprep.subr.bf16.mxu0 %v5697_v20  ;;  %4453 = vmatpush1.bf16.msra.mxu1 %v4452_v15 }
 0xf75   :  { %4473 = vmatpush1.bf16.msra.mxu0 %v5712_v25 }
 0xf76   :  { %4475 = vmatprep.subr.bf16.mxu0 %v5715_v26 }
 0xf79   :  { %4477 = vmatpush1.bf16.msra.mxu0 %v5730_v31 }
 0xf7a   :  { %4479 = vmatprep.subr.bf16.mxu0 %v5733_v33 }
 0xf7d   :  { %4481 = vmatpush1.bf16.msra.mxu0 %v5748_v39 }
 0xf7e   :  { %4483 = vmatprep.subr.bf16.mxu0 %v5751_v40 }
 0xf81   :  { %4485 = vmatpush1.bf16.msra.mxu0 %v5764_v54 }
 0xf82   :  { %4487 = vmatprep.subr.bf16.mxu0 %v5773_v8 }
 0xf85   :  { %4489 = vmatpush1.bf16.msra.mxu0 %v5781_v18 }
0x1037   :  { %v2440_v61 = vpop.f32.mrb[22].mxu0 }
0x1038   :  { %v2441_v51 = vadd.f32 %v2440_v61, %v2364_v49  ;;  %v2442_v24 = vpop.f32.mrb[23].mxu0 }
0x1039   :  { %v2443_v29 = vadd.f32 %v2442_v24, %v2368_v3 }
0x103a   :  { %v2447_v22 = vmul.f32 0.70710677, %v2441_v51 }
0x103b   :  { %v2448_v50 = vmul.f32 0.70710677, %v2443_v29 }
0x103c   :  { %v2449_v41 = vand.u32 2147483647, %v2447_v22  ;;  %vm2489_vm13 = vcmp.ge.f32.partialorder %v2447_v22, 0.0  ;;  %v2760_v22 = vld [vmem:[#allocation9 + $0x5d8] sm:$0xff] }
0x103d   :  { %v2450_v23 = vand.u32 2147483647, %v2448_v50  ;;  %vm2490_vm14 = vcmp.ge.f32.partialorder %v2448_v50, 0.0  ;;  %v2757_v50 = vld [vmem:[#allocation9 + $0x5c0] sm:$0xff] }
0x103e   :  { %v2451_v17 = vmul.f32 0.3275911, %v2449_v41  ;;  %v2477_v16 = vsub.f32 0.0, %v2449_v41 }
0x103f   :  { %v2452_v42 = vmul.f32 0.3275911, %v2450_v23  ;;  %v2478_v30 = vsub.f32 0.0, %v2450_v23 }
0x1040   :  { %v2453_v21 = vadd.f32 1.0, %v2451_v17  ;;  %v2479_v38 = vmul.f32 %v2477_v16, %v2449_v41 }
0x1041   :  { %v2454_v59 = vadd.f32 1.0, %v2452_v42  ;;  %v2480_v47 = vmul.f32 %v2478_v30, %v2450_v23 }
0x1042   :  { %4782 = vrcp.f32 %v2453_v21  ;;  %v2481_v10 = vmul.f32 1.442695, %v2479_v38 }
0x1043   :  { %4784 = vrcp.f32 %v2454_v59  ;;  %v2483_v52 = vmul.f32 1.442695, %v2480_v47 }
0x1044   :  { %4786 = vpow2.f32 %v2481_v10  ;;  %v2445_v10 = vmul.f32 0.5, %v2441_v51  ;;  %v2537_v51 = vld [vmem:[#allocation13 + $0x8] sm:$0x3] }
0x1045   :  { %4788 = vpow2.f32 %v2483_v52  ;;  %v2753_v52 = vld [vmem:[#allocation9 + $0x5a0] sm:$0xff] }
0x104c   :  { %v4783_v35 = vpop.eup %4782 }
0x104d   :  { %v4785_v45 = vpop.eup %4784  ;;  %v2459_v37 = vmul.f32 1.0614054, %v4783_v35 }
0x104e   :  { %v2460_v57 = vmul.f32 1.0614054, %v4785_v45  ;;  %v4787_v24 = vpop.eup %4786 }
0x104f   :  { %v2461_v55 = vadd.f32 -1.4531521, %v2459_v37  ;;  %v4789_v23 = vpop.eup %4788 }
0x1050   :  { %v2462_v1 = vadd.f32 -1.4531521, %v2460_v57  ;;  %v2446_v57 = vmul.f32 0.5, %v2443_v29 }
0x1051   :  { %v2463_v56 = vmul.f32 %v4783_v35, %v2461_v55 }
0x1052   :  { %v2464_v27 = vmul.f32 %v4785_v45, %v2462_v1 }
0x1053   :  { %v2465_v48 = vadd.f32 1.4214138, %v2463_v56 }
0x1054   :  { %v2466_v60 = vadd.f32 1.4214138, %v2464_v27 }
0x1055   :  { %v2467_v4 = vmul.f32 %v4783_v35, %v2465_v48  ;;  %v2755_v48 = vld [vmem:[#allocation9 + $0x5b0] sm:$0xff] }
0x1056   :  { %v2468_v2 = vmul.f32 %v4785_v45, %v2466_v60  ;;  %v2758_v60 = vld [vmem:[#allocation9 + $0x5c8] sm:$0xff] }
0x1057   :  { %v2469_v43 = vadd.f32 -0.28449672, %v2467_v4  ;;  %v4492_v4 = vpack.c.bf16 %v2755_v48, %v2753_v52  ;;  %v2776_v48 = vld [vmem:[#allocation9 + $0x658] sm:$0xff] }
0x1058   :  { %v2470_v0 = vadd.f32 -0.28449672, %v2468_v2  ;;  %v4494_v2 = vpack.c.bf16 %v2760_v22, %v2758_v60  ;;  %v2773_v22 = vld [vmem:[#allocation9 + $0x640] sm:$0xff] }
0x1059   :  { %v2471_v15 = vmul.f32 %v4783_v35, %v2469_v43  ;;  %v2759_v43 = vld [vmem:[#allocation9 + $0x5d0] sm:$0xff] }
0x105a   :  { %v2472_v28 = vmul.f32 %v4785_v45, %v2470_v0  ;;  %v4496_v29 = vpack.c.bf16 %v2759_v43, %v2757_v50  ;;  %v2542_v0 = vrot.slane %v2537_v51, %v5607_v46  ;;  %v2780_v43 = vld [vmem:[#allocation9 + $0x678] sm:$0xff] }
0x105b   :  { %v2473_v49 = vadd.f32 0.2548296, %v2471_v15  ;;  %v2546_v15 = vrot.slane %v2537_v51, %v5605_v44  ;;  %v2779_v51 = vld [vmem:[#allocation9 + $0x670] sm:$0xff] }
0x105c   :  { %v2474_v3 = vadd.f32 0.2548296, %v2472_v28 }
0x105d   :  { %v2475_v61 = vmul.f32 %v4783_v35, %v2473_v49  ;;  %v2754_v35 = vld [vmem:[#allocation9 + $0x5a8] sm:$0xff] }
0x105e   :  { %v2476_v41 = vmul.f32 %v4785_v45, %v2474_v3  ;;  %v2756_v45 = vld [vmem:[#allocation9 + $0x5b8] sm:$0xff] }
0x105f   :  { %v2485_v17 = vmul.f32 %v4787_v24, %v2475_v61  ;;  %v4490_v27 = vpack.c.bf16 %v2756_v45, %v2754_v35  ;;  %v2769_v35 = vld [vmem:[#allocation9 + $0x620] sm:$0xff]  ;;  %v2771_v45 = vld [vmem:[#allocation9 + $0x630] sm:$0xff] }
0x1060   :  { %v2486_v42 = vmul.f32 %v4789_v23, %v2476_v41  ;;  %v4508_v52 = vpack.c.bf16 %v2771_v45, %v2769_v35  ;;  %v2626_v45 = vld [vmem:[#allocation15 + $0x8] sm:$0x3] }
0x1061   :  { %v2487_v21 = vsub.f32 1.0, %v2485_v17  ;;  %4491 = vmatprep.subr.bf16.mxu1 %v4490_v27  ;;  %v2774_v27 = vld [vmem:[#allocation9 + $0x648] sm:$0xff] }
0x1062   :  { %v2488_v59 = vsub.f32 1.0, %v2486_v42  ;;  %v2762_v42 = vld [vmem:[#allocation9 + $0x5e8] sm:$0xff]  ;;  %v4510_v60 = vpack.c.bf16 %v2776_v48, %v2774_v27  ;;  %v2730_v48 = vrot.slane %v2626_v45, %v5607_v46 }
0x1063   :  { %v2491_v16 = vsub.f32 0.0, %v2487_v21  ;;  %v2628_v27 = vld [vmem:[#allocation16 + $0x8] sm:$0x3] }
0x1064   :  { %v2492_v30 = vsub.f32 0.0, %v2488_v59 }
0x1065   :  { %v2493_v38 = vsel %vm2489_vm13, %v2487_v21, %v2491_v16 }
0x1066   :  { %v2495_v37 = vadd.f32 1.0, %v2493_v38  ;;  %v2494_v47 = vsel %vm2490_vm14, %v2488_v59, %v2492_v30  ;;  %v2761_v59 = vld [vmem:[#allocation9 + $0x5e0] sm:$0xff]  ;;  %v2766_v30 = vld [vmem:[#allocation9 + $0x608] sm:$0xff]  ;;  %v2768_v38 = vld [vmem:[#allocation9 + $0x618] sm:$0xff] }
0x1067   :  { %v2496_v55 = vadd.f32 1.0, %v2494_v47  ;;  %v2765_v47 = vld [vmem:[#allocation9 + $0x600] sm:$0xff] }
0x1068   :  { %v2497_v56 = vmul.f32 %v2495_v37, %v2445_v10  ;;  %v4502_v37 = vpack.c.bf16 %v2768_v38, %v2766_v30  ;;  %v2770_v10 = vld [vmem:[#allocation9 + $0x628] sm:$0xff] }
0x1069   :  { %v2498_v1 = vmul.f32 %v2496_v55, %v2446_v57  ;;  %v2767_v57 = vld [vmem:[#allocation9 + $0x610] sm:$0xff] }
0x106a   :  { %v4504_v55 = vpack.c.bf16 %v2767_v57, %v2765_v47 }
0x106b   :  { %3779 = vmatprep.mubr.msk.f32.mxu1 %vm272_vm0, %v2498_v1  ;;  %v2772_v1 = vld [vmem:[#allocation9 + $0x638] sm:$0xff] }
0x106c   :  { %2617 = vmatmul.mubr.f32.vlgmr.msra.gmra.mrb[16].mxu1 %v2497_v56  ;;  %v4506_v56 = vpack.c.bf16 %v2772_v1, %v2770_v10 }
0x106d   :  { %4493 = vmatpush1.bf16.msra.mxu1 %v4492_v4  ;;  %v2775_v4 = vld [vmem:[#allocation9 + $0x650] sm:$0xff] }
0x106e   :  { %4495 = vmatprep.subr.bf16.mxu1 %v4494_v2  ;;  %v2778_v2 = vld [vmem:[#allocation9 + $0x668] sm:$0xff]  ;;  %v4512_v50 = vpack.c.bf16 %v2775_v4, %v2773_v22  ;;  %v2734_v22 = vrot.slane %v2626_v45, %v5605_v44  ;;  %v2957_v45 = vld [vmem:[#allocation12 + $0x670] sm:$0xff] }
0x1071   :  { %4497 = vmatpush1.bf16.msra.mxu1 %v4496_v29  ;;  %v2777_v29 = vld [vmem:[#allocation9 + $0x660] sm:$0xff] }
0x113f   :  { %v2618_v28 = vpop.f32.mrb[16].mxu1 }
0x1140   :  { %v2619_v49 = vadd.f32 %v2618_v28, %v2542_v0  ;;  %v2620_v3 = vpop.f32.mrb[17].mxu1  ;;  %v4514_v0 = vpack.c.bf16 %v2780_v43, %v2778_v2  ;;  %v2784_v28 = vld [vmem:[#allocation9 + $0x698] sm:$0xff]  ;;  %v2747_v43 = vrot.slane %v2628_v27, %v5605_v44 }
0x1141   :  { %v2621_v61 = vadd.f32 %v2620_v3, %v2546_v15  ;;  %v2782_v15 = vld [vmem:[#allocation9 + $0x688] sm:$0xff] }
0x1142   :  { %v5991_v41 = vadd.f32 %v2619_v49, %v5960_v9  ;;  %v2763_v9 = vld [vmem:[#allocation9 + $0x5f0] sm:$0xff]  ;;  %v4516_v49 = vpack.c.bf16 %v2779_v51, %v2777_v29  ;;  %v4518_v3 = vpack.c.bf16 %v2784_v28, %v2782_v15  ;;  %v2743_v51 = vrot.slane %v2628_v27, %v5607_v46 }
0x1143   :  { %v5988_v24 = vadd.f32 %v2621_v61, %v5958_v36  ;;  %v2764_v36 = vld [vmem:[#allocation9 + $0x5f8] sm:$0xff]  ;;  %v4500_v16 = vpack.c.bf16 %v2763_v9, %v2761_v59  ;;  %v2781_v61 = vld [vmem:[#allocation9 + $0x680] sm:$0xff]  ;;  %v2787_v9 = vld [vmem:[#allocation9 + $0x6b0] sm:$0xff] }
0x1144   :  { %v2629_v17 = vmul.f32 %v5991_v41, %v5991_v41  ;;  %v4498_v21 = vpack.c.bf16 %v2764_v36, %v2762_v42  ;;  %v2788_v42 = vld [vmem:[#allocation9 + $0x6b8] sm:$0xff]  ;;  %v2785_v59 = vld [vmem:[#allocation9 + $0x6a0] sm:$0xff] }
0x1145   :  { %v2630_v23 = vmul.f32 %v5988_v24, %v5988_v24  ;;  %3780 = vmatprep.mubr.msk.f32.mxu0 %vm272_vm0, %v5988_v24  ;;  %v2944_v28 = vld [vmem:[#allocation12 + $0x608] sm:$0xff] }
0x1146   :  { %2702 = vmatmul.mubr.f32.vlgmr.msra.gmra.mrb[24].mxu0 %v5991_v41  ;;  %4499 = vmatprep.subr.bf16.mxu1 %v4498_v21  ;;  %v2960_v27 = vld [vmem:[#allocation12 + $0x688] sm:$0xff] }
0x1147   :  { %3781 = vmatprep.mubr.msk.f32.mxu0 %vm272_vm0, %v2630_v23  ;;  %4501 = vmatpush1.bf16.msra.mxu1 %v4500_v16  ;;  %v2783_v23 = vld [vmem:[#allocation9 + $0x690] sm:$0xff]  ;;  %v4524_v16 = vpack.c.bf16 %v2787_v9, %v2785_v59  ;;  %v2949_v9 = vld [vmem:[#allocation12 + $0x630] sm:$0xff] }
0x1148   :  { %4503 = vmatprep.subr.bf16.mxu1 %v4502_v37  ;;  %v4520_v36 = vpack.c.bf16 %v2783_v23, %v2781_v61  ;;  %v2943_v61 = vld [vmem:[#allocation12 + $0x600] sm:$0xff]  ;;  %v2945_v23 = vld [vmem:[#allocation12 + $0x610] sm:$0xff] }
0x1149   :  { %v2947_v59 = vld [vmem:[#allocation12 + $0x620] sm:$0xff] }
0x114a   :  { %2708 = vmatmul.mubr.f32.gmra.mrb[26].mxu0 %v2629_v17  ;;  %v2786_v17 = vld [vmem:[#allocation9 + $0x6a8] sm:$0xff] }
0x114b   :  { %4505 = vmatpush1.bf16.msra.mxu1 %v4504_v55  ;;  %v4522_v21 = vpack.c.bf16 %v2788_v42, %v2786_v17  ;;  %v4540_v17 = vpack.c.bf16 %v2945_v23, %v2943_v61  ;;  %v2948_v42 = vld [vmem:[#allocation12 + $0x628] sm:$0xff] }
0x114c   :  { %4507 = vmatprep.subr.bf16.mxu1 %v4506_v56 }
0x114f   :  { %4509 = vmatpush1.bf16.msra.mxu1 %v4508_v52 }
0x1150   :  { %4511 = vmatprep.subr.bf16.mxu1 %v4510_v60 }
0x1153   :  { %4513 = vmatpush1.bf16.msra.mxu1 %v4512_v50 }
0x1154   :  { %4515 = vmatprep.subr.bf16.mxu1 %v4514_v0 }
0x1157   :  { %4517 = vmatpush1.bf16.msra.mxu1 %v4516_v49  ;;  %v2946_v49 = vld [vmem:[#allocation12 + $0x618] sm:$0xff] }
0x1158   :  { %4519 = vmatprep.subr.bf16.mxu1 %v4518_v3  ;;  %v4538_v3 = vpack.c.bf16 %v2946_v49, %v2944_v28 }
0x115b   :  { %4521 = vmatpush1.bf16.msra.mxu1 %v4520_v36  ;;  %v2950_v36 = vld [vmem:[#allocation12 + $0x638] sm:$0xff] }
0x115c   :  { %4523 = vmatprep.subr.bf16.mxu1 %v4522_v21  ;;  %v4542_v21 = vpack.c.bf16 %v2950_v36, %v2948_v42 }
0x115f   :  { %4525 = vmatpush1.bf16.msra.mxu1 %v4524_v16  ;;  %v4544_v16 = vpack.c.bf16 %v2949_v9, %v2947_v59 }
0x1160   :  { %4563 = vmatprep.subr.bf16.mxu1 %v5629_v58 }
0x1219   :  { %v2703_v30 = vpop.f32.mrb[24].mxu0 }
0x121a   :  { %v2705_v38 = vpop.f32.mrb[25].mxu0  ;;  %v2714_v37 = vmul.f32 %v2703_v30, %v2703_v30  ;;  %v2718_v52 = vsub.f32 %v5991_v41, %v2703_v30  ;;  %v2952_v30 = vld [vmem:[#allocation12 + $0x648] sm:$0xff] }
0x121b   :  { %v2715_v47 = vmul.f32 %v2705_v38, %v2705_v38  ;;  %v2719_v58 = vsub.f32 %v5988_v24, %v2705_v38  ;;  %v2954_v38 = vld [vmem:[#allocation12 + $0x658] sm:$0xff] }
0x121d   :  { %v2709_v57 = vpop.f32.mrb[26].mxu0 }
0x121e   :  { %v2716_v55 = vsub.f32 %v2709_v57, %v2714_v37  ;;  %v2711_v10 = vpop.f32.mrb[27].mxu0  ;;  %v4546_v37 = vpack.c.bf16 %v2954_v38, %v2952_v30  ;;  %v2953_v57 = vld [vmem:[#allocation12 + $0x650] sm:$0xff] }
0x121f   :  { %v2717_v1 = vsub.f32 %v2711_v10, %v2715_v47  ;;  %v2951_v47 = vld [vmem:[#allocation12 + $0x640] sm:$0xff]  ;;  %v2956_v10 = vld [vmem:[#allocation12 + $0x668] sm:$0xff] }
0x1220   :  { %v2720_v56 = vadd.f32 1e-05, %v2716_v55  ;;  %v4548_v55 = vpack.c.bf16 %v2953_v57, %v2951_v47 }
0x1221   :  { %v2721_v35 = vadd.f32 1e-05, %v2717_v1  ;;  %v2958_v1 = vld [vmem:[#allocation12 + $0x678] sm:$0xff] }
0x1222   :  { %4790 = vrsqrt.f32 %v2720_v56  ;;  %v4550_v56 = vpack.c.bf16 %v2958_v1, %v2956_v10 }
0x1223   :  { %4792 = vrsqrt.f32 %v2721_v35  ;;  %v2955_v35 = vld [vmem:[#allocation12 + $0x660] sm:$0xff] }
0x122c   :  { %v4791_v60 = vpop.eup %4790 }
0x122d   :  { %v4793_v4 = vpop.eup %4792  ;;  %v2724_v2 = vmul.f32 %v4791_v60, %v2718_v52  ;;  %v4552_v52 = vpack.c.bf16 %v2957_v45, %v2955_v35 }
0x122e   :  { %v2725_v50 = vmul.f32 %v4793_v4, %v2719_v58  ;;  %v2959_v58 = vld [vmem:[#allocation12 + $0x680] sm:$0xff] }
0x122f   :  { %v2737_v29 = vmul.f32 %v2730_v48, %v2724_v2  ;;  %v2962_v48 = vld [vmem:[#allocation12 + $0x698] sm:$0xff]  ;;  %v2964_v2 = vld [vmem:[#allocation12 + $0x6a8] sm:$0xff] }
0x1230   :  { %v2738_v0 = vmul.f32 %v2734_v22, %v2725_v50  ;;  %v4554_v60 = vpack.c.bf16 %v2962_v48, %v2960_v27  ;;  %v2961_v22 = vld [vmem:[#allocation12 + $0x690] sm:$0xff]  ;;  %v2966_v50 = vld [vmem:[#allocation12 + $0x6b8] sm:$0xff] }
0x1231   :  { %v6010_v41 = vadd.f32 %v2743_v51, %v2737_v29  ;;  %v4556_v4 = vpack.c.bf16 %v2961_v22, %v2959_v58  ;;  %v2963_v29 = vld [vmem:[#allocation12 + $0x6a0] sm:$0xff]  ;;  %v2965_v51 = vld [vmem:[#allocation12 + $0x6b0] sm:$0xff] }
0x1232   :  { %v6008_v15 = vadd.f32 %v2747_v43, %v2738_v0  ;;  %v4558_v43 = vpack.c.bf16 %v2966_v50, %v2964_v2  ;;  %v4560_v0 = vpack.c.bf16 %v2965_v51, %v2963_v29 }
0x1234   :  { %3782 = vmatprep.mubr.msk.f32.mxu1 %vm272_vm0, %v6008_v15 }
0x1235   :  { %2870 = vmatmul.mubr.f32.vlgmr.msra.gmra.mrb[18].mxu1 %v6010_v41 }
0x1236   :  { %4565 = vmatpush1.bf16.msra.mxu1 %v5640_v62  ;;  %v2932_v62 = vld [vmem:[#allocation12 + $0x5a8] sm:$0xff] }
0x1237   :  { %4567 = vmatprep.subr.bf16.mxu1 %v5642_v63  ;;  %v2934_v63 = vld [vmem:[#allocation12 + $0x5b8] sm:$0xff] }
0x123a   :  { %4569 = vmatpush1.bf16.msra.mxu1 %v5658_v5  ;;  %v4526_v5 = vpack.c.bf16 %v2934_v63, %v2932_v62  ;;  %v2790_v62 = vld [vmem:[#allocation10 + $0xa] sm:$0x3] }
0x123b   :  { %4571 = vmatprep.subr.bf16.mxu1 %v5661_v7  ;;  %v2931_v7 = vld [vmem:[#allocation12 + $0x5a0] sm:$0xff]  ;;  %v2795_v63 = vrot.slane %v2790_v62, %v5607_v46 }
0x123c   :  { %4527 = vmatprep.subr.bf16.mxu0 %v4526_v5  ;;  %v2799_v5 = vrot.slane %v2790_v62, %v5605_v44  ;;  %v3760_v62 = vld [vmem:[#allocation7] ss:$0 sm:$0xff] }
0x123e   :  { %4573 = vmatpush1.bf16.msra.mxu1 %v5676_v11  ;;  %v2933_v11 = vld [vmem:[#allocation12 + $0x5b0] sm:$0xff] }
0x123f   :  { %4575 = vmatprep.subr.bf16.mxu1 %v5679_v12  ;;  %v4528_v12 = vpack.c.bf16 %v2933_v11, %v2931_v7 }
0x1241   :  { %4529 = vmatpush1.bf16.msra.mxu0 %v4528_v12 }
0x1242   :  { %4577 = vmatpush1.bf16.msra.mxu1 %v5694_v19  ;;  %v2936_v19 = vld [vmem:[#allocation12 + $0x5c8] sm:$0xff] }
0x1243   :  { %4579 = vmatprep.subr.bf16.mxu1 %v5697_v20  ;;  %v2938_v20 = vld [vmem:[#allocation12 + $0x5d8] sm:$0xff] }
0x1246   :  { %4581 = vmatpush1.bf16.msra.mxu1 %v5712_v25  ;;  %v4530_v25 = vpack.c.bf16 %v2938_v20, %v2936_v19 }
0x1247   :  { %4583 = vmatprep.subr.bf16.mxu1 %v5715_v26  ;;  %v2935_v26 = vld [vmem:[#allocation12 + $0x5c0] sm:$0xff] }
0x1248   :  { %4531 = vmatprep.subr.bf16.mxu0 %v4530_v25 }
0x124a   :  { %4585 = vmatpush1.bf16.msra.mxu1 %v5730_v31  ;;  %v2937_v31 = vld [vmem:[#allocation12 + $0x5d0] sm:$0xff] }
0x124b   :  { %4587 = vmatprep.subr.bf16.mxu1 %v5733_v33  ;;  %v4532_v33 = vpack.c.bf16 %v2937_v31, %v2935_v26 }
0x124d   :  { %4533 = vmatpush1.bf16.msra.mxu0 %v4532_v33 }
0x124e   :  { %4589 = vmatpush1.bf16.msra.mxu1 %v5748_v39  ;;  %v2940_v39 = vld [vmem:[#allocation12 + $0x5e8] sm:$0xff] }
0x124f   :  { %4591 = vmatprep.subr.bf16.mxu1 %v5751_v40  ;;  %v2942_v40 = vld [vmem:[#allocation12 + $0x5f8] sm:$0xff] }
0x1252   :  { %4593 = vmatpush1.bf16.msra.mxu1 %v5764_v54  ;;  %v4534_v54 = vpack.c.bf16 %v2942_v40, %v2940_v39 }
0x1253   :  { %4595 = vmatprep.subr.bf16.mxu1 %v5773_v8  ;;  %v2939_v8 = vld [vmem:[#allocation12 + $0x5e0] sm:$0xff] }
0x1254   :  { %4535 = vmatprep.subr.bf16.mxu0 %v4534_v54 }
0x1256   :  { %4597 = vmatpush1.bf16.msra.mxu1 %v5781_v18  ;;  %v2941_v18 = vld [vmem:[#allocation12 + $0x5f0] sm:$0xff] }
0x1257   :  { %v4536_v24 = vpack.c.bf16 %v2941_v18, %v2939_v8 }
0x1259   :  { %4537 = vmatpush1.bf16.msra.mxu0 %v4536_v24 }
0x125a   :  { %4539 = vmatprep.subr.bf16.mxu0 %v4538_v3 }
0x125d   :  { %4541 = vmatpush1.bf16.msra.mxu0 %v4540_v17 }
0x125e   :  { %4543 = vmatprep.subr.bf16.mxu0 %v4542_v21 }
0x1261   :  { %4545 = vmatpush1.bf16.msra.mxu0 %v4544_v16 }
0x1262   :  { %4547 = vmatprep.subr.bf16.mxu0 %v4546_v37 }
0x1265   :  { %4549 = vmatpush1.bf16.msra.mxu0 %v4548_v55 }
0x1266   :  { %4551 = vmatprep.subr.bf16.mxu0 %v4550_v56 }
0x1269   :  { %4553 = vmatpush1.bf16.msra.mxu0 %v4552_v52 }
0x126a   :  { %4555 = vmatprep.subr.bf16.mxu0 %v4554_v60 }
0x126d   :  { %4557 = vmatpush1.bf16.msra.mxu0 %v4556_v4 }
0x126e   :  { %4559 = vmatprep.subr.bf16.mxu0 %v4558_v43 }
0x1271   :  { %4561 = vmatpush1.bf16.msra.mxu0 %v4560_v0 }
0x1308   :  { %v2871_v7 = vpop.f32.mrb[18].mxu1 }
0x1309   :  { %v2872_v11 = vadd.f32 %v2871_v7, %v2795_v63  ;;  %v2873_v12 = vpop.f32.mrb[19].mxu1 }
0x130a   :  { %v2874_v19 = vadd.f32 %v2873_v12, %v2799_v5  ;;  %v6035_v12 = vadd.f32 %v3760_v62, %v5617_v53 }
0x130b   :  { %v2878_v20 = vmul.f32 0.70710677, %v2872_v11  ;;  %v2876_v63 = vmul.f32 0.5, %v2872_v11 }
0x130c   :  { %v2879_v25 = vmul.f32 0.70710677, %v2874_v19  ;;  %v2877_v51 = vmul.f32 0.5, %v2874_v19 }
0x130d   :  { %v2880_v26 = vand.u32 2147483647, %v2878_v20  ;;  %vm2920_vm15 = vcmp.ge.f32.partialorder %v2878_v20, 0.0  ;;  %v2968_v20 = vld [vmem:[#allocation13 + $0xa] sm:$0x3] }
0x130e   :  { %v2881_v31 = vand.u32 2147483647, %v2879_v25  ;;  %vm2921_vm1 = vcmp.ge.f32.partialorder %v2879_v25, 0.0  ;;  %v2973_v25 = vrot.slane %v2968_v20, %v5607_v46  ;;  %v2977_v19 = vrot.slane %v2968_v20, %v5605_v44  ;;  %v3326_v20 = vld [vmem:[#allocation22 + $0x18] sm:$0xff] }
0x130f   :  { %v2882_v33 = vmul.f32 0.3275911, %v2880_v26  ;;  %v2908_v8 = vsub.f32 0.0, %v2880_v26 }
0x1310   :  { %v2883_v39 = vmul.f32 0.3275911, %v2881_v31  ;;  %v2909_v18 = vsub.f32 0.0, %v2881_v31 }
0x1311   :  { %v2884_v40 = vadd.f32 1.0, %v2882_v33  ;;  %v2910_v28 = vmul.f32 %v2908_v8, %v2880_v26  ;;  %v3183_v8 = vld [vmem:[#allocation18] sm:$0xff] }
0x1312   :  { %v2885_v54 = vadd.f32 1.0, %v2883_v39  ;;  %v2911_v61 = vmul.f32 %v2909_v18, %v2881_v31  ;;  %v3184_v18 = vld [vmem:[#allocation18 + $0x8] sm:$0xff] }
0x1313   :  { %4794 = vrcp.f32 %v2884_v40  ;;  %v2912_v42 = vmul.f32 1.442695, %v2910_v28  ;;  %v3185_v28 = vld [vmem:[#allocation18 + $0x10] sm:$0xff] }
0x1314   :  { %4796 = vrcp.f32 %v2885_v54  ;;  %v2914_v59 = vmul.f32 1.442695, %v2911_v61 }
0x1315   :  { %4798 = vpow2.f32 %v2912_v42 }
0x1316   :  { %4800 = vpow2.f32 %v2914_v59 }
0x131d   :  { %v4795_v24 = vpop.eup %4794 }
0x131e   :  { %v4797_v49 = vpop.eup %4796  ;;  %v2890_v3 = vmul.f32 1.0614054, %v4795_v24 }
0x131f   :  { %v2891_v23 = vmul.f32 1.0614054, %v4797_v49  ;;  %v4799_v45 = vpop.eup %4798 }
0x1320   :  { %v2892_v17 = vadd.f32 -1.4531521, %v2890_v3  ;;  %v4801_v27 = vpop.eup %4800 }
0x1321   :  { %v2893_v36 = vadd.f32 -1.4531521, %v2891_v23  ;;  %v3189_v23 = vld [vmem:[#allocation18 + $0x30] sm:$0xff] }
0x1322   :  { %v2894_v21 = vmul.f32 %v4795_v24, %v2892_v17  ;;  %v3190_v17 = vld [vmem:[#allocation18 + $0x38] sm:$0xff] }
0x1323   :  { %v2895_v9 = vmul.f32 %v4797_v49, %v2893_v36  ;;  %v4610_v42 = vpack.c.bf16 %v3190_v17, %v3189_v23  ;;  %v3191_v36 = vld [vmem:[#allocation18 + $0x40] sm:$0xff] }
0x1324   :  { %v2896_v16 = vadd.f32 1.4214138, %v2894_v21  ;;  %v3192_v21 = vld [vmem:[#allocation18 + $0x48] sm:$0xff]  ;;  %v3422_v23 = vld [vmem:[%s6249_s21 + $0x30] sm:$0xff] }
0x1325   :  { %v2897_v30 = vadd.f32 1.4214138, %v2895_v9  ;;  %v4614_v59 = vpack.c.bf16 %v3192_v21, %v3191_v36  ;;  %v3423_v17 = vld [vmem:[%s6249_s21 + $0x38] sm:$0xff]  ;;  %v3424_v36 = vld [vmem:[%s6249_s21 + $0x40] sm:$0xff]  ;;  %v3425_v21 = vld [vmem:[%s6249_s21 + $0x48] sm:$0xff] }
0x1326   :  { %v2898_v38 = vmul.f32 %v4795_v24, %v2896_v16 }
0x1327   :  { %v2899_v37 = vmul.f32 %v4797_v49, %v2897_v30 }
0x1328   :  { %v2900_v47 = vadd.f32 -0.28449672, %v2898_v38 }
0x1329   :  { %v2901_v57 = vadd.f32 -0.28449672, %v2899_v37 }
0x132a   :  { %v2902_v55 = vmul.f32 %v4795_v24, %v2900_v47 }
0x132b   :  { %v2903_v10 = vmul.f32 %v4797_v49, %v2901_v57 }
0x132c   :  { %v2904_v1 = vadd.f32 0.2548296, %v2902_v55 }
0x132d   :  { %v2905_v56 = vadd.f32 0.2548296, %v2903_v10 }
0x132e   :  { %v2906_v35 = vmul.f32 %v4795_v24, %v2904_v1  ;;  %v4598_v24 = vpack.c.bf16 %v3184_v18, %v3183_v8  ;;  %v3416_v8 = vld [vmem:[%s6249_s21] sm:$0xff]  ;;  %v3417_v18 = vld [vmem:[%s6249_s21 + $0x8] sm:$0xff] }
0x132f   :  { %v2907_v52 = vmul.f32 %v4797_v49, %v2905_v56  ;;  %v3186_v49 = vld [vmem:[#allocation18 + $0x18] sm:$0xff]  ;;  %v3057_v56 = vld [vmem:[#allocation15 + $0xa] sm:$0x3] }
0x1330   :  { %v2916_v48 = vmul.f32 %v4799_v45, %v2906_v35  ;;  %4599 = vmatprep.subr.bf16.mxu0 %v4598_v24  ;;  %v4602_v3 = vpack.c.bf16 %v3186_v49, %v3185_v28  ;;  %v3059_v35 = vld [vmem:[#allocation16 + $0xa] sm:$0x3]  ;;  %v4638_v28 = vpack.c.bf16 %v3417_v18, %v3416_v8  ;;  %v3419_v49 = vld [vmem:[%s6249_s21 + $0x18] sm:$0xff] }
0x1331   :  { %v2917_v60 = vmul.f32 %v4801_v27, %v2907_v52  ;;  %v3161_v52 = vrot.slane %v3057_v56, %v5607_v46 }
0x1332   :  { %v2918_v58 = vsub.f32 1.0, %v2916_v48 }
0x1333   :  { %v2919_v22 = vsub.f32 1.0, %v2917_v60  ;;  %v3165_v60 = vrot.slane %v3057_v56, %v5605_v44 }
0x1334   :  { %v2922_v4 = vsub.f32 0.0, %v2918_v58 }
0x1335   :  { %v2923_v2 = vsub.f32 0.0, %v2919_v22 }
0x1336   :  { %v2924_v50 = vsel %vm2920_vm15, %v2918_v58, %v2922_v4  ;;  %v3174_v4 = vrot.slane %v3059_v35, %v5607_v46 }
0x1337   :  { %v2926_v43 = vadd.f32 1.0, %v2924_v50  ;;  %v2925_v29 = vsel %vm2921_vm1, %v2919_v22, %v2923_v2  ;;  %v3178_v50 = vrot.slane %v3059_v35, %v5605_v44  ;;  %v3323_v44 = vld [vmem:[#allocation22] sm:$0xff] }
0x1338   :  { %v2927_v0 = vadd.f32 1.0, %v2925_v29 }
0x1339   :  { %v2928_v7 = vmul.f32 %v2926_v43, %v2876_v63  ;;  %v3324_v63 = vld [vmem:[#allocation22 + $0x8] sm:$0xff] }
0x133a   :  { %v2929_v5 = vmul.f32 %v2927_v0, %v2877_v51  ;;  %v3195_v0 = vmul.f32 %v6035_v12, %v6035_v12 }
0x133c   :  { %3783 = vmatprep.mubr.msk.f32.mxu0 %vm272_vm0, %v2929_v5  ;;  %v4618_v5 = vpack.c.bf16 %v3324_v63, %v3323_v44  ;;  %v3514_v44 = vld [vmem:[%s6250_s22] sm:$0xff] }
0x133d   :  { %3048 = vmatmul.mubr.f32.vlgmr.msra.gmra.mrb[28].mxu0 %v2928_v7  ;;  %v3325_v7 = vld [vmem:[#allocation22 + $0x10] sm:$0xff] }
0x133e   :  { %3880 = vmatprep.mubr.msk.f32.mxu0 %vm3197_vm2, %v6035_v12  ;;  %4601 = vmatpush3.bf16.msra.mxu0 %v4598_v24  ;;  %v3418_v24 = vld [vmem:[%s6249_s21 + $0x10] sm:$0xff] }
0x133f   :  { %4603 = vmatprep.subr.bf16.mxu0 %v4602_v3  ;;  %4619 = vmatprep.subr.bf16.mxu1 %v4618_v5 }
0x1342   :  { %4605 = vmatpush3.bf16.msra.mxu0 %v4602_v3  ;;  %v4642_v3 = vpack.c.bf16 %v3419_v49, %v3418_v24 }
0x1410   :  { %v3049_v26 = vpop.f32.mrb[28].mxu0 }
0x1411   :  { %v3050_v31 = vadd.f32 %v3049_v26, %v2973_v25  ;;  %v3051_v11 = vpop.f32.mrb[29].mxu0  ;;  %v4622_v25 = vpack.c.bf16 %v3326_v20, %v3325_v7  ;;  %v3328_v26 = vld [vmem:[#allocation22 + $0x28] sm:$0xff]  ;;  %v3519_v7 = vld [vmem:[%s6250_s22 + $0x28] sm:$0xff] }
0x1412   :  { %v3052_v33 = vadd.f32 %v3051_v11, %v2977_v19  ;;  %v3327_v19 = vld [vmem:[#allocation22 + $0x20] sm:$0xff]  ;;  %v3329_v11 = vld [vmem:[#allocation22 + $0x30] sm:$0xff] }
0x1413   :  { %v3054_v53 = vadd.f32 %v3050_v31, %v6010_v41  ;;  %v3188_v41 = vld [vmem:[#allocation18 + $0x28] sm:$0xff]  ;;  %v4626_v31 = vpack.c.bf16 %v3328_v26, %v3327_v19 }
0x1414   :  { %v3055_v39 = vadd.f32 %v3052_v33, %v6008_v15  ;;  %v3187_v15 = vld [vmem:[#allocation18 + $0x20] sm:$0xff]  ;;  %v3330_v33 = vld [vmem:[#allocation22 + $0x38] sm:$0xff] }
0x1415   :  { %v3060_v54 = vmul.f32 %v3054_v53, %v3054_v53  ;;  %v4606_v61 = vpack.c.bf16 %v3188_v41, %v3187_v15  ;;  %v3420_v15 = vld [vmem:[%s6249_s21 + $0x20] sm:$0xff]  ;;  %v3421_v41 = vld [vmem:[%s6249_s21 + $0x28] sm:$0xff]  ;;  %v3521_v20 = vld [vmem:[%s6250_s22 + $0x38] sm:$0xff] }
0x1416   :  { %v3061_v40 = vmul.f32 %v3055_v39, %v3055_v39  ;;  %3784 = vmatprep.mubr.msk.f32.mxu1 %vm272_vm0, %v3055_v39  ;;  %v4666_v19 = vpack.c.bf16 %v3521_v20, %v3519_v7  ;;  %v3518_v26 = vld [vmem:[%s6250_s22 + $0x20] sm:$0xff] }
0x1417   :  { %3133 = vmatmul.mubr.f32.vlgmr.msra.gmra.mrb[20].mxu1 %v3054_v53  ;;  %4607 = vmatprep.subr.bf16.mxu0 %v4606_v61 }
0x1418   :  { %3785 = vmatprep.mubr.msk.f32.mxu1 %vm272_vm0, %v3061_v40  ;;  %4609 = vmatpush3.bf16.msra.mxu0 %v4606_v61  ;;  %v3332_v40 = vld [vmem:[#allocation22 + $0x48] sm:$0xff]  ;;  %v4646_v61 = vpack.c.bf16 %v3421_v41, %v3420_v15 }
0x1419   :  { %4611 = vmatprep.subr.bf16.mxu0 %v4610_v42  ;;  %4621 = vmatpush3.bf16.msra.mxu1 %v4618_v5  ;;  %v3516_v5 = vld [vmem:[%s6250_s22 + $0x10] sm:$0xff]  ;;  %v3529_v15 = vld [vmem:[%s6250_s22 + $0x78] sm:$0xff] }
0x141a   :  { %4623 = vmatprep.subr.bf16.mxu1 %v4622_v25 }
0x141b   :  { %3139 = vmatmul.mubr.f32.gmra.mrb[22].mxu1 %v3060_v54 }
0x141c   :  { %4613 = vmatpush3.bf16.msra.mxu0 %v4610_v42  ;;  %v4650_v42 = vpack.c.bf16 %v3423_v17, %v3422_v23  ;;  %v3528_v23 = vld [vmem:[%s6250_s22 + $0x70] sm:$0xff] }
0x141d   :  { %4615 = vmatprep.subr.bf16.mxu0 %v4614_v59  ;;  %4625 = vmatpush3.bf16.msra.mxu1 %v4622_v25  ;;  %v4664_v25 = vpack.c.bf16 %v3516_v5, %v3514_v44 }
0x141e   :  { %4627 = vmatprep.subr.bf16.mxu1 %v4626_v31 }
0x1420   :  { %4617 = vmatpush3.bf16.msra.mxu0 %v4614_v59  ;;  %v4654_v59 = vpack.c.bf16 %v3425_v21, %v3424_v36  ;;  %v3636_v36 = vld [vmem:[%s6251_s23] sm:$0xff]  ;;  %v3637_v21 = vld [vmem:[%s6251_s23 + $0x8] sm:$0xff] }
0x1421   :  { %4629 = vmatpush3.bf16.msra.mxu1 %v4626_v31  ;;  %4639 = vmatprep.subr.bf16.mxu0 %v4638_v28  ;;  %v3520_v31 = vld [vmem:[%s6250_s22 + $0x30] sm:$0xff] }
0x14ea   :  { %v3134_v9 = vpop.f32.mrb[20].mxu1 }
0x14eb   :  { %v3136_v16 = vpop.f32.mrb[21].mxu1  ;;  %v3145_v30 = vmul.f32 %v3134_v9, %v3134_v9  ;;  %v3149_v45 = vsub.f32 %v3054_v53, %v3134_v9  ;;  %v3331_v53 = vld [vmem:[#allocation22 + $0x40] sm:$0xff] }
0x14ec   :  { %v3146_v38 = vmul.f32 %v3136_v16, %v3136_v16  ;;  %v3150_v48 = vsub.f32 %v3055_v39, %v3136_v16  ;;  %v4630_v39 = vpack.c.bf16 %v3330_v33, %v3329_v11  ;;  %v4634_v54 = vpack.c.bf16 %v3332_v40, %v3331_v53  ;;  %v3523_v11 = vld [vmem:[%s6250_s22 + $0x48] sm:$0xff]  ;;  %v3525_v33 = vld [vmem:[%s6250_s22 + $0x58] sm:$0xff]  ;;  %v3522_v40 = vld [vmem:[%s6250_s22 + $0x40] sm:$0xff] }
0x14ed   :  { %v4670_v53 = vpack.c.bf16 %v3525_v33, %v3523_v11 }
0x14ee   :  { %v3140_v37 = vpop.f32.mrb[22].mxu1  ;;  %4631 = vmatprep.subr.bf16.mxu1 %v4630_v39 }
0x14ef   :  { %v3147_v47 = vsub.f32 %v3140_v37, %v3145_v30  ;;  %v3142_v57 = vpop.f32.mrb[23].mxu1  ;;  %4633 = vmatpush3.bf16.msra.mxu1 %v4630_v39  ;;  %v4668_v39 = vpack.c.bf16 %v3520_v31, %v3518_v26 }
0x14f0   :  { %v3148_v55 = vsub.f32 %v3142_v57, %v3146_v38  ;;  %4635 = vmatprep.subr.bf16.mxu1 %v4634_v54 }
0x14f1   :  { %v3151_v10 = vadd.f32 1e-05, %v3147_v47 }
0x14f2   :  { %v3152_v1 = vadd.f32 1e-05, %v3148_v55 }
0x14f3   :  { %4802 = vrsqrt.f32 %v3151_v10  ;;  %4637 = vmatpush3.bf16.msra.mxu1 %v4634_v54  ;;  %v3524_v54 = vld [vmem:[%s6250_s22 + $0x50] sm:$0xff] }
0x14f4   :  { %4804 = vrsqrt.f32 %v3152_v1  ;;  %v4672_v8 = vpack.c.bf16 %v3524_v54, %v3522_v40 }
0x14fd   :  { %v4803_v27 = vpop.eup %4802 }
0x14fe   :  { %v4805_v58 = vpop.eup %4804  ;;  %v3155_v22 = vmul.f32 %v4803_v27, %v3149_v45 }
0x14ff   :  { %v3156_v2 = vmul.f32 %v4805_v58, %v3150_v48  ;;  %v3791_v58 = vld [vmem:[#allocation21] ss:$0 sm:$0xff] }
0x1500   :  { %v3168_v43 = vmul.f32 %v3161_v52, %v3155_v22  ;;  %v3790_v52 = vld [vmem:[#allocation19] ss:$0 sm:$0xff] }
0x1501   :  { %v3169_v29 = vmul.f32 %v3165_v60, %v3156_v2 }
0x1502   :  { %v6050_v51 = vadd.f32 %v3174_v4, %v3168_v43  ;;  %v3426_v43 = vld [vmem:[%s6249_s21 + $0x50] sm:$0xff] }
0x1503   :  { %v6054_v62 = vadd.f32 %v3178_v50, %v3169_v29 }
0x1504   :  { %3881 = vmatmul.mubr.msk.f32.vlgmr.msra.gmra.mrb[30].mxu0 %vm3197_vm2, %v6050_v51  ;;  %v3196_v46 = vmul.f32 %v6050_v51, %v6050_v51 }
0x1505   :  { %3883 = vmatprep.mubr.msk.f32.mxu0 %vm3197_vm2, %v3195_v0  ;;  %4641 = vmatpush3.bf16.msra.mxu0 %v4638_v28  ;;  %v3515_v0 = vld [vmem:[%s6250_s22 + $0x8] sm:$0xff] }
0x1506   :  { %4643 = vmatprep.subr.bf16.mxu0 %v4642_v3 }
0x1508   :  { %3884 = vmatmul.mubr.msk.f32.gmra.mrb[32].mxu0 %vm3197_vm2, %v3196_v46  ;;  %v3517_v46 = vld [vmem:[%s6250_s22 + $0x18] sm:$0xff] }
0x1509   :  { %4645 = vmatpush3.bf16.msra.mxu0 %v4642_v3  ;;  %v4662_v63 = vpack.c.bf16 %v3517_v46, %v3515_v0  ;;  %v3527_v3 = vld [vmem:[%s6250_s22 + $0x68] sm:$0xff]  ;;  %v3652_v0 = vld [vmem:[%s6251_s23 + $0x80] sm:$0xff] }
0x150a   :  { %4647 = vmatprep.subr.bf16.mxu0 %v4646_v61  ;;  %v4674_v41 = vpack.c.bf16 %v3529_v15, %v3527_v3  ;;  %v3653_v46 = vld [vmem:[%s6251_s23 + $0x88] sm:$0xff] }
0x150b   :  { %4663 = vmatprep.subr.bf16.mxu1 %v4662_v63  ;;  %v4703_v44 = vpack.c.bf16 %v3653_v46, %v3652_v0  ;;  %v3735_v63 = vld [vmem:[%s6280_s14] sm:$0xff] }
0x150c   :  { %3738 = vperm.xlu0 %4731, %v3735_v63  }
0x150d   :  { %4649 = vmatpush3.bf16.msra.mxu0 %v4646_v61  ;;  %v3526_v61 = vld [vmem:[%s6250_s22 + $0x60] sm:$0xff] }
0x150e   :  { %4651 = vmatprep.subr.bf16.mxu0 %v4650_v42  ;;  %v4676_v17 = vpack.c.bf16 %v3528_v23, %v3526_v61  ;;  %v3798_v61 = vld [vmem:[#allocation24] ss:$0 sm:$0xff] }
0x1511   :  { %4653 = vmatpush3.bf16.msra.mxu0 %v4650_v42 }
0x1512   :  { %4655 = vmatprep.subr.bf16.mxu0 %v4654_v59 }
0x1515   :  { %4657 = vmatpush3.bf16.msra.mxu0 %v4654_v59 }
0x15d7   :  { %v3882_v9 = vpop.f32.mrb[30].mxu0 }
0x15d8   :  { %v3276_v16 = vpop.f32.mrb[31].mxu0  ;;  %v3296_v30 = vmul.f32 %v3882_v9, %v3882_v9  ;;  %v3300_v56 = vsub.f32 %v6050_v51, %v3882_v9 }
0x15d9   :  { %v3295_v38 = vmul.f32 %v3276_v16, %v3276_v16  ;;  %v3299_v45 = vsub.f32 %v6035_v12, %v3276_v16  ;;  %v3427_v12 = vld [vmem:[%s6249_s21 + $0x58] sm:$0xff] }
0x15da   :  { %v4658_v29 = vpack.c.bf16 %v3427_v12, %v3426_v43  ;;  %v3650_v43 = vld [vmem:[%s6251_s23 + $0x70] sm:$0xff]  ;;  %v3651_v12 = vld [vmem:[%s6251_s23 + $0x78] sm:$0xff] }
0x15db   :  { %v3885_v37 = vpop.f32.mrb[32].mxu0 }
0x15dc   :  { %v3298_v47 = vsub.f32 %v3885_v37, %v3296_v30  ;;  %v3286_v57 = vpop.f32.mrb[33].mxu0  ;;  %4659 = vmatprep.subr.bf16.mxu0 %v4658_v29  ;;  %v4679_v30 = vpack.c.bf16 %v3637_v21, %v3636_v36  ;;  %v3638_v37 = vld [vmem:[%s6251_s23 + $0x10] sm:$0xff]  ;;  %v3739_v36 = vpop.permute.xlu0 %3738 }
0x15dd   :  { %v3297_v55 = vsub.f32 %v3286_v57, %v3295_v38  ;;  %4661 = vmatpush3.bf16.msra.mxu0 %v4658_v29  ;;  %v4700_v29 = vpack.c.bf16 %v3651_v12, %v3650_v43 }
0x15de   :  { %v3302_v10 = vadd.f32 1e-05, %v3298_v47  ;;  %v3639_v47 = vld [vmem:[%s6251_s23 + $0x18] sm:$0xff] }
0x15df   :  { %v3301_v1 = vadd.f32 1e-05, %v3297_v55  ;;  %v4682_v57 = vpack.c.bf16 %v3639_v47, %v3638_v37 }
0x15e0   :  { %4806 = vrsqrt.f32 %v3302_v10  ;;  %v3640_v10 = vld [vmem:[%s6251_s23 + $0x20] sm:$0xff] }
0x15e1   :  { %4808 = vrsqrt.f32 %v3301_v1  ;;  %v3641_v1 = vld [vmem:[%s6251_s23 + $0x28] sm:$0xff] }
0x15ea   :  { %v4807_v35 = vpop.eup %4806 }
0x15eb   :  { %v4809_v27 = vpop.eup %4808  ;;  %v3306_v48 = vmul.f32 %v4807_v35, %v3300_v56  ;;  %v4685_v56 = vpack.c.bf16 %v3641_v1, %v3640_v10  ;;  %v3643_v35 = vld [vmem:[%s6251_s23 + $0x38] sm:$0xff] }
0x15ec   :  { %v3305_v60 = vmul.f32 %v4809_v27, %v3299_v45  ;;  %v3645_v27 = vld [vmem:[%s6251_s23 + $0x48] sm:$0xff] }
0x15ed   :  { %v3314_v22 = vmul.f32 %v3790_v52, %v3306_v48 }
0x15ee   :  { %v3313_v4 = vmul.f32 %v3790_v52, %v3305_v60  ;;  %v3644_v52 = vld [vmem:[%s6251_s23 + $0x40] sm:$0xff]  ;;  %v3646_v60 = vld [vmem:[%s6251_s23 + $0x50] sm:$0xff] }
0x15ef   :  { %v3322_v50 = vadd.f32 %v3791_v58, %v3314_v22  ;;  %v4691_v48 = vpack.c.bf16 %v3645_v27, %v3644_v52 }
0x15f0   :  { %v3321_v2 = vadd.f32 %v3791_v58, %v3313_v4  ;;  %v3647_v58 = vld [vmem:[%s6251_s23 + $0x58] sm:$0xff]  ;;  %v3648_v4 = vld [vmem:[%s6251_s23 + $0x60] sm:$0xff] }
0x15f1   :  { %v4694_v22 = vpack.c.bf16 %v3647_v58, %v3646_v60 }
0x15f2   :  { %3906 = vmatprep.mubr.msk.f32.mxu1 %vm3197_vm2, %v3321_v2  ;;  %v3649_v2 = vld [vmem:[%s6251_s23 + $0x68] sm:$0xff] }
0x15f3   :  { %3907 = vmatmul.mubr.msk.f32.vlgmr.msra.gmra.mrb[24].mxu1 %vm3197_vm2, %v3322_v50  ;;  %v4697_v50 = vpack.c.bf16 %v3649_v2, %v3648_v4 }
0x15f4   :  { %3601 = vmatprep.mubr.f32.mxu1 %v5188_v14  ;;  %4665 = vmatpush1.bf16.msra.mxu1 %v4664_v25 }
0x15f5   :  { %4667 = vmatprep.subr.bf16.mxu1 %v4666_v19 }
0x15f8   :  { %4669 = vmatpush1.bf16.msra.mxu1 %v4668_v39 }
0x15f9   :  { %4671 = vmatprep.subr.bf16.mxu1 %v4670_v53 }
0x15fc   :  { %4673 = vmatpush1.bf16.msra.mxu1 %v4672_v8 }
0x15fd   :  { %4675 = vmatprep.subr.bf16.mxu1 %v4674_v41 }
0x1600   :  { %4677 = vmatpush1.bf16.msra.mxu1 %v4676_v17 }
0x1601   :  { %4678 = vmatprep.subr.bf16.mxu1 %v5186_v13 }
0x16c6   :  { %v3908_v18 = vpop.f32.mrb[24].mxu1 }
0x16c7   :  { %v3405_v24 = vpop.f32.mrb[25].mxu1  ;;  %v3415_v49 = vmul.f32 %v3908_v18, %v3908_v18 }
0x16c8   :  { %v3414_v28 = vmul.f32 %v3405_v24, %v3405_v24 }
0x16ca   :  { %3933 = vmatprep.mubr.msk.f32.mxu0 %vm3428_vm3, %v3414_v28 }
0x16cb   :  { %3934 = vmatmul.mubr.msk.f32.vlgmr.msra.gmra.mrb[34].mxu0 %vm3428_vm3, %v3415_v49 }
0x179e   :  { %v3935_v42 = vpop.f32.mrb[34].mxu0 }
0x179f   :  { %v3511_v59 = vmax.f32 %v3935_v42, 0.0  ;;  %v3501_v9 = vpop.f32.mrb[35].mxu0 }
0x17a0   :  { %v3510_v16 = vmax.f32 %v3501_v9, 0.0 }
0x17a1   :  { %v3513_v55 = vmul.f32 %v3511_v59, %v3511_v59 }
0x17a2   :  { %v3512_v38 = vmul.f32 %v3511_v59, %v3510_v16 }
0x17a4   :  { %3796 = vmatmul.mubr.msk.f32.vlgmr.msra.gmra.mrb[26].mxu1 %vm3530_vm4, %v3512_v38 }
0x17a5   :  { %3607 = vmatprep.mubr.f32.mxu1 %v5188_v14  ;;  %4680 = vmatpush1.bf16.msra.mxu1 %v4679_v30  ;;  %v3642_v14 = vld [vmem:[%s6251_s23 + $0x30] sm:$0xff] }
0x17a6   :  { %4681 = vmatprep.subr.bf16.mxu1 %v5186_v13  ;;  %v4688_v45 = vpack.c.bf16 %v3643_v35, %v3642_v14 }
0x17a8   :  { %3797 = vmatmul.mubr.msk.f32.gmra.mrb[28].mxu1 %vm3530_vm4, %v3513_v55 }
0x17a9   :  { %4683 = vmatpush1.bf16.msra.mxu1 %v4682_v57 }
0x17aa   :  { %4684 = vmatprep.subr.bf16.mxu1 %v5186_v13 }
0x17ad   :  { %4686 = vmatpush1.bf16.msra.mxu1 %v4685_v56 }
0x17ae   :  { %4687 = vmatprep.subr.bf16.mxu1 %v5186_v13 }
0x17b1   :  { %4689 = vmatpush1.bf16.msra.mxu1 %v4688_v45 }
0x17b2   :  { %4690 = vmatprep.subr.bf16.mxu1 %v5186_v13 }
0x17b5   :  { %4692 = vmatpush1.bf16.msra.mxu1 %v4691_v48 }
0x17b6   :  { %4693 = vmatprep.subr.bf16.mxu1 %v5186_v13 }
0x17b9   :  { %4695 = vmatpush1.bf16.msra.mxu1 %v4694_v22 }
0x17ba   :  { %4696 = vmatprep.subr.bf16.mxu1 %v5186_v13 }
0x17bd   :  { %4698 = vmatpush1.bf16.msra.mxu1 %v4697_v50 }
0x17be   :  { %4699 = vmatprep.subr.bf16.mxu1 %v5186_v13 }
0x17c1   :  { %4701 = vmatpush1.bf16.msra.mxu1 %v4700_v29 }
0x17c2   :  { %4702 = vmatprep.subr.bf16.mxu1 %v5186_v13 }
0x17c5   :  { %4704 = vmatpush1.bf16.msra.mxu1 %v4703_v44 }
0x1877   :  { %v3603_v5 = vpop.f32.mrb[26].mxu1 }
0x1878   :  { %4810 = vrsqrt.f32 %v3603_v5  ;;  %v3605_v7 = vpop.f32.mrb[27].mxu1  ;;  %vm3618_vm5 = vcmp.eq.f32.partialorder %v3603_v5, inf  ;;  %v3621_v53 = vand.u32 2147483648, %v3603_v5  ;;  %vm3620_vm7 = vcmp.eq.f32.partialorder %v3603_v5, 0.0 }
0x1879   :  { %4812 = vrsqrt.f32 %v3605_v7  ;;  %vm3625_vm6 = vcmp.eq.f32.partialorder %v3605_v7, inf  ;;  %v3628_v54 = vand.u32 2147483648, %v3605_v7  ;;  %vm3627_vm8 = vcmp.eq.f32.partialorder %v3605_v7, 0.0 }
0x187b   :  { %v3609_v13 = vpop.f32.mrb[28].mxu1 }
0x187c   :  { %v3614_v20 = vadd.f32 0.001, %v3609_v13  ;;  %v3611_v25 = vpop.f32.mrb[29].mxu1 }
0x187d   :  { %v3615_v19 = vadd.f32 0.001, %v3611_v25 }
0x187e   :  { %4814 = vrsqrt.f32 %v3614_v20 }
0x187f   :  { %4816 = vrsqrt.f32 %v3615_v19 }
0x1882   :  { %v4811_v26 = vpop.eup %4810 }
0x1883   :  { %v4813_v31 = vpop.eup %4812  ;;  %v3617_v11 = vmul.f32 %v4811_v26, %v3603_v5 }
0x1884   :  { %v3624_v33 = vmul.f32 %v4813_v31, %v3605_v7 }
0x1885   :  { %v3619_v39 = vsel %vm3618_vm5, %v3603_v5, %v3617_v11 }
0x1886   :  { %v3626_v40 = vsel %vm3625_vm6, %v3605_v7, %v3624_v33  ;;  %v3622_v18 = vsel %vm3620_vm7, %v3621_v53, %v3619_v39 }
0x1887   :  { %v3629_v49 = vsel %vm3627_vm8, %v3628_v54, %v3626_v40 }
0x1888   :  { %v4815_v8 = vpop.eup %4814 }
0x1889   :  { %v4817_v24 = vpop.eup %4816  ;;  %v3632_v28 = vmul.f32 %v4815_v8, %v3622_v18 }
0x188a   :  { %v3633_v3 = vmul.f32 %v4817_v24, %v3629_v49 }
0x188b   :  { %v3634_v41 = vmul.f32 %v3632_v28, %v6050_v51 }
0x188c   :  { %v3635_v15 = vmul.f32 %v3633_v3, %v6054_v62 }
0x188e   :  { %3799 = vmatprep.mubr.msk.f32.mxu1 %vm272_vm0, %v3635_v15 }
0x188f   :  { %3729 = vmatmul.mubr.f32.vlgmr.msra.gmra.mrb[30].mxu1 %v3634_v41 }
0x1962   :  { %v3730_v23 = vpop.f32.mrb[30].mxu1 }
0x1963   :  { %v3731_v17 = vadd.f32 %v3798_v61, %v3730_v23  ;;  %v3732_v42 = vpop.f32.mrb[31].mxu1 }
0x1965   :  { %v3734_v21 = vsub.f32 %v3731_v17, %v5587_v32 }
0x1967   :  { %v3741_v59 = vmul.f32 %v3739_v36, %v3734_v21 }
0x1969   :  { %v3742_v9 = vmul.f32 %v3741_v59, %v5589_v34 }
0x196b   :  { %v3743_v16 = vadd.f32 %v3742_v9, %v5555_v6 }
0x196d   :  { %3744 = vst.msk [vmem:[%s6281_s7] sm:$0xff] %vm272_vm0, %v3743_v16 }
0x196e   :  { %3749 = vsyncpa [#allocation3], 1 }
0x196f   :  { %3750 = vsyncpa [#allocation5], 1 }
0x1970   :  { %3751 = vsyncpa [#allocation8], 1 }
0x1971   :  { %3752 = vsyncpa [#allocation11], 1 }
0x1972   :  { %3753 = vsyncpa [#allocation14], 1 }
0x1973   :  { %3754 = vsyncpa [#allocation17], 1 }
0x1974   :  { %3755 = vsyncpa [#allocation20], 1 }
0x1975   :  { %3756 = vsyncpa [#allocation23], 1 }

</bundles_post_ra>
